<compile_context>
chip_gen: v6e
topology: v6e:2x2x1
jax: 0.10.0
libtpu: 0.0.40
codegen_flags: <defaults>
</compile_context>

<pallas_src>
import functools

import jax
import jax.numpy as jnp
from jax.experimental import pallas as pl
from jax.experimental.pallas import tpu as pltpu

# ---------------------------------------------------------------------------
# Static network geometry (MNIST Net: 28x28x1 -> 10 classes)
# ---------------------------------------------------------------------------
LANES = 128            # TPU lane width
K = 5                  # conv kernel size
KTAPS = K * K          # 25
KPAD = 32              # conv1 im2col contraction dim, padded 25 -> 32
C1 = 20                # conv1 output channels (valid)
C2 = 50                # conv2 output channels (valid)
CPAD = 25              # per-tap cin lane-group width (20 real + 5 zero lanes)
P1 = 12                # spatial size after pool1 (24 -> 12)
P2 = 4                 # spatial size after pool2 (8 -> 4)
NPOS = P2 * P2         # 16 spatial positions feeding fc1
GRID = P1 * P1         # 144 conv2-grid rows per image
NPHASE = 4             # 2x2 pool1 phases
MROWS = 96             # conv2 rows actually computed (pool2 reads rows <= 91)
M2 = 80                # pool2 slab-max rows (windows anchored at rows <= 78)
TAIL = 8               # a1p tail pad for the row-shift trick on the last image
FC1_IN = NPOS * LANES  # 2048 = 16 positions x 128 padded channels
FC1_OUT = 256
NCLASS = 10
POOL_ROWS = tuple(2 * P1 * p + 2 * q for p in range(P2) for q in range(P2))


# ---------------------------------------------------------------------------
# Fused Pallas kernel: one grid step = BT images
# ---------------------------------------------------------------------------
def _net_fused_kernel(cols_ref, w1_ref, b1_ref, w2_ref, b2_ref,
                      wf1_ref, bf1_ref, wf2_ref, bf2_ref,
                      o_ref, a1p_ref, a5_ref, c2_ref, m_ref, *, bt):
    f32 = jnp.float32
    bf16 = jnp.bfloat16
    btg = bt * GRID

    # Tail rows are read by the row-shift trick on the last image; they only
    # ever feed conv2-grid rows that pool2 never reads, but keep them zero.
    # (Done unconditionally each step: safe under megacore grid splitting.)
    a1p_ref[btg:btg + TAIL, :] = jnp.zeros((TAIL, LANES), f32)

    # Hoisted lane-group masks (JAX does not CSE broadcasts inside the loops).
    lane = jax.lax.broadcasted_iota(jnp.int32, (GRID, LANES), 1)
    grp_lt = [lane < (g + 1) * CPAD for g in range(K - 1)]

    w1v = w1_ref[...]
    b1v = b1_ref[...]
    b2v = b2_ref[...]

    pooled_rows = []
    for b in range(bt):
        base = b * GRID

        # ---- conv1 (phase-ordered im2col matmul on MXU) + bias + ReLU;
        # pool1 = max over the 4 pooling phases, combined in registers.
        a1p = None
        for p in range(NPHASE):
            off = p * btg + base
            y = jnp.dot(cols_ref[off:off + GRID, :], w1v,
                        preferred_element_type=f32)
            y = jnp.maximum(y + b1v, 0.0)
            a1p = y if p == 0 else jnp.maximum(a1p, y)
        a1p_ref[base:base + GRID, :] = a1p                    # (144, 128)

        # ---- pack the 5 kj taps into lanes: conv1 channels are replicated in
        # five 25-lane groups (via the replicated w1), so lane group kj just
        # needs the pooled map shifted down kj rows.  One K=128 matmul per
        # kernel row ki then contracts all (kj, cin) pairs densely.
        s = [a1p_ref[base + kj:base + kj + GRID, :] for kj in range(K)]
        a5 = jnp.where(grp_lt[0], s[0],
             jnp.where(grp_lt[1], s[1],
             jnp.where(grp_lt[2], s[2],
             jnp.where(grp_lt[3], s[3], s[4]))))
        a5_ref[base:base + GRID, :] = a5

        # ---- conv2: 5 row-shifted dense MXU matmuls, only the 96 rows that
        # pool2 can consume.
        acc = None
        for ki in range(K):
            lhs = a5_ref[base + ki * P1:base + ki * P1 + MROWS, :].astype(bf16)
            d = jnp.dot(lhs, w2_ref[ki], preferred_element_type=f32)
            acc = d if ki == 0 else acc + d
        c2_ref[...] = jnp.maximum(acc + b2v, 0.0)             # (96, 128)

        # ---- pool2, vectorised: one slab-wide max (window anchored at every
        # row), then gather only the 16 window rows into the fc1 input row.
        m_ref[...] = jnp.maximum(
            jnp.maximum(c2_ref[0:M2, :], c2_ref[1:M2 + 1, :]),
            jnp.maximum(c2_ref[P1:P1 + M2, :], c2_ref[P1 + 1:P1 + 1 + M2, :]))
        pieces = [m_ref[r:r + 1, :] for r in POOL_ROWS]
        pooled_rows.append(jnp.concatenate(pieces, axis=1))   # (1, 2048)

    pooled = jnp.concatenate(pooled_rows, axis=0)             # (bt, 2048)

    # ---- fc1 + ReLU and fc2 batched over the tile (M = bt on the MXU).
    x1 = jnp.dot(pooled.astype(bf16), wf1_ref[...], preferred_element_type=f32)
    x1 = jnp.maximum(x1 + bf1_ref[...], 0.0)                  # (bt, 256)
    logits = jnp.dot(x1.astype(bf16), wf2_ref[...], preferred_element_type=f32)
    logits = logits + bf2_ref[...]                            # (bt, 128)

    # ---- log_softmax, lane-masked to the 10 real classes.
    cls = jax.lax.broadcasted_iota(jnp.int32, logits.shape, 1)
    masked = jnp.where(cls < NCLASS, logits, -1e30)
    mx = jnp.max(masked, axis=-1, keepdims=True)
    sh = masked - mx
    lse = jnp.log(jnp.sum(jnp.exp(sh), axis=-1, keepdims=True))
    o_ref[...] = sh - lse


# ---------------------------------------------------------------------------
# Wrapper glue: phase-ordered im2col + one-time weight permutations
# ---------------------------------------------------------------------------
def _pick_bt(batch):
    """Batch-tile size: whole batch for small B, 8 for larger divisible B."""
    if batch <= 8:
        return batch
    if batch % 8 == 0:
        return 8
    # TODO(synk): pad ragged batches to a multiple of 8 instead of one big step.
    return batch


def _conv1_phase_cols(x, bt):
    """(B,28,28) -> (B*576, 32) bf16 conv1 im2col.

    Within each batch tile the rows are grouped phase-major:
      row = phase*(bt*144) + b_local*144 + i*12 + j, column ki*5+kj holds
      x[b, 2*i + dh + ki, 2*j + dw + kj]  (phase = dh*2 + dw),
    so pool1 is a max over the 4 per-phase conv1 matmul outputs.
    """
    B = x.shape[0]
    ng = B // bt
    phases = []
    for dh in range(2):
        for dw in range(2):
            taps = [x[:, dh + ki:dh + ki + 23:2, dw + kj:dw + kj + 23:2]
                    for ki in range(K) for kj in range(K)]
            phases.append(jnp.stack(taps, axis=-1))          # (B,12,12,25)
    cols = jnp.stack(phases, axis=1)                          # (B,4,12,12,25)
    cols = cols.reshape(ng, bt, NPHASE, GRID, KTAPS)
    cols = jnp.transpose(cols, (0, 2, 1, 3, 4))               # (ng,4,bt,144,25)
    cols = cols.reshape(ng * NPHASE * bt * GRID, KTAPS)
    cols = jnp.pad(cols, ((0, 0), (0, KPAD - KTAPS)))
    return cols.astype(jnp.bfloat16)


def _prep_params(params):
    """One-time (trace-time) weight reshapes / paddings; same numerics."""
    bf16 = jnp.bfloat16
    # conv1: (20,1,5,5) -> (25,20) [tap,cout], replicated into five 25-lane
    # groups (one per future kj tap) -> (32,128).
    w1 = params["conv1_w"].reshape(C1, KTAPS).T               # (25, 20)
    w1 = jnp.pad(w1, ((0, 0), (0, CPAD - C1)))                # (25, 25)
    w1 = jnp.tile(w1, (1, K))                                 # (25, 125)
    w1 = jnp.pad(w1, ((0, KPAD - KTAPS), (0, LANES - K * CPAD)))
    b1 = jnp.pad(params["conv1_b"], (0, CPAD - C1))
    b1 = jnp.tile(b1, (K,))
    b1 = jnp.pad(b1, (0, LANES - K * CPAD)).reshape(1, LANES)
    # conv2: (50,20,5,5) OIHW -> [ki, kj*25+cin, cout] -> (5,128,128)
    w2 = jnp.transpose(params["conv2_w"], (2, 3, 1, 0))        # (5,5,20,50)
    w2 = jnp.pad(w2, ((0, 0), (0, 0), (0, CPAD - C1), (0, 0)))
    w2 = w2.reshape(K, K * CPAD, C2)                           # (5,125,50)
    w2 = jnp.pad(w2, ((0, 0), (0, LANES - K * CPAD), (0, LANES - C2)))
    b2 = jnp.pad(params["conv2_b"], (0, LANES - C2)).reshape(1, LANES)
    # fc1: rows c*16 + s (PyTorch NCHW flatten) -> (position, padded channel).
    wf1 = params["fc1_w"].reshape(C2, NPOS, FC1_OUT)           # [c, s, n]
    wf1 = jnp.transpose(wf1, (1, 0, 2))                        # [s, c, n]
    wf1 = jnp.pad(wf1, ((0, 0), (0, LANES - C2), (0, 0)))
    wf1 = wf1.reshape(FC1_IN, FC1_OUT)                         # (2048, 256)
    bf1 = params["fc1_b"].reshape(1, FC1_OUT)
    # fc2: (256,10) -> (256,128)
    wf2 = jnp.pad(params["fc2_w"], ((0, 0), (0, LANES - NCLASS)))
    bf2 = jnp.pad(params["fc2_b"], (0, LANES - NCLASS)).reshape(1, LANES)
    return (w1.astype(bf16), b1, w2.astype(bf16), b2,
            wf1.astype(bf16), bf1, wf2.astype(bf16), bf2)


def net_forward(x_nchw, params):
    B = x_nchw.shape[0]
    bt = _pick_bt(B)
    ng = B // bt
    x = x_nchw.reshape(B, 28, 28).astype(jnp.float32)
    cols = _conv1_phase_cols(x, bt)
    w1, b1, w2, b2, wf1, bf1, wf2, bf2 = _prep_params(params)

    out = pl.pallas_call(
        functools.partial(_net_fused_kernel, bt=bt),
        out_shape=jax.ShapeDtypeStruct((B, LANES), jnp.float32),
        grid=(ng,),
        in_specs=[
            pl.BlockSpec((NPHASE * bt * GRID, KPAD), lambda g: (g, 0)),  # cols
            pl.BlockSpec((KPAD, LANES), lambda g: (0, 0)),               # w1
            pl.BlockSpec((1, LANES), lambda g: (0, 0)),                  # b1
            pl.BlockSpec((K, LANES, LANES), lambda g: (0, 0, 0)),        # w2
            pl.BlockSpec((1, LANES), lambda g: (0, 0)),                  # b2
            pl.BlockSpec((FC1_IN, FC1_OUT), lambda g: (0, 0)),           # fc1 w
            pl.BlockSpec((1, FC1_OUT), lambda g: (0, 0)),                # fc1 b
            pl.BlockSpec((FC1_OUT, LANES), lambda g: (0, 0)),            # fc2 w
            pl.BlockSpec((1, LANES), lambda g: (0, 0)),                  # fc2 b
        ],
        out_specs=pl.BlockSpec((bt, LANES), lambda g: (g, 0)),
        scratch_shapes=[
            pltpu.VMEM((bt * GRID + TAIL, LANES), jnp.float32),  # pooled conv1
            pltpu.VMEM((bt * GRID, LANES), jnp.float32),         # kj-packed map
            pltpu.VMEM((MROWS, LANES), jnp.float32),             # conv2 rows
            pltpu.VMEM((M2, LANES), jnp.float32),                # pool2 slab max
        ],
        compiler_params=pltpu.CompilerParams(
            dimension_semantics=("parallel",),
            vmem_limit_bytes=32 * 1024 * 1024,   # v7x-safe; footprint ~3 MB/step
        ),
    )(cols, w1, b1, w2, b2, wf1, bf1, wf2, bf2)
    return out[:, :NCLASS]


# ---------------------------------------------------------------------------
# Pure-JAX reference (mirrors the PyTorch module) for self-checking
# ---------------------------------------------------------------------------
def net_reference(x_nchw, params):
    hi = jax.lax.Precision.HIGHEST
    x = x_nchw.astype(jnp.float32)
    y = jax.lax.conv_general_dilated(
        x, params["conv1_w"], (1, 1), "VALID",
        dimension_numbers=("NCHW", "OIHW", "NCHW"), precision=hi)
    y = jax.nn.relu(y + params["conv1_b"].reshape(1, -1, 1, 1))
    y = y.reshape(y.shape[0], y.shape[1], 12, 2, 12, 2).max(axis=(3, 5))
    y = jax.lax.conv_general_dilated(
        y, params["conv2_w"], (1, 1), "VALID",
        dimension_numbers=("NCHW", "OIHW", "NCHW"), precision=hi)
    y = jax.nn.relu(y + params["conv2_b"].reshape(1, -1, 1, 1))
    y = y.reshape(y.shape[0], y.shape[1], 4, 2, 4, 2).max(axis=(3, 5))
    y = y.reshape(y.shape[0], -1)
    y = jax.nn.relu(jnp.dot(y, params["fc1_w"], precision=hi) + params["fc1_b"])
    y = jnp.dot(y, params["fc2_w"], precision=hi) + params["fc2_b"]
    return jax.nn.log_softmax(y, axis=-1)


if __name__ == "__main__":
    key = jax.random.PRNGKey(0)
    keys = jax.random.split(key, 9)

    def unif(k, shape, fan_in):
        lim = 1.0 / float(fan_in) ** 0.5
        return jax.random.uniform(k, shape, jnp.float32, -lim, lim)

    # Deterministic synthetic parameters (PyTorch-default-style fan-in uniform).
    params = {
        "conv1_w": unif(keys[0], (20, 1, 5, 5), 1 * 5 * 5),
        "conv1_b": unif(keys[1], (20,), 1 * 5 * 5),
        "conv2_w": unif(keys[2], (50, 20, 5, 5), 20 * 5 * 5),
        "conv2_b": unif(keys[3], (50,), 20 * 5 * 5),
        "fc1_w":   unif(keys[4], (800, 256), 800),   # stored (in, out): y = x @ W + b
        "fc1_b":   unif(keys[5], (256,), 800),
        "fc2_w":   unif(keys[6], (256, 10), 256),
        "fc2_b":   unif(keys[7], (10,), 256),
    }

    # MNIST-shaped input (28x28 is required by the 4*4*50 flatten), batch = 2.
    x = jax.random.normal(keys[8], (2, 1, 28, 28), jnp.float32)

    out = jax.block_until_ready(jax.jit(net_forward)(x, params))
    assert out.shape == (2, NCLASS)
    assert bool(jnp.all(jnp.isfinite(out)))
    # log-softmax rows must exponentiate-sum to 1
    assert jnp.allclose(jnp.exp(out).sum(axis=1), 1.0, atol=1e-4)
    # cross-check against the pure-JAX reference (tol covers bf16 MXU inputs)
    ref = net_reference(x, params)
    assert jnp.allclose(out, ref, atol=5e-2, rtol=0.0), \
        float(jnp.max(jnp.abs(out - ref)))
    print("KERNEL_OK")
</pallas_src>

<mosaic_0001>
module attributes {stable_mosaic.version = 11 : i64} {
  func.func @_net_fused_kernel(%arg0: i32, %arg1: memref<1152x32xbf16, #tpu.memory_space<vmem>>, %arg2: memref<32x128xbf16, #tpu.memory_space<vmem>>, %arg3: memref<1x128xf32, #tpu.memory_space<vmem>>, %arg4: memref<5x128x128xbf16, #tpu.memory_space<vmem>>, %arg5: memref<1x128xf32, #tpu.memory_space<vmem>>, %arg6: memref<2048x256xbf16, #tpu.memory_space<vmem>>, %arg7: memref<1x256xf32, #tpu.memory_space<vmem>>, %arg8: memref<256x128xbf16, #tpu.memory_space<vmem>>, %arg9: memref<1x128xf32, #tpu.memory_space<vmem>>, %arg10: memref<2x128xf32, #tpu.memory_space<vmem>>, %arg11: memref<296x128xf32, #tpu.memory_space<vmem>>, %arg12: memref<288x128xf32, #tpu.memory_space<vmem>>, %arg13: memref<96x128xf32, #tpu.memory_space<vmem>>, %arg14: memref<80x128xf32, #tpu.memory_space<vmem>>) attributes {dimension_semantics = [#tpu.dimension_semantics<parallel>], iteration_bounds = array<i64: 1>, scalar_prefetch = 0 : i64, scratch_operands = 4 : i64, tpu.core_type = #tpu.core_type<tc>, window_params = [{transform_indices = @transform_0, window_bounds = array<i64: 1152, 32>}, {pipeline_mode = #tpu.pipeline_mode<synchronous>, transform_indices = @transform_1, window_bounds = array<i64: 32, 128>}, {pipeline_mode = #tpu.pipeline_mode<synchronous>, transform_indices = @transform_2, window_bounds = array<i64: 1, 128>}, {pipeline_mode = #tpu.pipeline_mode<synchronous>, transform_indices = @transform_3, window_bounds = array<i64: 5, 128, 128>}, {pipeline_mode = #tpu.pipeline_mode<synchronous>, transform_indices = @transform_4, window_bounds = array<i64: 1, 128>}, {pipeline_mode = #tpu.pipeline_mode<synchronous>, transform_indices = @transform_5, window_bounds = array<i64: 2048, 256>}, {pipeline_mode = #tpu.pipeline_mode<synchronous>, transform_indices = @transform_6, window_bounds = array<i64: 1, 256>}, {pipeline_mode = #tpu.pipeline_mode<synchronous>, transform_indices = @transform_7, window_bounds = array<i64: 256, 128>}, {pipeline_mode = #tpu.pipeline_mode<synchronous>, transform_indices = @transform_8, window_bounds = array<i64: 1, 128>}, {transform_indices = @transform_9, window_bounds = array<i64: 2, 128>}]} {
    %cst = arith.constant 0.000000e+00 : f32
    %0 = vector.broadcast %cst : f32 to vector<8x128xf32>
    %c288 = arith.constant 288 : index
    %c0 = arith.constant 0 : index
    %1 = vector.load %arg11[%c288, %c0] : memref<296x128xf32, #tpu.memory_space<vmem>>, vector<8x128xf32>
    tpu.vector_store %arg11[%c288, %c0], %0 {strides = array<i32>} : memref<296x128xf32, #tpu.memory_space<vmem>>, vector<8x128xf32>,
    %2 = tpu.iota {dimensions = array<i32: 1>} : vector<144x128xi32>
    %c25_i32 = arith.constant 25 : i32
    %3 = vector.broadcast %c25_i32 : i32 to vector<144x128xi32>
    %4 = arith.cmpi slt, %2, %3 : vector<144x128xi32>
    %c50_i32 = arith.constant 50 : i32
    %5 = vector.broadcast %c50_i32 : i32 to vector<144x128xi32>
    %6 = arith.cmpi slt, %2, %5 : vector<144x128xi32>
    %c75_i32 = arith.constant 75 : i32
    %7 = vector.broadcast %c75_i32 : i32 to vector<144x128xi32>
    %8 = arith.cmpi slt, %2, %7 : vector<144x128xi32>
    %c100_i32 = arith.constant 100 : i32
    %9 = vector.broadcast %c100_i32 : i32 to vector<144x128xi32>
    %10 = arith.cmpi slt, %2, %9 : vector<144x128xi32>
    %c0_0 = arith.constant 0 : index
    %c0_1 = arith.constant 0 : index
    %11 = vector.load %arg2[%c0_0, %c0_1] : memref<32x128xbf16, #tpu.memory_space<vmem>>, vector<32x128xbf16>
    %c0_2 = arith.constant 0 : index
    %c0_3 = arith.constant 0 : index
    %12 = vector.load %arg3[%c0_2, %c0_3] : memref<1x128xf32, #tpu.memory_space<vmem>>, vector<1x128xf32>
    %c0_4 = arith.constant 0 : index
    %c0_5 = arith.constant 0 : index
    %13 = vector.load %arg5[%c0_4, %c0_5] : memref<1x128xf32, #tpu.memory_space<vmem>>, vector<1x128xf32>
    %c0_6 = arith.constant 0 : index
    %c0_7 = arith.constant 0 : index
    %14 = vector.load %arg1[%c0_6, %c0_7] : memref<1152x32xbf16, #tpu.memory_space<vmem>>, vector<144x32xbf16>
    %cst_8 = arith.constant dense<0.000000e+00> : vector<144x128xf32>
    %15 = tpu.matmul %14, %11, %cst_8 {dimension_numbers = #tpu.dot_dimension_numbers<[1], [0], [0], [1], [0, 0, 1, 1], [], []>} : vector<144x32xbf16>, vector<32x128xbf16>, vector<144x128xf32> -> vector<144x128xf32>
    %16 = vector.broadcast %12 : vector<1x128xf32> to vector<144x128xf32>
    %17 = arith.addf %15, %16 : vector<144x128xf32>
    %cst_9 = arith.constant 0.000000e+00 : f32
    %18 = vector.broadcast %cst_9 : f32 to vector<144x128xf32>
    %19 = arith.maximumf %17, %18 : vector<144x128xf32>
    %c288_10 = arith.constant 288 : index
    %c0_11 = arith.constant 0 : index
    %20 = vector.load %arg1[%c288_10, %c0_11] : memref<1152x32xbf16, #tpu.memory_space<vmem>>, vector<144x32xbf16>
    %cst_12 = arith.constant dense<0.000000e+00> : vector<144x128xf32>
    %21 = tpu.matmul %20, %11, %cst_12 {dimension_numbers = #tpu.dot_dimension_numbers<[1], [0], [0], [1], [0, 0, 1, 1], [], []>} : vector<144x32xbf16>, vector<32x128xbf16>, vector<144x128xf32> -> vector<144x128xf32>
    %22 = vector.broadcast %12 : vector<1x128xf32> to vector<144x128xf32>
    %23 = arith.addf %21, %22 : vector<144x128xf32>
    %cst_13 = arith.constant 0.000000e+00 : f32
    %24 = vector.broadcast %cst_13 : f32 to vector<144x128xf32>
    %25 = arith.maximumf %23, %24 : vector<144x128xf32>
    %26 = arith.maximumf %19, %25 : vector<144x128xf32>
    %c576 = arith.constant 576 : index
    %c0_14 = arith.constant 0 : index
    %27 = vector.load %arg1[%c576, %c0_14] : memref<1152x32xbf16, #tpu.memory_space<vmem>>, vector<144x32xbf16>
    %cst_15 = arith.constant dense<0.000000e+00> : vector<144x128xf32>
    %28 = tpu.matmul %27, %11, %cst_15 {dimension_numbers = #tpu.dot_dimension_numbers<[1], [0], [0], [1], [0, 0, 1, 1], [], []>} : vector<144x32xbf16>, vector<32x128xbf16>, vector<144x128xf32> -> vector<144x128xf32>
    %29 = vector.broadcast %12 : vector<1x128xf32> to vector<144x128xf32>
    %30 = arith.addf %28, %29 : vector<144x128xf32>
    %cst_16 = arith.constant 0.000000e+00 : f32
    %31 = vector.broadcast %cst_16 : f32 to vector<144x128xf32>
    %32 = arith.maximumf %30, %31 : vector<144x128xf32>
    %33 = arith.maximumf %26, %32 : vector<144x128xf32>
    %c864 = arith.constant 864 : index
    %c0_17 = arith.constant 0 : index
    %34 = vector.load %arg1[%c864, %c0_17] : memref<1152x32xbf16, #tpu.memory_space<vmem>>, vector<144x32xbf16>
    %cst_18 = arith.constant dense<0.000000e+00> : vector<144x128xf32>
    %35 = tpu.matmul %34, %11, %cst_18 {dimension_numbers = #tpu.dot_dimension_numbers<[1], [0], [0], [1], [0, 0, 1, 1], [], []>} : vector<144x32xbf16>, vector<32x128xbf16>, vector<144x128xf32> -> vector<144x128xf32>
    %36 = vector.broadcast %12 : vector<1x128xf32> to vector<144x128xf32>
    %37 = arith.addf %35, %36 : vector<144x128xf32>
    %cst_19 = arith.constant 0.000000e+00 : f32
    %38 = vector.broadcast %cst_19 : f32 to vector<144x128xf32>
    %39 = arith.maximumf %37, %38 : vector<144x128xf32>
    %40 = arith.maximumf %33, %39 : vector<144x128xf32>
    %c0_20 = arith.constant 0 : index
    %c0_21 = arith.constant 0 : index
    %41 = vector.load %arg11[%c0_20, %c0_21] : memref<296x128xf32, #tpu.memory_space<vmem>>, vector<144x128xf32>
    tpu.vector_store %arg11[%c0_20, %c0_21], %40 {strides = array<i32>} : memref<296x128xf32, #tpu.memory_space<vmem>>, vector<144x128xf32>,
    %c0_22 = arith.constant 0 : index
    %c0_23 = arith.constant 0 : index
    %42 = vector.load %arg11[%c0_22, %c0_23] : memref<296x128xf32, #tpu.memory_space<vmem>>, vector<144x128xf32>
    %c1 = arith.constant 1 : index
    %c0_24 = arith.constant 0 : index
    %43 = vector.load %arg11[%c1, %c0_24] : memref<296x128xf32, #tpu.memory_space<vmem>>, vector<144x128xf32>
    %c2 = arith.constant 2 : index
    %c0_25 = arith.constant 0 : index
    %44 = vector.load %arg11[%c2, %c0_25] : memref<296x128xf32, #tpu.memory_space<vmem>>, vector<144x128xf32>
    %c3 = arith.constant 3 : index
    %c0_26 = arith.constant 0 : index
    %45 = vector.load %arg11[%c3, %c0_26] : memref<296x128xf32, #tpu.memory_space<vmem>>, vector<144x128xf32>
    %c4 = arith.constant 4 : index
    %c0_27 = arith.constant 0 : index
    %46 = vector.load %arg11[%c4, %c0_27] : memref<296x128xf32, #tpu.memory_space<vmem>>, vector<144x128xf32>
    %47 = arith.select %10, %45, %46 : vector<144x128xi1>, vector<144x128xf32>
    %48 = arith.select %8, %44, %47 : vector<144x128xi1>, vector<144x128xf32>
    %49 = arith.select %6, %43, %48 : vector<144x128xi1>, vector<144x128xf32>
    %50 = arith.select %4, %42, %49 : vector<144x128xi1>, vector<144x128xf32>
    %c0_28 = arith.constant 0 : index
    %c0_29 = arith.constant 0 : index
    %51 = vector.load %arg12[%c0_28, %c0_29] : memref<288x128xf32, #tpu.memory_space<vmem>>, vector<144x128xf32>
    tpu.vector_store %arg12[%c0_28, %c0_29], %50 {strides = array<i32>} : memref<288x128xf32, #tpu.memory_space<vmem>>, vector<144x128xf32>,
    %c0_30 = arith.constant 0 : index
    %c0_31 = arith.constant 0 : index
    %52 = vector.load %arg12[%c0_30, %c0_31] : memref<288x128xf32, #tpu.memory_space<vmem>>, vector<96x128xf32>
    %53 = arith.truncf %52 : vector<96x128xf32> to vector<96x128xbf16>
    %c0_32 = arith.constant 0 : index
    %c0_33 = arith.constant 0 : index
    %c0_34 = arith.constant 0 : index
    %54 = vector.load %arg4[%c0_32, %c0_33, %c0_34] : memref<5x128x128xbf16, #tpu.memory_space<vmem>>, vector<1x128x128xbf16>
    %55 = vector.shape_cast %54 : vector<1x128x128xbf16> to vector<128x128xbf16>
    %cst_35 = arith.constant dense<0.000000e+00> : vector<96x128xf32>
    %56 = tpu.matmul %53, %55, %cst_35 {dimension_numbers = #tpu.dot_dimension_numbers<[1], [0], [0], [1], [0, 0, 1, 1], [], []>} : vector<96x128xbf16>, vector<128x128xbf16>, vector<96x128xf32> -> vector<96x128xf32>
    %c12 = arith.constant 12 : index
    %c0_36 = arith.constant 0 : index
    %57 = vector.load %arg12[%c12, %c0_36] : memref<288x128xf32, #tpu.memory_space<vmem>>, vector<96x128xf32>
    %58 = arith.truncf %57 : vector<96x128xf32> to vector<96x128xbf16>
    %c1_37 = arith.constant 1 : index
    %c0_38 = arith.constant 0 : index
    %c0_39 = arith.constant 0 : index
    %59 = vector.load %arg4[%c1_37, %c0_38, %c0_39] : memref<5x128x128xbf16, #tpu.memory_space<vmem>>, vector<1x128x128xbf16>
    %60 = vector.shape_cast %59 : vector<1x128x128xbf16> to vector<128x128xbf16>
    %cst_40 = arith.constant dense<0.000000e+00> : vector<96x128xf32>
    %61 = tpu.matmul %58, %60, %cst_40 {dimension_numbers = #tpu.dot_dimension_numbers<[1], [0], [0], [1], [0, 0, 1, 1], [], []>} : vector<96x128xbf16>, vector<128x128xbf16>, vector<96x128xf32> -> vector<96x128xf32>
    %62 = arith.addf %56, %61 : vector<96x128xf32>
    %c24 = arith.constant 24 : index
    %c0_41 = arith.constant 0 : index
    %63 = vector.load %arg12[%c24, %c0_41] : memref<288x128xf32, #tpu.memory_space<vmem>>, vector<96x128xf32>
    %64 = arith.truncf %63 : vector<96x128xf32> to vector<96x128xbf16>
    %c2_42 = arith.constant 2 : index
    %c0_43 = arith.constant 0 : index
    %c0_44 = arith.constant 0 : index
    %65 = vector.load %arg4[%c2_42, %c0_43, %c0_44] : memref<5x128x128xbf16, #tpu.memory_space<vmem>>, vector<1x128x128xbf16>
    %66 = vector.shape_cast %65 : vector<1x128x128xbf16> to vector<128x128xbf16>
    %cst_45 = arith.constant dense<0.000000e+00> : vector<96x128xf32>
    %67 = tpu.matmul %64, %66, %cst_45 {dimension_numbers = #tpu.dot_dimension_numbers<[1], [0], [0], [1], [0, 0, 1, 1], [], []>} : vector<96x128xbf16>, vector<128x128xbf16>, vector<96x128xf32> -> vector<96x128xf32>
    %68 = arith.addf %62, %67 : vector<96x128xf32>
    %c36 = arith.constant 36 : index
    %c0_46 = arith.constant 0 : index
    %69 = vector.load %arg12[%c36, %c0_46] : memref<288x128xf32, #tpu.memory_space<vmem>>, vector<96x128xf32>
    %70 = arith.truncf %69 : vector<96x128xf32> to vector<96x128xbf16>
    %c3_47 = arith.constant 3 : index
    %c0_48 = arith.constant 0 : index
    %c0_49 = arith.constant 0 : index
    %71 = vector.load %arg4[%c3_47, %c0_48, %c0_49] : memref<5x128x128xbf16, #tpu.memory_space<vmem>>, vector<1x128x128xbf16>
    %72 = vector.shape_cast %71 : vector<1x128x128xbf16> to vector<128x128xbf16>
    %cst_50 = arith.constant dense<0.000000e+00> : vector<96x128xf32>
    %73 = tpu.matmul %70, %72, %cst_50 {dimension_numbers = #tpu.dot_dimension_numbers<[1], [0], [0], [1], [0, 0, 1, 1], [], []>} : vector<96x128xbf16>, vector<128x128xbf16>, vector<96x128xf32> -> vector<96x128xf32>
    %74 = arith.addf %68, %73 : vector<96x128xf32>
    %c48 = arith.constant 48 : index
    %c0_51 = arith.constant 0 : index
    %75 = vector.load %arg12[%c48, %c0_51] : memref<288x128xf32, #tpu.memory_space<vmem>>, vector<96x128xf32>
    %76 = arith.truncf %75 : vector<96x128xf32> to vector<96x128xbf16>
    %c4_52 = arith.constant 4 : index
    %c0_53 = arith.constant 0 : index
    %c0_54 = arith.constant 0 : index
    %77 = vector.load %arg4[%c4_52, %c0_53, %c0_54] : memref<5x128x128xbf16, #tpu.memory_space<vmem>>, vector<1x128x128xbf16>
    %78 = vector.shape_cast %77 : vector<1x128x128xbf16> to vector<128x128xbf16>
    %cst_55 = arith.constant dense<0.000000e+00> : vector<96x128xf32>
    %79 = tpu.matmul %76, %78, %cst_55 {dimension_numbers = #tpu.dot_dimension_numbers<[1], [0], [0], [1], [0, 0, 1, 1], [], []>} : vector<96x128xbf16>, vector<128x128xbf16>, vector<96x128xf32> -> vector<96x128xf32>
    %80 = arith.addf %74, %79 : vector<96x128xf32>
    %81 = vector.broadcast %13 : vector<1x128xf32> to vector<96x128xf32>
    %82 = arith.addf %80, %81 : vector<96x128xf32>
    %cst_56 = arith.constant 0.000000e+00 : f32
    %83 = vector.broadcast %cst_56 : f32 to vector<96x128xf32>
    %84 = arith.maximumf %82, %83 : vector<96x128xf32>
    %c0_57 = arith.constant 0 : index
    %c0_58 = arith.constant 0 : index
    %85 = vector.load %arg13[%c0_57, %c0_58] : memref<96x128xf32, #tpu.memory_space<vmem>>, vector<96x128xf32>
    tpu.vector_store %arg13[%c0_57, %c0_58], %84 {strides = array<i32>} : memref<96x128xf32, #tpu.memory_space<vmem>>, vector<96x128xf32>,
    %c0_59 = arith.constant 0 : index
    %c0_60 = arith.constant 0 : index
    %86 = vector.load %arg13[%c0_59, %c0_60] : memref<96x128xf32, #tpu.memory_space<vmem>>, vector<80x128xf32>
    %c1_61 = arith.constant 1 : index
    %c0_62 = arith.constant 0 : index
    %87 = vector.load %arg13[%c1_61, %c0_62] : memref<96x128xf32, #tpu.memory_space<vmem>>, vector<80x128xf32>
    %88 = arith.maximumf %86, %87 : vector<80x128xf32>
    %c12_63 = arith.constant 12 : index
    %c0_64 = arith.constant 0 : index
    %89 = vector.load %arg13[%c12_63, %c0_64] : memref<96x128xf32, #tpu.memory_space<vmem>>, vector<80x128xf32>
    %c13 = arith.constant 13 : index
    %c0_65 = arith.constant 0 : index
    %90 = vector.load %arg13[%c13, %c0_65] : memref<96x128xf32, #tpu.memory_space<vmem>>, vector<80x128xf32>
    %91 = arith.maximumf %89, %90 : vector<80x128xf32>
    %92 = arith.maximumf %88, %91 : vector<80x128xf32>
    %c0_66 = arith.constant 0 : index
    %c0_67 = arith.constant 0 : index
    %93 = vector.load %arg14[%c0_66, %c0_67] : memref<80x128xf32, #tpu.memory_space<vmem>>, vector<80x128xf32>
    tpu.vector_store %arg14[%c0_66, %c0_67], %92 {strides = array<i32>} : memref<80x128xf32, #tpu.memory_space<vmem>>, vector<80x128xf32>,
    %c0_68 = arith.constant 0 : index
    %c0_69 = arith.constant 0 : index
    %94 = vector.load %arg14[%c0_68, %c0_69] : memref<80x128xf32, #tpu.memory_space<vmem>>, vector<1x128xf32>
    %c2_70 = arith.constant 2 : index
    %c0_71 = arith.constant 0 : index
    %95 = vector.load %arg14[%c2_70, %c0_71] : memref<80x128xf32, #tpu.memory_space<vmem>>, vector<1x128xf32>
    %c4_72 = arith.constant 4 : index
    %c0_73 = arith.constant 0 : index
    %96 = vector.load %arg14[%c4_72, %c0_73] : memref<80x128xf32, #tpu.memory_space<vmem>>, vector<1x128xf32>
    %c6 = arith.constant 6 : index
    %c0_74 = arith.constant 0 : index
    %97 = vector.load %arg14[%c6, %c0_74] : memref<80x128xf32, #tpu.memory_space<vmem>>, vector<1x128xf32>
    %c24_75 = arith.constant 24 : index
    %c0_76 = arith.constant 0 : index
    %98 = vector.load %arg14[%c24_75, %c0_76] : memref<80x128xf32, #tpu.memory_space<vmem>>, vector<1x128xf32>
    %c26 = arith.constant 26 : index
    %c0_77 = arith.constant 0 : index
    %99 = vector.load %arg14[%c26, %c0_77] : memref<80x128xf32, #tpu.memory_space<vmem>>, vector<1x128xf32>
    %c28 = arith.constant 28 : index
    %c0_78 = arith.constant 0 : index
    %100 = vector.load %arg14[%c28, %c0_78] : memref<80x128xf32, #tpu.memory_space<vmem>>, vector<1x128xf32>
    %c30 = arith.constant 30 : index
    %c0_79 = arith.constant 0 : index
    %101 = vector.load %arg14[%c30, %c0_79] : memref<80x128xf32, #tpu.memory_space<vmem>>, vector<1x128xf32>
    %c48_80 = arith.constant 48 : index
    %c0_81 = arith.constant 0 : index
    %102 = vector.load %arg14[%c48_80, %c0_81] : memref<80x128xf32, #tpu.memory_space<vmem>>, vector<1x128xf32>
    %c50 = arith.constant 50 : index
    %c0_82 = arith.constant 0 : index
    %103 = vector.load %arg14[%c50, %c0_82] : memref<80x128xf32, #tpu.memory_space<vmem>>, vector<1x128xf32>
    %c52 = arith.constant 52 : index
    %c0_83 = arith.constant 0 : index
    %104 = vector.load %arg14[%c52, %c0_83] : memref<80x128xf32, #tpu.memory_space<vmem>>, vector<1x128xf32>
    %c54 = arith.constant 54 : index
    %c0_84 = arith.constant 0 : index
    %105 = vector.load %arg14[%c54, %c0_84] : memref<80x128xf32, #tpu.memory_space<vmem>>, vector<1x128xf32>
    %c72 = arith.constant 72 : index
    %c0_85 = arith.constant 0 : index
    %106 = vector.load %arg14[%c72, %c0_85] : memref<80x128xf32, #tpu.memory_space<vmem>>, vector<1x128xf32>
    %c74 = arith.constant 74 : index
    %c0_86 = arith.constant 0 : index
    %107 = vector.load %arg14[%c74, %c0_86] : memref<80x128xf32, #tpu.memory_space<vmem>>, vector<1x128xf32>
    %c76 = arith.constant 76 : index
    %c0_87 = arith.constant 0 : index
    %108 = vector.load %arg14[%c76, %c0_87] : memref<80x128xf32, #tpu.memory_space<vmem>>, vector<1x128xf32>
    %c78 = arith.constant 78 : index
    %c0_88 = arith.constant 0 : index
    %109 = vector.load %arg14[%c78, %c0_88] : memref<80x128xf32, #tpu.memory_space<vmem>>, vector<1x128xf32>
    %110 = tpu.concatenate %94, %95, %96, %97, %98, %99, %100, %101, %102, %103, %104, %105, %106, %107, %108, %109 in 1 : vector<1x128xf32>, vector<1x128xf32>, vector<1x128xf32>, vector<1x128xf32>, vector<1x128xf32>, vector<1x128xf32>, vector<1x128xf32>, vector<1x128xf32>, vector<1x128xf32>, vector<1x128xf32>, vector<1x128xf32>, vector<1x128xf32>, vector<1x128xf32>, vector<1x128xf32>, vector<1x128xf32>, vector<1x128xf32> -> vector<1x2048xf32>
    %c144 = arith.constant 144 : index
    %c0_89 = arith.constant 0 : index
    %111 = vector.load %arg1[%c144, %c0_89] : memref<1152x32xbf16, #tpu.memory_space<vmem>>, vector<144x32xbf16>
    %cst_90 = arith.constant dense<0.000000e+00> : vector<144x128xf32>
    %112 = tpu.matmul %111, %11, %cst_90 {dimension_numbers = #tpu.dot_dimension_numbers<[1], [0], [0], [1], [0, 0, 1, 1], [], []>} : vector<144x32xbf16>, vector<32x128xbf16>, vector<144x128xf32> -> vector<144x128xf32>
    %113 = vector.broadcast %12 : vector<1x128xf32> to vector<144x128xf32>
    %114 = arith.addf %112, %113 : vector<144x128xf32>
    %cst_91 = arith.constant 0.000000e+00 : f32
    %115 = vector.broadcast %cst_91 : f32 to vector<144x128xf32>
    %116 = arith.maximumf %114, %115 : vector<144x128xf32>
    %c432 = arith.constant 432 : index
    %c0_92 = arith.constant 0 : index
    %117 = vector.load %arg1[%c432, %c0_92] : memref<1152x32xbf16, #tpu.memory_space<vmem>>, vector<144x32xbf16>
    %cst_93 = arith.constant dense<0.000000e+00> : vector<144x128xf32>
    %118 = tpu.matmul %117, %11, %cst_93 {dimension_numbers = #tpu.dot_dimension_numbers<[1], [0], [0], [1], [0, 0, 1, 1], [], []>} : vector<144x32xbf16>, vector<32x128xbf16>, vector<144x128xf32> -> vector<144x128xf32>
    %119 = vector.broadcast %12 : vector<1x128xf32> to vector<144x128xf32>
    %120 = arith.addf %118, %119 : vector<144x128xf32>
    %cst_94 = arith.constant 0.000000e+00 : f32
    %121 = vector.broadcast %cst_94 : f32 to vector<144x128xf32>
    %122 = arith.maximumf %120, %121 : vector<144x128xf32>
    %123 = arith.maximumf %116, %122 : vector<144x128xf32>
    %c720 = arith.constant 720 : index
    %c0_95 = arith.constant 0 : index
    %124 = vector.load %arg1[%c720, %c0_95] : memref<1152x32xbf16, #tpu.memory_space<vmem>>, vector<144x32xbf16>
    %cst_96 = arith.constant dense<0.000000e+00> : vector<144x128xf32>
    %125 = tpu.matmul %124, %11, %cst_96 {dimension_numbers = #tpu.dot_dimension_numbers<[1], [0], [0], [1], [0, 0, 1, 1], [], []>} : vector<144x32xbf16>, vector<32x128xbf16>, vector<144x128xf32> -> vector<144x128xf32>
    %126 = vector.broadcast %12 : vector<1x128xf32> to vector<144x128xf32>
    %127 = arith.addf %125, %126 : vector<144x128xf32>
    %cst_97 = arith.constant 0.000000e+00 : f32
    %128 = vector.broadcast %cst_97 : f32 to vector<144x128xf32>
    %129 = arith.maximumf %127, %128 : vector<144x128xf32>
    %130 = arith.maximumf %123, %129 : vector<144x128xf32>
    %c1008 = arith.constant 1008 : index
    %c0_98 = arith.constant 0 : index
    %131 = vector.load %arg1[%c1008, %c0_98] : memref<1152x32xbf16, #tpu.memory_space<vmem>>, vector<144x32xbf16>
    %cst_99 = arith.constant dense<0.000000e+00> : vector<144x128xf32>
    %132 = tpu.matmul %131, %11, %cst_99 {dimension_numbers = #tpu.dot_dimension_numbers<[1], [0], [0], [1], [0, 0, 1, 1], [], []>} : vector<144x32xbf16>, vector<32x128xbf16>, vector<144x128xf32> -> vector<144x128xf32>
    %133 = vector.broadcast %12 : vector<1x128xf32> to vector<144x128xf32>
    %134 = arith.addf %132, %133 : vector<144x128xf32>
    %cst_100 = arith.constant 0.000000e+00 : f32
    %135 = vector.broadcast %cst_100 : f32 to vector<144x128xf32>
    %136 = arith.maximumf %134, %135 : vector<144x128xf32>
    %137 = arith.maximumf %130, %136 : vector<144x128xf32>
    %c144_101 = arith.constant 144 : index
    %c0_102 = arith.constant 0 : index
    %138 = vector.load %arg11[%c144_101, %c0_102] : memref<296x128xf32, #tpu.memory_space<vmem>>, vector<144x128xf32>
    tpu.vector_store %arg11[%c144_101, %c0_102], %137 {strides = array<i32>} : memref<296x128xf32, #tpu.memory_space<vmem>>, vector<144x128xf32>,
    %c144_103 = arith.constant 144 : index
    %c0_104 = arith.constant 0 : index
    %139 = vector.load %arg11[%c144_103, %c0_104] : memref<296x128xf32, #tpu.memory_space<vmem>>, vector<144x128xf32>
    %c145 = arith.constant 145 : index
    %c0_105 = arith.constant 0 : index
    %140 = vector.load %arg11[%c145, %c0_105] : memref<296x128xf32, #tpu.memory_space<vmem>>, vector<144x128xf32>
    %c146 = arith.constant 146 : index
    %c0_106 = arith.constant 0 : index
    %141 = vector.load %arg11[%c146, %c0_106] : memref<296x128xf32, #tpu.memory_space<vmem>>, vector<144x128xf32>
    %c147 = arith.constant 147 : index
    %c0_107 = arith.constant 0 : index
    %142 = vector.load %arg11[%c147, %c0_107] : memref<296x128xf32, #tpu.memory_space<vmem>>, vector<144x128xf32>
    %c148 = arith.constant 148 : index
    %c0_108 = arith.constant 0 : index
    %143 = vector.load %arg11[%c148, %c0_108] : memref<296x128xf32, #tpu.memory_space<vmem>>, vector<144x128xf32>
    %144 = arith.select %10, %142, %143 : vector<144x128xi1>, vector<144x128xf32>
    %145 = arith.select %8, %141, %144 : vector<144x128xi1>, vector<144x128xf32>
    %146 = arith.select %6, %140, %145 : vector<144x128xi1>, vector<144x128xf32>
    %147 = arith.select %4, %139, %146 : vector<144x128xi1>, vector<144x128xf32>
    %c144_109 = arith.constant 144 : index
    %c0_110 = arith.constant 0 : index
    %148 = vector.load %arg12[%c144_109, %c0_110] : memref<288x128xf32, #tpu.memory_space<vmem>>, vector<144x128xf32>
    tpu.vector_store %arg12[%c144_109, %c0_110], %147 {strides = array<i32>} : memref<288x128xf32, #tpu.memory_space<vmem>>, vector<144x128xf32>,
    %c144_111 = arith.constant 144 : index
    %c0_112 = arith.constant 0 : index
    %149 = vector.load %arg12[%c144_111, %c0_112] : memref<288x128xf32, #tpu.memory_space<vmem>>, vector<96x128xf32>
    %150 = arith.truncf %149 : vector<96x128xf32> to vector<96x128xbf16>
    %c0_113 = arith.constant 0 : index
    %c0_114 = arith.constant 0 : index
    %c0_115 = arith.constant 0 : index
    %151 = vector.load %arg4[%c0_113, %c0_114, %c0_115] : memref<5x128x128xbf16, #tpu.memory_space<vmem>>, vector<1x128x128xbf16>
    %152 = vector.shape_cast %151 : vector<1x128x128xbf16> to vector<128x128xbf16>
    %cst_116 = arith.constant dense<0.000000e+00> : vector<96x128xf32>
    %153 = tpu.matmul %150, %152, %cst_116 {dimension_numbers = #tpu.dot_dimension_numbers<[1], [0], [0], [1], [0, 0, 1, 1], [], []>} : vector<96x128xbf16>, vector<128x128xbf16>, vector<96x128xf32> -> vector<96x128xf32>
    %c156 = arith.constant 156 : index
    %c0_117 = arith.constant 0 : index
    %154 = vector.load %arg12[%c156, %c0_117] : memref<288x128xf32, #tpu.memory_space<vmem>>, vector<96x128xf32>
    %155 = arith.truncf %154 : vector<96x128xf32> to vector<96x128xbf16>
    %c1_118 = arith.constant 1 : index
    %c0_119 = arith.constant 0 : index
    %c0_120 = arith.constant 0 : index
    %156 = vector.load %arg4[%c1_118, %c0_119, %c0_120] : memref<5x128x128xbf16, #tpu.memory_space<vmem>>, vector<1x128x128xbf16>
    %157 = vector.shape_cast %156 : vector<1x128x128xbf16> to vector<128x128xbf16>
    %cst_121 = arith.constant dense<0.000000e+00> : vector<96x128xf32>
    %158 = tpu.matmul %155, %157, %cst_121 {dimension_numbers = #tpu.dot_dimension_numbers<[1], [0], [0], [1], [0, 0, 1, 1], [], []>} : vector<96x128xbf16>, vector<128x128xbf16>, vector<96x128xf32> -> vector<96x128xf32>
    %159 = arith.addf %153, %158 : vector<96x128xf32>
    %c168 = arith.constant 168 : index
    %c0_122 = arith.constant 0 : index
    %160 = vector.load %arg12[%c168, %c0_122] : memref<288x128xf32, #tpu.memory_space<vmem>>, vector<96x128xf32>
    %161 = arith.truncf %160 : vector<96x128xf32> to vector<96x128xbf16>
    %c2_123 = arith.constant 2 : index
    %c0_124 = arith.constant 0 : index
    %c0_125 = arith.constant 0 : index
    %162 = vector.load %arg4[%c2_123, %c0_124, %c0_125] : memref<5x128x128xbf16, #tpu.memory_space<vmem>>, vector<1x128x128xbf16>
    %163 = vector.shape_cast %162 : vector<1x128x128xbf16> to vector<128x128xbf16>
    %cst_126 = arith.constant dense<0.000000e+00> : vector<96x128xf32>
    %164 = tpu.matmul %161, %163, %cst_126 {dimension_numbers = #tpu.dot_dimension_numbers<[1], [0], [0], [1], [0, 0, 1, 1], [], []>} : vector<96x128xbf16>, vector<128x128xbf16>, vector<96x128xf32> -> vector<96x128xf32>
    %165 = arith.addf %159, %164 : vector<96x128xf32>
    %c180 = arith.constant 180 : index
    %c0_127 = arith.constant 0 : index
    %166 = vector.load %arg12[%c180, %c0_127] : memref<288x128xf32, #tpu.memory_space<vmem>>, vector<96x128xf32>
    %167 = arith.truncf %166 : vector<96x128xf32> to vector<96x128xbf16>
    %c3_128 = arith.constant 3 : index
    %c0_129 = arith.constant 0 : index
    %c0_130 = arith.constant 0 : index
    %168 = vector.load %arg4[%c3_128, %c0_129, %c0_130] : memref<5x128x128xbf16, #tpu.memory_space<vmem>>, vector<1x128x128xbf16>
    %169 = vector.shape_cast %168 : vector<1x128x128xbf16> to vector<128x128xbf16>
    %cst_131 = arith.constant dense<0.000000e+00> : vector<96x128xf32>
    %170 = tpu.matmul %167, %169, %cst_131 {dimension_numbers = #tpu.dot_dimension_numbers<[1], [0], [0], [1], [0, 0, 1, 1], [], []>} : vector<96x128xbf16>, vector<128x128xbf16>, vector<96x128xf32> -> vector<96x128xf32>
    %171 = arith.addf %165, %170 : vector<96x128xf32>
    %c192 = arith.constant 192 : index
    %c0_132 = arith.constant 0 : index
    %172 = vector.load %arg12[%c192, %c0_132] : memref<288x128xf32, #tpu.memory_space<vmem>>, vector<96x128xf32>
    %173 = arith.truncf %172 : vector<96x128xf32> to vector<96x128xbf16>
    %c4_133 = arith.constant 4 : index
    %c0_134 = arith.constant 0 : index
    %c0_135 = arith.constant 0 : index
    %174 = vector.load %arg4[%c4_133, %c0_134, %c0_135] : memref<5x128x128xbf16, #tpu.memory_space<vmem>>, vector<1x128x128xbf16>
    %175 = vector.shape_cast %174 : vector<1x128x128xbf16> to vector<128x128xbf16>
    %cst_136 = arith.constant dense<0.000000e+00> : vector<96x128xf32>
    %176 = tpu.matmul %173, %175, %cst_136 {dimension_numbers = #tpu.dot_dimension_numbers<[1], [0], [0], [1], [0, 0, 1, 1], [], []>} : vector<96x128xbf16>, vector<128x128xbf16>, vector<96x128xf32> -> vector<96x128xf32>
    %177 = arith.addf %171, %176 : vector<96x128xf32>
    %178 = vector.broadcast %13 : vector<1x128xf32> to vector<96x128xf32>
    %179 = arith.addf %177, %178 : vector<96x128xf32>
    %cst_137 = arith.constant 0.000000e+00 : f32
    %180 = vector.broadcast %cst_137 : f32 to vector<96x128xf32>
    %181 = arith.maximumf %179, %180 : vector<96x128xf32>
    %c0_138 = arith.constant 0 : index
    %c0_139 = arith.constant 0 : index
    %182 = vector.load %arg13[%c0_138, %c0_139] : memref<96x128xf32, #tpu.memory_space<vmem>>, vector<96x128xf32>
    tpu.vector_store %arg13[%c0_138, %c0_139], %181 {strides = array<i32>} : memref<96x128xf32, #tpu.memory_space<vmem>>, vector<96x128xf32>,
    %c0_140 = arith.constant 0 : index
    %c0_141 = arith.constant 0 : index
    %183 = vector.load %arg13[%c0_140, %c0_141] : memref<96x128xf32, #tpu.memory_space<vmem>>, vector<80x128xf32>
    %c1_142 = arith.constant 1 : index
    %c0_143 = arith.constant 0 : index
    %184 = vector.load %arg13[%c1_142, %c0_143] : memref<96x128xf32, #tpu.memory_space<vmem>>, vector<80x128xf32>
    %185 = arith.maximumf %183, %184 : vector<80x128xf32>
    %c12_144 = arith.constant 12 : index
    %c0_145 = arith.constant 0 : index
    %186 = vector.load %arg13[%c12_144, %c0_145] : memref<96x128xf32, #tpu.memory_space<vmem>>, vector<80x128xf32>
    %c13_146 = arith.constant 13 : index
    %c0_147 = arith.constant 0 : index
    %187 = vector.load %arg13[%c13_146, %c0_147] : memref<96x128xf32, #tpu.memory_space<vmem>>, vector<80x128xf32>
    %188 = arith.maximumf %186, %187 : vector<80x128xf32>
    %189 = arith.maximumf %185, %188 : vector<80x128xf32>
    %c0_148 = arith.constant 0 : index
    %c0_149 = arith.constant 0 : index
    %190 = vector.load %arg14[%c0_148, %c0_149] : memref<80x128xf32, #tpu.memory_space<vmem>>, vector<80x128xf32>
    tpu.vector_store %arg14[%c0_148, %c0_149], %189 {strides = array<i32>} : memref<80x128xf32, #tpu.memory_space<vmem>>, vector<80x128xf32>,
    %c0_150 = arith.constant 0 : index
    %c0_151 = arith.constant 0 : index
    %191 = vector.load %arg14[%c0_150, %c0_151] : memref<80x128xf32, #tpu.memory_space<vmem>>, vector<1x128xf32>
    %c2_152 = arith.constant 2 : index
    %c0_153 = arith.constant 0 : index
    %192 = vector.load %arg14[%c2_152, %c0_153] : memref<80x128xf32, #tpu.memory_space<vmem>>, vector<1x128xf32>
    %c4_154 = arith.constant 4 : index
    %c0_155 = arith.constant 0 : index
    %193 = vector.load %arg14[%c4_154, %c0_155] : memref<80x128xf32, #tpu.memory_space<vmem>>, vector<1x128xf32>
    %c6_156 = arith.constant 6 : index
    %c0_157 = arith.constant 0 : index
    %194 = vector.load %arg14[%c6_156, %c0_157] : memref<80x128xf32, #tpu.memory_space<vmem>>, vector<1x128xf32>
    %c24_158 = arith.constant 24 : index
    %c0_159 = arith.constant 0 : index
    %195 = vector.load %arg14[%c24_158, %c0_159] : memref<80x128xf32, #tpu.memory_space<vmem>>, vector<1x128xf32>
    %c26_160 = arith.constant 26 : index
    %c0_161 = arith.constant 0 : index
    %196 = vector.load %arg14[%c26_160, %c0_161] : memref<80x128xf32, #tpu.memory_space<vmem>>, vector<1x128xf32>
    %c28_162 = arith.constant 28 : index
    %c0_163 = arith.constant 0 : index
    %197 = vector.load %arg14[%c28_162, %c0_163] : memref<80x128xf32, #tpu.memory_space<vmem>>, vector<1x128xf32>
    %c30_164 = arith.constant 30 : index
    %c0_165 = arith.constant 0 : index
    %198 = vector.load %arg14[%c30_164, %c0_165] : memref<80x128xf32, #tpu.memory_space<vmem>>, vector<1x128xf32>
    %c48_166 = arith.constant 48 : index
    %c0_167 = arith.constant 0 : index
    %199 = vector.load %arg14[%c48_166, %c0_167] : memref<80x128xf32, #tpu.memory_space<vmem>>, vector<1x128xf32>
    %c50_168 = arith.constant 50 : index
    %c0_169 = arith.constant 0 : index
    %200 = vector.load %arg14[%c50_168, %c0_169] : memref<80x128xf32, #tpu.memory_space<vmem>>, vector<1x128xf32>
    %c52_170 = arith.constant 52 : index
    %c0_171 = arith.constant 0 : index
    %201 = vector.load %arg14[%c52_170, %c0_171] : memref<80x128xf32, #tpu.memory_space<vmem>>, vector<1x128xf32>
    %c54_172 = arith.constant 54 : index
    %c0_173 = arith.constant 0 : index
    %202 = vector.load %arg14[%c54_172, %c0_173] : memref<80x128xf32, #tpu.memory_space<vmem>>, vector<1x128xf32>
    %c72_174 = arith.constant 72 : index
    %c0_175 = arith.constant 0 : index
    %203 = vector.load %arg14[%c72_174, %c0_175] : memref<80x128xf32, #tpu.memory_space<vmem>>, vector<1x128xf32>
    %c74_176 = arith.constant 74 : index
    %c0_177 = arith.constant 0 : index
    %204 = vector.load %arg14[%c74_176, %c0_177] : memref<80x128xf32, #tpu.memory_space<vmem>>, vector<1x128xf32>
    %c76_178 = arith.constant 76 : index
    %c0_179 = arith.constant 0 : index
    %205 = vector.load %arg14[%c76_178, %c0_179] : memref<80x128xf32, #tpu.memory_space<vmem>>, vector<1x128xf32>
    %c78_180 = arith.constant 78 : index
    %c0_181 = arith.constant 0 : index
    %206 = vector.load %arg14[%c78_180, %c0_181] : memref<80x128xf32, #tpu.memory_space<vmem>>, vector<1x128xf32>
    %207 = tpu.concatenate %191, %192, %193, %194, %195, %196, %197, %198, %199, %200, %201, %202, %203, %204, %205, %206 in 1 : vector<1x128xf32>, vector<1x128xf32>, vector<1x128xf32>, vector<1x128xf32>, vector<1x128xf32>, vector<1x128xf32>, vector<1x128xf32>, vector<1x128xf32>, vector<1x128xf32>, vector<1x128xf32>, vector<1x128xf32>, vector<1x128xf32>, vector<1x128xf32>, vector<1x128xf32>, vector<1x128xf32>, vector<1x128xf32> -> vector<1x2048xf32>
    %208 = tpu.concatenate %110, %207 in 0 : vector<1x2048xf32>, vector<1x2048xf32> -> vector<2x2048xf32>
    %209 = arith.truncf %208 : vector<2x2048xf32> to vector<2x2048xbf16>
    %c0_182 = arith.constant 0 : index
    %c0_183 = arith.constant 0 : index
    %210 = vector.load %arg6[%c0_182, %c0_183] : memref<2048x256xbf16, #tpu.memory_space<vmem>>, vector<2048x256xbf16>
    %cst_184 = arith.constant dense<0.000000e+00> : vector<2x256xf32>
    %211 = tpu.matmul %209, %210, %cst_184 {dimension_numbers = #tpu.dot_dimension_numbers<[1], [0], [0], [1], [0, 0, 1, 1], [], []>} : vector<2x2048xbf16>, vector<2048x256xbf16>, vector<2x256xf32> -> vector<2x256xf32>
    %c0_185 = arith.constant 0 : index
    %c0_186 = arith.constant 0 : index
    %212 = vector.load %arg7[%c0_185, %c0_186] : memref<1x256xf32, #tpu.memory_space<vmem>>, vector<1x256xf32>
    %213 = vector.broadcast %212 : vector<1x256xf32> to vector<2x256xf32>
    %214 = arith.addf %211, %213 : vector<2x256xf32>
    %cst_187 = arith.constant 0.000000e+00 : f32
    %215 = vector.broadcast %cst_187 : f32 to vector<2x256xf32>
    %216 = arith.maximumf %214, %215 : vector<2x256xf32>
    %217 = arith.truncf %216 : vector<2x256xf32> to vector<2x256xbf16>
    %c0_188 = arith.constant 0 : index
    %c0_189 = arith.constant 0 : index
    %218 = vector.load %arg8[%c0_188, %c0_189] : memref<256x128xbf16, #tpu.memory_space<vmem>>, vector<256x128xbf16>
    %cst_190 = arith.constant dense<0.000000e+00> : vector<2x128xf32>
    %219 = tpu.matmul %217, %218, %cst_190 {dimension_numbers = #tpu.dot_dimension_numbers<[1], [0], [0], [1], [0, 0, 1, 1], [], []>} : vector<2x256xbf16>, vector<256x128xbf16>, vector<2x128xf32> -> vector<2x128xf32>
    %c0_191 = arith.constant 0 : index
    %c0_192 = arith.constant 0 : index
    %220 = vector.load %arg9[%c0_191, %c0_192] : memref<1x128xf32, #tpu.memory_space<vmem>>, vector<1x128xf32>
    %221 = vector.broadcast %220 : vector<1x128xf32> to vector<2x128xf32>
    %222 = arith.addf %219, %221 : vector<2x128xf32>
    %223 = tpu.iota {dimensions = array<i32: 1>} : vector<2x128xi32>
    %c10_i32 = arith.constant 10 : i32
    %224 = vector.broadcast %c10_i32 : i32 to vector<2x128xi32>
    %225 = arith.cmpi slt, %223, %224 : vector<2x128xi32>
    %cst_193 = arith.constant -1.000000e+30 : f32
    %226 = vector.broadcast %cst_193 : f32 to vector<2x128xf32>
    %227 = arith.select %225, %222, %226 : vector<2x128xi1>, vector<2x128xf32>
    %cst_194 = arith.constant dense<0xFF800000> : vector<2xf32>
    %228 = vector.multi_reduction <maximumf>, %227, %cst_194 [1] : vector<2x128xf32> to vector<2xf32>
    %229 = vector.shape_cast %228 : vector<2xf32> to vector<2x1xf32>
    %230 = vector.broadcast %229 : vector<2x1xf32> to vector<2x128xf32>
    %231 = arith.subf %227, %230 : vector<2x128xf32>
    %232 = math.exp %231 : vector<2x128xf32>
    %cst_195 = arith.constant dense<0.000000e+00> : vector<2xf32>
    %233 = vector.multi_reduction <add>, %232, %cst_195 [1] : vector<2x128xf32> to vector<2xf32>
    %234 = vector.shape_cast %233 : vector<2xf32> to vector<2x1xf32>
    %235 = math.log %234 : vector<2x1xf32>
    %236 = vector.broadcast %235 : vector<2x1xf32> to vector<2x128xf32>
    %237 = arith.subf %231, %236 : vector<2x128xf32>
    %c0_196 = arith.constant 0 : index
    %c0_197 = arith.constant 0 : index
    %238 = vector.load %arg10[%c0_196, %c0_197] : memref<2x128xf32, #tpu.memory_space<vmem>>, vector<2x128xf32>
    tpu.vector_store %arg10[%c0_196, %c0_197], %237 {strides = array<i32>} : memref<2x128xf32, #tpu.memory_space<vmem>>, vector<2x128xf32>,
    return
  }
  func.func @transform_0(%arg0: i32) -> (i32, i32) {
    %c0_i32 = arith.constant 0 : i32
    %c0_i32_0 = arith.constant 0 : i32
    return %arg0, %c0_i32 : i32, i32
  }
  func.func @transform_1(%arg0: i32) -> (i32, i32) {
    %c0_i32 = arith.constant 0 : i32
    %c0_i32_0 = arith.constant 0 : i32
    %c0_i32_1 = arith.constant 0 : i32
    return %c0_i32, %c0_i32_0 : i32, i32
  }
  func.func @transform_2(%arg0: i32) -> (i32, i32) {
    %c0_i32 = arith.constant 0 : i32
    %c0_i32_0 = arith.constant 0 : i32
    %c0_i32_1 = arith.constant 0 : i32
    return %c0_i32, %c0_i32_0 : i32, i32
  }
  func.func @transform_3(%arg0: i32) -> (i32, i32, i32) {
    %c0_i32 = arith.constant 0 : i32
    %c0_i32_0 = arith.constant 0 : i32
    %c0_i32_1 = arith.constant 0 : i32
    %c0_i32_2 = arith.constant 0 : i32
    return %c0_i32, %c0_i32_0, %c0_i32_1 : i32, i32, i32
  }
  func.func @transform_4(%arg0: i32) -> (i32, i32) {
    %c0_i32 = arith.constant 0 : i32
    %c0_i32_0 = arith.constant 0 : i32
    %c0_i32_1 = arith.constant 0 : i32
    return %c0_i32, %c0_i32_0 : i32, i32
  }
  func.func @transform_5(%arg0: i32) -> (i32, i32) {
    %c0_i32 = arith.constant 0 : i32
    %c0_i32_0 = arith.constant 0 : i32
    %c0_i32_1 = arith.constant 0 : i32
    return %c0_i32, %c0_i32_0 : i32, i32
  }
  func.func @transform_6(%arg0: i32) -> (i32, i32) {
    %c0_i32 = arith.constant 0 : i32
    %c0_i32_0 = arith.constant 0 : i32
    %c0_i32_1 = arith.constant 0 : i32
    return %c0_i32, %c0_i32_0 : i32, i32
  }
  func.func @transform_7(%arg0: i32) -> (i32, i32) {
    %c0_i32 = arith.constant 0 : i32
    %c0_i32_0 = arith.constant 0 : i32
    %c0_i32_1 = arith.constant 0 : i32
    return %c0_i32, %c0_i32_0 : i32, i32
  }
  func.func @transform_8(%arg0: i32) -> (i32, i32) {
    %c0_i32 = arith.constant 0 : i32
    %c0_i32_0 = arith.constant 0 : i32
    %c0_i32_1 = arith.constant 0 : i32
    return %c0_i32, %c0_i32_0 : i32, i32
  }
  func.func @transform_9(%arg0: i32) -> (i32, i32) {
    %c0_i32 = arith.constant 0 : i32
    %c0_i32_0 = arith.constant 0 : i32
    return %arg0, %c0_i32 : i32, i32
  }
}

</mosaic_0001>

<bundles_post_ra>
// kernel: tile.0
= control target key start
LH: loop header
LB: loop body
LE: loop exit
PB: predicated region body
PF: predicated region fallthrough
CT: control target
= control target key end

     0   :  { %vm404_vm0 = vcmask 1047556   ;;  %s787_s3 = smov 100   ;;  %vm406_vm1 = vcmask 203776   ;;  %s788_s4 = smov 50   ;;  %vm478_vm2 = vcmask 818776   ;;  %vm439_vm3 = vcmask 1023776   ;;  %s872_s0 = inlined_call_operand.vmem [shape: bf16[25,5,25], index: 0, kind: input, shape index: {}]   ;;  %s873_s1 = inlined_call_operand.vmem [shape: bf16[25,125], index: 1, kind: output, shape index: {}]  }
   0x1   :  { %v734_v0 = vld [vmem:[%s872_s0 + $0x38] sm:$0xff]   ;;  %v735_v1 = vld [vmem:[%s872_s0 + $0x30] sm:$0xff]   ;;  %v736_v2 = vld [vmem:[%s872_s0 + $0x28] sm:$0xff]   ;;  %s789_s5 = smov 25   ;;  %vm517_vm4 = vcmask 613776   ;;  %vm556_vm5 = vcmask 408776  }
   0x2   :  { %v690_v3 = vunpack.c.l.bf16 %v734_v0  ;;  %v691_v4 = vunpack.c.h.bf16 %v734_v0  ;;  %v694_v5 = vunpack.c.l.bf16 %v735_v1  ;;  %v695_v6 = vunpack.c.h.bf16 %v735_v1  ;;  %v737_v7 = vld [vmem:[%s872_s0 + $0x20] sm:$0xff]   ;;  %v738_v8 = vld [vmem:[%s872_s0 + $0x18] sm:$0xff]   ;;  %v739_v9 = vld [vmem:[%s872_s0 + $0x10] sm:$0xff]  }
   0x3   :  { %v698_v10 = vunpack.c.l.bf16 %v736_v2  ;;  %v699_v11 = vunpack.c.h.bf16 %v736_v2  ;;  %v702_v12 = vunpack.c.l.bf16 %v737_v7  ;;  %v703_v13 = vunpack.c.h.bf16 %v737_v7  ;;  %v740_v14 = vld [vmem:[%s872_s0 + $0x8] sm:$0xff]   ;;  %v717_v15 = vld [vmem:[%s872_s0] sm:$0xff]   ;;  %v730_v21 = vld [vmem:[%s872_s0 + $0x58] sm:$0xff]  }
   0x4   :  { %v645_v16 = vld [vmem:[%s872_s0 + $0x60] sm:$0xf]  ;;  %165 = vst [vmem:[#allocation1 + $0x78] sm:$0xff] %v691_v4  ;;  %181 = vst [vmem:[#allocation1 + $0x70] sm:$0xff] %v690_v3  ;;  %v706_v17 = vunpack.c.l.bf16 %v738_v8  ;;  %v707_v18 = vunpack.c.h.bf16 %v738_v8  ;;  %v710_v19 = vunpack.c.l.bf16 %v739_v9  ;;  %v711_v20 = vunpack.c.h.bf16 %v739_v9  ;;  %v731_v22 = vld [vmem:[%s872_s0 + $0x50] sm:$0xff]  }
   0x5   :  { %197 = vst [vmem:[#allocation1 + $0x68] sm:$0xff] %v695_v6  ;;  %213 = vst [vmem:[#allocation1 + $0x60] sm:$0xff] %v694_v5  ;;  %v732_v23 = vld [vmem:[%s872_s0 + $0x48] sm:$0xff]   ;;  %v714_v24 = vunpack.c.l.bf16 %v740_v14  ;;  %v715_v25 = vunpack.c.h.bf16 %v740_v14  ;;  %v718_v26 = vunpack.c.l.bf16 %v717_v15  ;;  %v719_v27 = vunpack.c.h.bf16 %v717_v15  ;;  %v733_v28 = vld [vmem:[%s872_s0 + $0x40] sm:$0xff]   ;;  %s786_s0 = smov 75  }
   0x6   :  { %229 = vst [vmem:[#allocation1 + $0x58] sm:$0xff] %v699_v11  ;;  %245 = vst [vmem:[#allocation1 + $0x50] sm:$0xff] %v698_v10  ;;  %v18_v29 = vunpack.c.l.bf16 %v645_v16  ;;  %v674_v30 = vunpack.c.l.bf16 %v730_v21  ;;  %v675_v31 = vunpack.c.h.bf16 %v730_v21  ;;  %v678_v32 = vunpack.c.l.bf16 %v731_v22 }
   0x7   :  { %261 = vst [vmem:[#allocation1 + $0x48] sm:$0xff] %v703_v13  ;;  %277 = vst [vmem:[#allocation1 + $0x40] sm:$0xff] %v702_v12  ;;  %v679_v33 = vunpack.c.h.bf16 %v731_v22  ;;  %v682_v34 = vunpack.c.l.bf16 %v732_v23  ;;  %v683_v35 = vunpack.c.h.bf16 %v732_v23  ;;  %v686_v36 = vunpack.c.l.bf16 %v733_v28 }
   0x8   :  { %293 = vst [vmem:[#allocation1 + $0x38] sm:$0xff] %v707_v18  ;;  %309 = vst [vmem:[#allocation1 + $0x30] sm:$0xff] %v706_v17  ;;  %v687_v37 = vunpack.c.h.bf16 %v733_v28 }
   0x9   :  { %325 = vst [vmem:[#allocation1 + $0x28] sm:$0xff] %v711_v20  ;;  %341 = vst [vmem:[#allocation1 + $0x20] sm:$0xff] %v710_v19 }
   0xa   :  { %357 = vst [vmem:[#allocation1 + $0x18] sm:$0xff] %v715_v25  ;;  %373 = vst [vmem:[#allocation1 + $0x10] sm:$0xff] %v714_v24 }
   0xb   :  { %388 = vst [vmem:[#allocation1 + $0x8] sm:$0xff] %v719_v27  ;;  %401 = vst [vmem:[#allocation1] sm:$0xff] %v718_v26 }
   0xc   :  { %21 = vst [vmem:[#allocation1 + $0xc0] sm:$0xff] %v18_v29  ;;  %37 = vst [vmem:[#allocation1 + $0xb8] sm:$0xff] %v675_v31  ;;  %v483_v38 = vld [vmem:[#allocation1 + $0x43] ss:$8 sm:$0xf0]  }
   0xd   :  { %53 = vst [vmem:[#allocation1 + $0xb0] sm:$0xff] %v674_v30  ;;  %85 = vst [vmem:[#allocation1 + $0xa0] sm:$0xff] %v678_v32  ;;  %v444_v39 = vld [vmem:[#allocation1 + $0x44] ss:$8 sm:$0xf0]  }
   0xe   :  { %69 = vst [vmem:[#allocation1 + $0xa8] sm:$0xff] %v679_v33  ;;  %101 = vst [vmem:[#allocation1 + $0x98] sm:$0xff] %v683_v35  ;;  %v481_v40 = vld [vmem:[#allocation1 + $0x43] ss:$8 sm:$0xf]  }
   0xf   :  { %117 = vst [vmem:[#allocation1 + $0x90] sm:$0xff] %v682_v34  ;;  %149 = vst [vmem:[#allocation1 + $0x80] sm:$0xff] %v686_v36  ;;  %v442_v41 = vld [vmem:[#allocation1 + $0x44] ss:$8 sm:$0xf]   ;;  %v485_v43 = vsel %vm404_vm0, %v483_v38, %v481_v40 }
  0x10   :  { %133 = vst [vmem:[#allocation1 + $0x88] sm:$0xff] %v687_v37  ;;  %v473_v42 = vld [vmem:[#allocation1 + $0x3] ss:$8 sm:$0xf0]   ;;  %v446_v45 = vsel %vm404_vm0, %v444_v39, %v442_v41 }
  0x11   :  { %v434_v44 = vld [vmem:[#allocation1 + $0x4] ss:$8 sm:$0xf0]   ;;  %v512_v3 = vld [vmem:[#allocation1 + $0x2] ss:$8 sm:$0xf0]  }
  0x12   :  { %v471_v46 = vld [vmem:[#allocation1 + $0x3] ss:$8 sm:$0xf]   ;;  %v432_v47 = vld [vmem:[#allocation1 + $0x4] ss:$8 sm:$0xf]  }
  0x13   :  { %v475_v48 = vsel %vm404_vm0, %v473_v42, %v471_v46  ;;  %v436_v49 = vsel %vm404_vm0, %v434_v44, %v432_v47  ;;  %v503_v50 = vld [vmem:[#allocation1 + $0xc3] sm:$0x1]   ;;  %v464_v51 = vld [vmem:[#allocation1 + $0xc4] sm:$0x1]   ;;  %v542_v58 = vld [vmem:[#allocation1 + $0xc2] sm:$0x1]  }
  0x14   :  { %v756_v52 = vpack.i.bf16 %v485_v43, %v475_v48  ;;  %v746_v53 = vpack.i.bf16 %v446_v45, %v436_v49  ;;  %v510_v2 = vld [vmem:[#allocation1 + $0x2] ss:$8 sm:$0xf]   ;;  %v581_v12 = vld [vmem:[#allocation1 + $0xc1] sm:$0x1]  }
  0x15   :  { %v494_v54 = vld [vmem:[#allocation1 + $0x83] ss:$8 sm:$0xf0]   ;;  %v455_v55 = vld [vmem:[#allocation1 + $0x84] ss:$8 sm:$0xf0]   ;;  %v514_v4 = vsel %vm404_vm0, %v512_v3, %v510_v2 }
  0x16   :  { %757 = vrot.lane.b32.xlu1 %v756_v52, %s786_s0  ;;  %747 = vrot.lane.b32.xlu0 %v746_v53, %s787_s3  ;;  %v533_v62 = vld [vmem:[#allocation1 + $0x82] ss:$8 sm:$0xf0]   ;;  %v572_v9 = vld [vmem:[#allocation1 + $0x81] ss:$8 sm:$0xf0]  }
  0x17   :  { %v492_v56 = vld [vmem:[#allocation1 + $0x83] ss:$8 sm:$0xf]   ;;  %v453_v57 = vld [vmem:[#allocation1 + $0x84] ss:$8 sm:$0xf]  }
  0x18   :  { %v496_v59 = vsel %vm404_vm0, %v494_v54, %v492_v56  ;;  %v457_v60 = vsel %vm404_vm0, %v455_v55, %v453_v57  ;;  %v531_v61 = vld [vmem:[#allocation1 + $0x82] ss:$8 sm:$0xf]   ;;  %v570_v8 = vld [vmem:[#allocation1 + $0x81] ss:$8 sm:$0xf]  }
  0x19   :  { %v761_v63 = vpack.i.bf16 %v503_v50, %v496_v59  ;;  %v751_v0 = vpack.i.bf16 %v464_v51, %v457_v60  ;;  %v535_v1 = vsel %vm404_vm0, %v533_v62, %v531_v61  ;;  %v520_v5 = vld [vmem:[#allocation1 + $0x42] ss:$8 sm:$0xf]   ;;  %v549_v13 = vld [vmem:[#allocation1 + $0x1] ss:$8 sm:$0xf]   ;;  %v574_v14 = vsel %vm404_vm0, %v572_v9, %v570_v8 }
  0x1a   :  { %v522_v6 = vld [vmem:[#allocation1 + $0x42] ss:$8 sm:$0xf0]   ;;  %v771_v10 = vpack.i.bf16 %v542_v58, %v535_v1  ;;  %v551_v15 = vld [vmem:[#allocation1 + $0x1] ss:$8 sm:$0xf0]   ;;  %v781_v23 = vpack.i.bf16 %v581_v12, %v574_v14 }
  0x1b   :  { %v524_v7 = vsel %vm404_vm0, %v522_v6, %v520_v5  ;;  %762 = vrot.lane.b32.xlu1 %v761_v63, %s786_s0  ;;  %752 = vrot.lane.b32.xlu0 %v751_v0, %s787_s3  ;;  %v559_v16 = vld [vmem:[#allocation1 + $0x41] ss:$8 sm:$0xf]   ;;  %v553_v17 = vsel %vm404_vm0, %v551_v15, %v549_v13  ;;  %v402_v19 = vld [vmem:[#allocation1] ss:$8 sm:$0xf]  }
  0x1c   :  { %v766_v11 = vpack.i.bf16 %v524_v7, %v514_v4  ;;  %v561_v18 = vld [vmem:[#allocation1 + $0x41] ss:$8 sm:$0xf0]   ;;  %v403_v21 = vld [vmem:[#allocation1] ss:$8 sm:$0xf0]  }
  0x1d   :  { %v563_v20 = vsel %vm404_vm0, %v561_v18, %v559_v16  ;;  %v409_v22 = vld [vmem:[#allocation1 + $0x40] ss:$8 sm:$0xf]   ;;  %v405_v25 = vsel %vm404_vm0, %v403_v21, %v402_v19 }
  0x1e   :  { %v776_v24 = vpack.i.bf16 %v563_v20, %v553_v17  ;;  %v411_v26 = vld [vmem:[#allocation1 + $0x40] ss:$8 sm:$0xf0]   ;;  %407 = vst.msk [vmem:[#allocation0] sm:$0xff] %vm406_vm1, %v405_v25  }
  0x1f   :  { %772 = vrot.lane.b32.xlu1 %v771_v10, %s788_s4  ;;  %767 = vrot.lane.b32.xlu0 %v766_v11, %s788_s4  ;;  %v418_v27 = vld [vmem:[#allocation1 + $0x80] ss:$8 sm:$0xf]   ;;  %v413_v28 = vsel %vm404_vm0, %v411_v26, %v409_v22 }
  0x20   :  { %v420_v29 = vld [vmem:[#allocation1 + $0x80] ss:$8 sm:$0xf0]   ;;  %416 = vst.msk [vmem:[#allocation0 + $0x8] sm:$0xff] %vm406_vm1, %v413_v28  }
  0x21   :  { %v427_v30 = vld [vmem:[#allocation1 + $0xc0] sm:$0x1]   ;;  %v422_v31 = vsel %vm404_vm0, %v420_v29, %v418_v27 }
  0x22   :  { %430 = vst.msk [vmem:[#allocation0 + $0x18] sm:$0x1] %vm406_vm1, %v427_v30   ;;  %425 = vst.msk [vmem:[#allocation0 + $0x10] sm:$0xff] %vm406_vm1, %v422_v31  }
  0x23   :  { %782 = vrot.lane.b32.xlu1 %v781_v23, %s789_s5  ;;  %777 = vrot.lane.b32.xlu0 %v776_v24, %s789_s5 }
  0x88   :  { %v758_v32 = vpop.permute.xlu1 %757  ;;  %v748_v33 = vpop.permute.xlu0 %747 }
  0x89   :  { %v760_v34 = vunpack.i.h.bf16 %v758_v32  ;;  %v759_v35 = vunpack.i.l.bf16 %v758_v32  ;;  %v750_v36 = vunpack.i.h.bf16 %v748_v33  ;;  %v749_v37 = vunpack.i.l.bf16 %v748_v33 }
  0x8b   :  { %440 = vst.msk [vmem:[#allocation0] sm:$0xff] %vm439_vm3, %v749_v37   ;;  %451 = vst.msk [vmem:[#allocation0 + $0x8] sm:$0xff] %vm439_vm3, %v750_v36  }
  0x8c   :  { %479 = vst.msk [vmem:[#allocation0] sm:$0xff] %vm478_vm2, %v759_v35   ;;  %490 = vst.msk [vmem:[#allocation0 + $0x8] sm:$0xff] %vm478_vm2, %v760_v34  }
  0x8d   :  { %v763_v38 = vpop.permute.xlu1 %762  ;;  %v753_v39 = vpop.permute.xlu0 %752 }
  0x8e   :  { %v765_v40 = vunpack.i.h.bf16 %v763_v38  ;;  %v764_v41 = vunpack.i.l.bf16 %v763_v38  ;;  %v755_v42 = vunpack.i.h.bf16 %v753_v39  ;;  %v754_v43 = vunpack.i.l.bf16 %v753_v39 }
  0x90   :  { %462 = vst.msk [vmem:[#allocation0 + $0x10] sm:$0xff] %vm439_vm3, %v754_v43   ;;  %469 = vst.msk [vmem:[#allocation0 + $0x18] sm:$0x1] %vm439_vm3, %v755_v42  }
  0x91   :  { %501 = vst.msk [vmem:[#allocation0 + $0x10] sm:$0xff] %vm478_vm2, %v764_v41   ;;  %508 = vst.msk [vmem:[#allocation0 + $0x18] sm:$0x1] %vm478_vm2, %v765_v40   ;;  %v773_v44 = vpop.permute.xlu1 %772  ;;  %v768_v45 = vpop.permute.xlu0 %767 }
  0x92   :  { %v775_v46 = vunpack.i.h.bf16 %v773_v44  ;;  %v774_v47 = vunpack.i.l.bf16 %v773_v44  ;;  %v770_v48 = vunpack.i.h.bf16 %v768_v45  ;;  %v769_v49 = vunpack.i.l.bf16 %v768_v45 }
  0x94   :  { %540 = vst.msk [vmem:[#allocation0 + $0x10] sm:$0xff] %vm517_vm4, %v774_v47   ;;  %547 = vst.msk [vmem:[#allocation0 + $0x18] sm:$0x1] %vm517_vm4, %v775_v46  }
  0x95   :  { %529 = vst.msk [vmem:[#allocation0 + $0x8] sm:$0xff] %vm517_vm4, %v770_v48   ;;  %518 = vst.msk [vmem:[#allocation0] sm:$0xff] %vm517_vm4, %v769_v49   ;;  %v783_v50 = vpop.permute.xlu1 %782  ;;  %v778_v51 = vpop.permute.xlu0 %777 }
  0x96   :  { %v785_v52 = vunpack.i.h.bf16 %v783_v50  ;;  %v784_v53 = vunpack.i.l.bf16 %v783_v50  ;;  %v780_v54 = vunpack.i.h.bf16 %v778_v51  ;;  %v779_v55 = vunpack.i.l.bf16 %v778_v51 }
  0x98   :  { %579 = vst.msk [vmem:[#allocation0 + $0x10] sm:$0xff] %vm556_vm5, %v784_v53   ;;  %586 = vst.msk [vmem:[#allocation0 + $0x18] sm:$0x1] %vm556_vm5, %v785_v52  }
  0x99   :  { %557 = vst.msk [vmem:[#allocation0] sm:$0xff] %vm556_vm5, %v779_v55   ;;  %568 = vst.msk [vmem:[#allocation0 + $0x8] sm:$0xff] %vm556_vm5, %v780_v54  }
  0x9f   :  { %v605_v56 = vld [vmem:[#allocation0 + $0x10] sm:$0xff]  ;;  %v613_v57 = vld [vmem:[#allocation0 + $0x18] sm:$0xff] }
  0xa0   :  { %v592_v58 = vld [vmem:[#allocation0] sm:$0xff]  ;;  %v728_v59 = vpack.c.bf16 %v613_v57, %v605_v56  ;;  %v598_v60 = vld [vmem:[#allocation0 + $0x8] sm:$0xff] }
  0xa1   :  { %v723_v61 = vpack.c.bf16 %v598_v60, %v592_v58 }
  0xa2   :  { %741 = vst [vmem:[%s873_s1 + $0x8] sm:$0xff] %v728_v59  }
  0xa3   :  { %724 = vst [vmem:[%s873_s1] sm:$0xff] %v723_v61  }

// kernel: tile.19
= control target key start
LH: loop header
LB: loop body
LE: loop exit
PB: predicated region body
PF: predicated region fallthrough
CT: control target
= control target key end

     0   :  { %s45_s10 = smov 100   ;;  %s46_s11 = smov 50   ;;  %vm3_vm0 = vcmask 203776   ;;  %vm9_vm1 = vcmask 1023776   ;;  %vm15_vm2 = vcmask 818776   ;;  %vm21_vm3 = vcmask 613776   ;;  %s77_s0 = inlined_call_operand.vmem [shape: f32[5,25], index: 0, kind: input, shape index: {}]   ;;  %s78_s1 = inlined_call_operand.vmem [shape: f32[125], index: 1, kind: output, shape index: {}]  }
   0x1   :  { %v37_v0 = vld [vmem:[%s77_s0 + $0x4] sm:$0x1]   ;;  %v39_v1 = vld [vmem:[%s77_s0 + $0x2] sm:$0x1]   ;;  %v38_v2 = vld [vmem:[%s77_s0 + $0x3] sm:$0x1]  }
   0x2   :  { %7 = vrot.lane.b32.xlu0 %v37_v0, %s45_s10  ;;  %19 = vrot.lane.b32.xlu1 %v39_v1, %s46_s11  ;;  %v40_v3 = vld [vmem:[%s77_s0 + $0x1] sm:$0x1]   ;;  %v2_v4 = vld [vmem:[%s77_s0] sm:$0x1]   ;;  %s47_s0 = smov 75   ;;  %s48_s18 = smov 25  }
   0x3   :  { %4 = vst.msk [vmem:[#allocation0] sm:$0x1] %vm3_vm0, %v2_v4   ;;  %vm27_vm4 = vcmask 408776  }
   0x6   :  { %13 = vrot.lane.b32.xlu0 %v38_v2, %s47_s0  ;;  %25 = vrot.lane.b32.xlu1 %v40_v3, %s48_s18 }
  0x74   :  { %v8_v5 = vpop.permute.xlu0 %7   ;;  %v20_v6 = vpop.permute.xlu1 %19  }
  0x75   :  { %10 = vst.msk [vmem:[#allocation0] sm:$0x1] %vm9_vm1, %v8_v5  }
  0x78   :  { %v14_v7 = vpop.permute.xlu0 %13   ;;  %v26_v8 = vpop.permute.xlu1 %25  }
  0x79   :  { %16 = vst.msk [vmem:[#allocation0] sm:$0x1] %vm15_vm2, %v14_v7  }
  0x7a   :  { %22 = vst.msk [vmem:[#allocation0] sm:$0x1] %vm21_vm3, %v20_v6  }
  0x7b   :  { %28 = vst.msk [vmem:[#allocation0] sm:$0x1] %vm27_vm4, %v26_v8  }
  0x82   :  { %v33_v9 = vld [vmem:[#allocation0] sm:$0x1] }
  0x83   :  { %36 = vst [vmem:[%s78_s1] sm:$0x1] %v33_v9 }

// kernel: tile.18
= control target key start
LH: loop header
LB: loop body
LE: loop exit
PB: predicated region body
PF: predicated region fallthrough
CT: control target
= control target key end

     0   :  { %s22_s0 = inlined_call_operand.vmem [shape: f32[25], index: 0, kind: input, shape index: {}]   ;;  %s23_s1 = inlined_call_operand.vmem [shape: f32[5,25], index: 1, kind: output, shape index: {}]  }
   0x1   :  { %v4_v0 = vld [vmem:[%s22_s0] ss:$0 sm:$0xff] }
   0x2   :  { %5 = vst [vmem:[%s23_s1] sm:$0xff] %v4_v0 }

// kernel: net_forward.1
= control target key start
LH: loop header
LB: loop body
LE: loop exit
PB: predicated region body
PF: predicated region fallthrough
CT: control target
= control target key end

     0   :  { %v8490_v1 = vmov 0.0   ;;  %vm8491_vm0 = vmmov 0   ;;  %vm128_vm1 = vcmask 261120   ;;  %s11516_s0 = inlined_call_operand.vmem [shape: bf16[1152,32], index: 0, kind: input, shape index: {}]   ;;  %s11517_s1 = inlined_call_operand.vmem [shape: bf16[32,128], index: 1, kind: input, shape index: {}]   ;;  %s11518_s2 = inlined_call_operand.vmem [shape: f32[1,128], index: 2, kind: input, shape index: {}]   ;;  %s11519_s3 = inlined_call_operand.vmem [shape: bf16[5,128,128], index: 3, kind: input, shape index: {}]   ;;  %s11520_s4 = inlined_call_operand.vmem [shape: f32[1,128], index: 4, kind: input, shape index: {}]   ;;  %s11521_s5 = inlined_call_operand.vmem [shape: bf16[2048,256], index: 5, kind: input, shape index: {}]   ;;  %s11522_s6 = inlined_call_operand.vmem [shape: f32[1,256], index: 6, kind: input, shape index: {}]   ;;  %s11523_s7 = inlined_call_operand.vmem [shape: bf16[256,128], index: 7, kind: input, shape index: {}]   ;;  %s11524_s8 = inlined_call_operand.vmem [shape: f32[1,128], index: 8, kind: input, shape index: {}]   ;;  %s11525_s9 = inlined_call_operand.hbm [shape: f32[2,128], index: 9, kind: output, shape index: {}]  }
   0x1   :  { %v7902_v0 = vld [vmem:[%s11517_s1 + $0x8] sm:$0xff]   ;;  %7295 = vmatprep.subr.bf16.mxu0 %v8490_v1  ;;  %34 = vst [vmem:[#allocation2 + $0x120] sm:$0xff] %v8490_v1  ;;  %7895 = vmatprep.subr.bf16.mxu1 %v8490_v1  ;;  %v7903_v2 = vld [vmem:[%s11517_s1] sm:$0xff]   ;;  %v7905_v4 = vld [vmem:[%s11516_s0 + $0x38] sm:$0xff]  }
   0x2   :  { %7296 = vmatpush3.bf16.msra.mxu0 %v7902_v0  ;;  %7897 = vmatpush3.bf16.msra.mxu1 %v7902_v0  ;;  %v7904_v3 = vld [vmem:[%s11516_s0] sm:$0xff]   ;;  %v7906_v5 = vld [vmem:[%s11516_s0 + $0x8] sm:$0xff]   ;;  %v7908_v7 = vld [vmem:[%s11516_s0 + $0x10] sm:$0xff]  }
   0x3   :  { %7297 = vmatprep.subr.bf16.mxu0 %v8490_v1  ;;  %7896 = vmatprep.subr.bf16.mxu1 %v8490_v1  ;;  %v7907_v6 = vld [vmem:[%s11516_s0 + $0x40] sm:$0xff]   ;;  %v7909_v8 = vld [vmem:[%s11516_s0 + $0x90] sm:$0xff]   ;;  %v7910_v9 = vld [vmem:[%s11516_s0 + $0x18] sm:$0xff]  }
   0x4   :  { %7299 = vmatprep.mubr.msk.bf16.mxu0 %vm8491_vm0, %v8490_v1  ;;  %7327 = vmatprep.mubr.msk.bf16.mxu1 %vm8491_vm0, %v8490_v1  ;;  %v7911_v10 = vld [vmem:[%s11516_s0 + $0x98] sm:$0xff]   ;;  %v7912_v11 = vld [vmem:[%s11516_s0 + $0x20] sm:$0xff]   ;;  %v7914_v13 = vld [vmem:[%s11516_s0 + $0x28] sm:$0xff]  }
   0x5   :  { %v7913_v12 = vld [vmem:[%s11516_s0 + $0xa0] sm:$0xff]   ;;  %v7915_v14 = vld [vmem:[%s11516_s0 + $0xa8] sm:$0xff]   ;;  %v7916_v15 = vld [vmem:[%s11516_s0 + $0x30] sm:$0xff]  }
   0x6   :  { %7298 = vmatpush3.bf16.msra.mxu0 %v7903_v2  ;;  %7898 = vmatpush3.bf16.msra.mxu1 %v7903_v2  ;;  %v7917_v16 = vld [vmem:[%s11516_s0 + $0xb0] sm:$0xff]   ;;  %v7918_v17 = vld [vmem:[%s11516_s0 + $0xb8] sm:$0xff]   ;;  %v7919_v18 = vld [vmem:[%s11516_s0 + $0x120] sm:$0xff]  }
   0x7   :  { %7335 = vmatprep.subr.bf16.mxu1 %v8490_v1  ;;  %7375 = vmatprep.subr.bf16.mxu0 %v8490_v1  ;;  %v7920_v19 = vld [vmem:[%s11516_s0 + $0xc0] sm:$0xff]   ;;  %v7921_v20 = vld [vmem:[%s11516_s0 + $0x128] sm:$0xff]   ;;  %v7923_v22 = vld [vmem:[%s11516_s0 + $0x130] sm:$0xff]  }
   0x8   :  { %v7922_v21 = vld [vmem:[%s11516_s0 + $0xc8] sm:$0xff]   ;;  %v7924_v23 = vld [vmem:[%s11516_s0 + $0xd0] sm:$0xff]   ;;  %v7925_v24 = vld [vmem:[%s11516_s0 + $0x138] sm:$0xff]  }
   0x9   :  { %7300 = vmatmul.mubr.msk.bf16.vlgmr.msra.gmra.mxu0 %vm128_vm1, %v7904_v3  ;;  %7328 = vmatmul.mubr.msk.bf16.vlgmr.msra.gmra.mxu1 %vm128_vm1, %v7905_v4  ;;  %v7926_v25 = vld [vmem:[%s11516_s0 + $0x140] sm:$0xff]   ;;  %v7927_v26 = vld [vmem:[%s11516_s0 + $0x1b0] sm:$0xff]   ;;  %v7928_v27 = vld [vmem:[%s11516_s0 + $0x148] sm:$0xff]  }
   0xa   :  { %7336 = vmatpush3.bf16.msra.mxu1 %v7902_v0  ;;  %7303 = vmatprep.mubr.msk.bf16.mxu0 %vm8491_vm0, %v8490_v1  ;;  %v7929_v28 = vld [vmem:[%s11516_s0 + $0x1b8] sm:$0xff]   ;;  %v7930_v29 = vld [vmem:[%s11516_s0 + $0x150] sm:$0xff]   ;;  %v7931_v30 = vld [vmem:[%s11516_s0 + $0x1c0] sm:$0xff]  }
   0xb   :  { %7331 = vmatprep.mubr.msk.bf16.mxu1 %vm8491_vm0, %v8490_v1  ;;  %7337 = vmatprep.subr.bf16.mxu1 %v8490_v1  ;;  %v7932_v31 = vld [vmem:[%s11516_s0 + $0x158] sm:$0xff]   ;;  %v7933_v32 = vld [vmem:[%s11516_s0 + $0x1c8] sm:$0xff]   ;;  %v7934_v33 = vld [vmem:[%s11516_s0 + $0x160] sm:$0xff]  }
   0xc   :  { %7376 = vmatpush3.bf16.msra.mxu0 %v7902_v0  ;;  %v7935_v34 = vld [vmem:[%s11516_s0 + $0x1d0] sm:$0xff]   ;;  %v7936_v35 = vld [vmem:[%s11516_s0 + $0x1d8] sm:$0xff]   ;;  %v7937_v36 = vld [vmem:[%s11516_s0 + $0x1e0] sm:$0xff]  }
   0xd   :  { %7377 = vmatprep.subr.bf16.mxu0 %v8490_v1  ;;  %v8460_v37 = vld [vmem:[#allocation2 + $0x120] sm:$0xff]  ;;  %v7938_v38 = vld [vmem:[%s11516_s0 + $0x1e8] sm:$0xff]   ;;  %v7940_v39 = vld [vmem:[%s11519_s3 + $0x78] sm:$0xff]  }
   0xe   :  { %7338 = vmatpush3.bf16.msra.mxu1 %v7903_v2  ;;  %v7939_v40 = vld [vmem:[%s11516_s0 + $0x1f0] sm:$0xff]   ;;  %v7943_v42 = vld [vmem:[%s11519_s3 + $0x38] sm:$0xff]   ;;  %v7946_v44 = vld [vmem:[%s11519_s3 + $0x28] sm:$0xff]  }
   0xf   :  { %7415 = vmatprep.subr.bf16.mxu1 %v8490_v1  ;;  %v7941_v41 = vld [vmem:[%s11519_s3 + $0x70] sm:$0xff]   ;;  %v7948_v45 = vld [vmem:[%s11519_s3 + $0x20] sm:$0xff]   ;;  %v7949_v46 = vld [vmem:[%s11519_s3 + $0x18] sm:$0xff]  }
  0x10   :  { %7378 = vmatpush3.bf16.msra.mxu0 %v7903_v2  ;;  %v7945_v43 = vld [vmem:[%s11519_s3 + $0x30] sm:$0xff]   ;;  %v7942_v47 = vld [vmem:[%s11519_s3 + $0x68] sm:$0xff]   ;;  %v7944_v50 = vld [vmem:[%s11519_s3 + $0x60] sm:$0xff]  }
  0x11   :  { %7304 = vmatmul.mubr.msk.bf16.gmra.mxu0 %vm128_vm1, %v7906_v5  ;;  %7332 = vmatmul.mubr.msk.bf16.gmra.mxu1 %vm128_vm1, %v7907_v6  ;;  %v7950_v48 = vld [vmem:[%s11519_s3 + $0x10] sm:$0xff]   ;;  %v7952_v49 = vld [vmem:[%s11519_s3 + $0x8] sm:$0xff]   ;;  %v7953_v51 = vld [vmem:[%s11519_s3] sm:$0xff]  }
  0x12   :  { %7307 = vmatprep.mubr.msk.bf16.mxu0 %vm8491_vm0, %v8490_v1  ;;  %7339 = vmatprep.mubr.msk.bf16.mxu1 %vm8491_vm0, %v8490_v1  ;;  %v7947_v52 = vld [vmem:[%s11519_s3 + $0x58] sm:$0xff]   ;;  %v7951_v55 = vld [vmem:[%s11519_s3 + $0x50] sm:$0xff]   ;;  %v7954_v60 = vld [vmem:[%s11519_s3 + $0x48] sm:$0xff]  }
  0x13   :  { %7455 = vmatprep.subr.bf16.mxu0 %v7940_v39  ;;  %v8826_v61 = vld [vmem:[%s11519_s3 + $0xf8] sm:$0xff]   ;;  %v8837_v5 = vld [vmem:[%s11518_s2] ss:$0 sm:$0xff] }
  0x19   :  { %7308 = vmatmul.mubr.msk.bf16.gmra.mxu0 %vm128_vm1, %v7908_v7  ;;  %7340 = vmatmul.mubr.msk.bf16.vlgmr.msra.gmra.mxu1 %vm128_vm1, %v7909_v8 }
  0x1a   :  { %7416 = vmatpush3.bf16.msra.mxu1 %v7902_v0  ;;  %7311 = vmatprep.mubr.msk.bf16.mxu0 %vm8491_vm0, %v8490_v1 }
  0x1b   :  { %7343 = vmatprep.mubr.msk.bf16.mxu1 %vm8491_vm0, %v8490_v1  ;;  %7417 = vmatprep.subr.bf16.mxu1 %v8490_v1 }
  0x1e   :  { %7418 = vmatpush3.bf16.msra.mxu1 %v7903_v2  ;;  %v7955_v2 = vld [vmem:[%s11519_s3 + $0x40] sm:$0xff]  }
  0x1f   :  { %7483 = vmatprep.subr.bf16.mxu1 %v7943_v42 }
  0x21   :  { %7312 = vmatmul.mubr.msk.bf16.gmra.mxu0 %vm128_vm1, %v7910_v9  ;;  %7344 = vmatmul.mubr.msk.bf16.gmra.mxu1 %vm128_vm1, %v7911_v10 }
  0x22   :  { %7315 = vmatprep.mubr.msk.bf16.mxu0 %vm8491_vm0, %v8490_v1  ;;  %7347 = vmatprep.mubr.msk.bf16.mxu1 %vm8491_vm0, %v8490_v1 }
  0x29   :  { %7316 = vmatmul.mubr.msk.bf16.gmra.mxu0 %vm128_vm1, %v7912_v11  ;;  %7348 = vmatmul.mubr.msk.bf16.gmra.mxu1 %vm128_vm1, %v7913_v12 }
  0x2a   :  { %7319 = vmatprep.mubr.msk.bf16.mxu0 %vm8491_vm0, %v8490_v1  ;;  %7351 = vmatprep.mubr.msk.bf16.mxu1 %vm8491_vm0, %v8490_v1 }
  0x31   :  { %7320 = vmatmul.mubr.msk.bf16.gmra.mxu0 %vm128_vm1, %v7914_v13  ;;  %7352 = vmatmul.mubr.msk.bf16.gmra.mxu1 %vm128_vm1, %v7915_v14 }
  0x32   :  { %7323 = vmatprep.mubr.msk.bf16.mxu0 %vm8491_vm0, %v8490_v1  ;;  %7355 = vmatprep.mubr.msk.bf16.mxu1 %vm8491_vm0, %v8490_v1 }
  0x39   :  { %7324 = vmatmul.mubr.msk.bf16.gmra.mxu0 %vm128_vm1, %v7916_v15  ;;  %7356 = vmatmul.mubr.msk.bf16.gmra.mxu1 %vm128_vm1, %v7917_v16 }
  0x3a   :  { %7359 = vmatprep.mubr.msk.bf16.mxu1 %vm8491_vm0, %v8490_v1  ;;  %7379 = vmatprep.mubr.msk.bf16.mxu0 %vm8491_vm0, %v8490_v1 }
  0x41   :  { %7360 = vmatmul.mubr.msk.bf16.gmra.mxu1 %vm128_vm1, %v7918_v17  ;;  %7380 = vmatmul.mubr.msk.bf16.vlgmr.msra.gmra.mxu0 %vm128_vm1, %v7919_v18 }
  0x42   :  { %7363 = vmatprep.mubr.msk.bf16.mxu1 %vm8491_vm0, %v8490_v1  ;;  %7383 = vmatprep.mubr.msk.bf16.mxu0 %vm8491_vm0, %v8490_v1 }
  0x43   :  { %7456 = vmatpush3.bf16.msra.mxu0 %v7940_v39 }
  0x44   :  { %7457 = vmatprep.subr.bf16.mxu0 %v7941_v41 }
  0x47   :  { %7458 = vmatpush3.bf16.msra.mxu0 %v7941_v41 }
  0x48   :  { %7459 = vmatprep.subr.bf16.mxu0 %v7942_v47 }
  0x49   :  { %7364 = vmatmul.mubr.msk.bf16.gmra.mxu1 %vm128_vm1, %v7920_v19  ;;  %7384 = vmatmul.mubr.msk.bf16.gmra.mxu0 %vm128_vm1, %v7921_v20 }
  0x4a   :  { %7367 = vmatprep.mubr.msk.bf16.mxu1 %vm8491_vm0, %v8490_v1  ;;  %7387 = vmatprep.mubr.msk.bf16.mxu0 %vm8491_vm0, %v8490_v1 }
  0x4b   :  { %7460 = vmatpush3.bf16.msra.mxu0 %v7942_v47 }
  0x4c   :  { %7461 = vmatprep.subr.bf16.mxu0 %v7944_v50 }
  0x4f   :  { %7462 = vmatpush3.bf16.msra.mxu0 %v7944_v50 }
  0x50   :  { %7463 = vmatprep.subr.bf16.mxu0 %v7947_v52 }
  0x51   :  { %7368 = vmatmul.mubr.msk.bf16.gmra.mxu1 %vm128_vm1, %v7922_v21  ;;  %7388 = vmatmul.mubr.msk.bf16.gmra.mxu0 %vm128_vm1, %v7923_v22 }
  0x52   :  { %7371 = vmatprep.mubr.msk.bf16.mxu1 %vm8491_vm0, %v8490_v1  ;;  %7391 = vmatprep.mubr.msk.bf16.mxu0 %vm8491_vm0, %v8490_v1 }
  0x53   :  { %7464 = vmatpush3.bf16.msra.mxu0 %v7947_v52 }
  0x54   :  { %7465 = vmatprep.subr.bf16.mxu0 %v7951_v55 }
  0x57   :  { %7466 = vmatpush3.bf16.msra.mxu0 %v7951_v55 }
  0x58   :  { %7467 = vmatprep.subr.bf16.mxu0 %v7954_v60 }
  0x59   :  { %7372 = vmatmul.mubr.msk.bf16.gmra.mxu1 %vm128_vm1, %v7924_v23  ;;  %7392 = vmatmul.mubr.msk.bf16.gmra.mxu0 %vm128_vm1, %v7925_v24 }
  0x5a   :  { %7395 = vmatprep.mubr.msk.bf16.mxu0 %vm8491_vm0, %v8490_v1  ;;  %7419 = vmatprep.mubr.msk.bf16.mxu1 %vm8491_vm0, %v8490_v1 }
  0x5b   :  { %7468 = vmatpush3.bf16.msra.mxu0 %v7954_v60 }
  0x5c   :  { %7469 = vmatprep.subr.bf16.mxu0 %v7955_v2 }
  0x5f   :  { %7470 = vmatpush3.bf16.msra.mxu0 %v7955_v2 }
  0x61   :  { %7396 = vmatmul.mubr.msk.bf16.gmra.mxu0 %vm128_vm1, %v7926_v25  ;;  %7420 = vmatmul.mubr.msk.bf16.vlgmr.msra.gmra.mxu1 %vm128_vm1, %v7927_v26 }
  0x62   :  { %7399 = vmatprep.mubr.msk.bf16.mxu0 %vm8491_vm0, %v8490_v1  ;;  %7423 = vmatprep.mubr.msk.bf16.mxu1 %vm8491_vm0, %v8490_v1 }
  0x63   :  { %7484 = vmatpush3.bf16.msra.mxu1 %v7943_v42 }
  0x64   :  { %7485 = vmatprep.subr.bf16.mxu1 %v7945_v43 }
  0x67   :  { %7486 = vmatpush3.bf16.msra.mxu1 %v7945_v43 }
  0x68   :  { %7487 = vmatprep.subr.bf16.mxu1 %v7946_v44 }
  0x69   :  { %7400 = vmatmul.mubr.msk.bf16.gmra.mxu0 %vm128_vm1, %v7928_v27  ;;  %7424 = vmatmul.mubr.msk.bf16.gmra.mxu1 %vm128_vm1, %v7929_v28 }
  0x6a   :  { %7403 = vmatprep.mubr.msk.bf16.mxu0 %vm8491_vm0, %v8490_v1  ;;  %7427 = vmatprep.mubr.msk.bf16.mxu1 %vm8491_vm0, %v8490_v1 }
  0x6b   :  { %7488 = vmatpush3.bf16.msra.mxu1 %v7946_v44 }
  0x6c   :  { %7489 = vmatprep.subr.bf16.mxu1 %v7948_v45 }
  0x6f   :  { %7490 = vmatpush3.bf16.msra.mxu1 %v7948_v45 }
  0x70   :  { %7491 = vmatprep.subr.bf16.mxu1 %v7949_v46 }
  0x71   :  { %7404 = vmatmul.mubr.msk.bf16.gmra.mxu0 %vm128_vm1, %v7930_v29  ;;  %7428 = vmatmul.mubr.msk.bf16.gmra.mxu1 %vm128_vm1, %v7931_v30 }
  0x72   :  { %7407 = vmatprep.mubr.msk.bf16.mxu0 %vm8491_vm0, %v8490_v1  ;;  %7431 = vmatprep.mubr.msk.bf16.mxu1 %vm8491_vm0, %v8490_v1 }
  0x73   :  { %7492 = vmatpush3.bf16.msra.mxu1 %v7949_v46 }
  0x74   :  { %7493 = vmatprep.subr.bf16.mxu1 %v7950_v48 }
  0x77   :  { %7494 = vmatpush3.bf16.msra.mxu1 %v7950_v48 }
  0x78   :  { %7495 = vmatprep.subr.bf16.mxu1 %v7952_v49 }
  0x79   :  { %7408 = vmatmul.mubr.msk.bf16.gmra.mxu0 %vm128_vm1, %v7932_v31  ;;  %7432 = vmatmul.mubr.msk.bf16.gmra.mxu1 %vm128_vm1, %v7933_v32 }
  0x7a   :  { %7411 = vmatprep.mubr.msk.bf16.mxu0 %vm8491_vm0, %v8490_v1  ;;  %7435 = vmatprep.mubr.msk.bf16.mxu1 %vm8491_vm0, %v8490_v1 }
  0x7b   :  { %7496 = vmatpush3.bf16.msra.mxu1 %v7952_v49 }
  0x7c   :  { %7497 = vmatprep.subr.bf16.mxu1 %v7953_v51 }
  0x7f   :  { %7498 = vmatpush3.bf16.msra.mxu1 %v7953_v51 }
  0x80   :  { %7539 = vmatprep.subr.bf16.mxu1 %v8826_v61 }
  0x81   :  { %7412 = vmatmul.mubr.msk.bf16.gmra.mxu0 %vm128_vm1, %v7934_v33  ;;  %7436 = vmatmul.mubr.msk.bf16.gmra.mxu1 %vm128_vm1, %v7935_v34 }
  0x82   :  { %7439 = vmatprep.mubr.msk.bf16.mxu1 %vm8491_vm0, %v8490_v1 }
  0x89   :  { %7440 = vmatmul.mubr.msk.bf16.gmra.mxu1 %vm128_vm1, %v7936_v35 }
  0x8a   :  { %7443 = vmatprep.mubr.msk.bf16.mxu1 %vm8491_vm0, %v8490_v1 }
  0x91   :  { %7444 = vmatmul.mubr.msk.bf16.gmra.mxu1 %vm128_vm1, %v7937_v36 }
  0x92   :  { %7447 = vmatprep.mubr.msk.bf16.mxu1 %vm8491_vm0, %v8460_v37 }
  0x99   :  { %7448 = vmatmul.mubr.msk.bf16.gmra.mxu1 %vm128_vm1, %v7938_v38 }
  0x9a   :  { %7451 = vmatprep.mubr.msk.bf16.mxu1 %vm8491_vm0, %v8460_v37 }
  0xa1   :  { %7452 = vmatmul.mubr.msk.bf16.gmra.mxu1 %vm128_vm1, %v7939_v40 }
  0xc9   :  { %v190_v53 = vpop.f32.mrf.mxu0  ;;  %v8813_v54 = vpop.f32.mrf.mxu1 }
  0xca   :  { %v191_v8 = vadd.f32 %v8837_v5, %v190_v53 }
  0xcb   :  { %v7301_v56 = vpop.f32.mrf.mxu0  ;;  %v7329_v57 = vpop.f32.mrf.mxu1 }
  0xcc   :  { %v261_v13 = vmax.f32 %v191_v8, 0.0 }
  0xcd   :  { %v193_v58 = vpop.f32.mrf.mxu0  ;;  %v8818_v59 = vpop.f32.mrf.mxu1 }
  0xce   :  { %v194_v14 = vadd.f32 %v8837_v5, %v193_v58 }
  0xcf   :  { %v7302_v62 = vpop.f32.mrf.mxu0  ;;  %v7330_v63 = vpop.f32.mrf.mxu1 }
  0xd1   :  { %v198_v0 = vpop.f32.mrf.mxu0  ;;  %v8829_v1 = vpop.f32.mrf.mxu1 }
  0xd3   :  { %v7305_v3 = vpop.f32.mrf.mxu0  ;;  %v7333_v4 = vpop.f32.mrf.mxu1 }
  0xd5   :  { %v201_v6 = vpop.f32.mrf.mxu0  ;;  %v8839_v7 = vpop.f32.mrf.mxu1 }
  0xd7   :  { %v7306_v9 = vpop.f32.mrf.mxu0  ;;  %v7334_v10 = vpop.f32.mrf.mxu1 }
  0xd9   :  { %v206_v11 = vpop.f32.mrf.mxu0  ;;  %v403_v12 = vpop.f32.mrf.mxu1 }
  0xda   :  { %v404_v15 = vadd.f32 %v8837_v5, %v403_v12 }
  0xdb   :  { %v7309_v16 = vpop.f32.mrf.mxu0  ;;  %v7341_v17 = vpop.f32.mrf.mxu1 }
  0xdc   :  { %14 = vsyncpa [#allocation7], 0  ;;  %v474_v18 = vmax.f32 %v404_v15, 0.0  ;;  %v8847_v21 = vld [vmem:[%s11519_s3 + $0xb8] sm:$0xff]   ;;  %v262_v22 = vmax.f32 %v194_v14, 0.0  ;;  %v199_v23 = vadd.f32 %v8837_v5, %v198_v0  ;;  %v202_v32 = vadd.f32 %v8837_v5, %v201_v6 }
  0xdd   :  { %v209_v19 = vpop.f32.mrf.mxu0  ;;  %v406_v20 = vpop.f32.mrf.mxu1  ;;  %7511 = vmatprep.subr.bf16.mxu0 %v8847_v21  ;;  %v207_v41 = vadd.f32 %v8837_v5, %v206_v11  ;;  %vm4298_vm6 = vcmask 1040384   ;;  %vm6388_vm8 = vcmask 1041408  }
  0xde   :  { %v8850_v24 = vmax.f32 %v261_v13, %v474_v18  ;;  %v407_v25 = vadd.f32 %v8837_v5, %v406_v20  ;;  %v263_v31 = vmax.f32 %v199_v23, 0.0  ;;  %v264_v40 = vmax.f32 %v202_v32, 0.0 }
  0xdf   :  { %v7310_v26 = vpop.f32.mrf.mxu0  ;;  %v7342_v27 = vpop.f32.mrf.mxu1  ;;  %v265_v49 = vmax.f32 %v207_v41, 0.0  ;;  %v210_v50 = vadd.f32 %v8837_v5, %v209_v19 }
  0xe0   :  { %v475_v28 = vmax.f32 %v407_v25, 0.0 }
  0xe1   :  { %v214_v29 = vpop.f32.mrf.mxu0  ;;  %v411_v30 = vpop.f32.mrf.mxu1  ;;  %v266_v60 = vmax.f32 %v210_v50, 0.0 }
  0xe2   :  { %v8855_v33 = vmax.f32 %v262_v22, %v475_v28  ;;  %v412_v34 = vadd.f32 %v8837_v5, %v411_v30  ;;  %v215_v62 = vadd.f32 %v8837_v5, %v214_v29 }
  0xe3   :  { %v7313_v35 = vpop.f32.mrf.mxu0  ;;  %v7345_v36 = vpop.f32.mrf.mxu1 }
  0xe4   :  { %v476_v37 = vmax.f32 %v412_v34, 0.0  ;;  %v267_v9 = vmax.f32 %v215_v62, 0.0 }
  0xe5   :  { %v217_v38 = vpop.f32.mrf.mxu0  ;;  %v414_v39 = vpop.f32.mrf.mxu1 }
  0xe6   :  { %v8859_v42 = vmax.f32 %v263_v31, %v476_v37  ;;  %v415_v43 = vadd.f32 %v8837_v5, %v414_v39  ;;  %v218_v10 = vadd.f32 %v8837_v5, %v217_v38 }
  0xe7   :  { %v7314_v44 = vpop.f32.mrf.mxu0  ;;  %v7346_v45 = vpop.f32.mrf.mxu1 }
  0xe8   :  { %v477_v46 = vmax.f32 %v415_v43, 0.0  ;;  %v268_v18 = vmax.f32 %v218_v10, 0.0 }
  0xe9   :  { %v222_v47 = vpop.f32.mrf.mxu0  ;;  %v419_v48 = vpop.f32.mrf.mxu1 }
  0xea   :  { %v8863_v51 = vmax.f32 %v264_v40, %v477_v46  ;;  %v420_v52 = vadd.f32 %v8837_v5, %v419_v48  ;;  %v223_v19 = vadd.f32 %v8837_v5, %v222_v47 }
  0xeb   :  { %v7317_v53 = vpop.f32.mrf.mxu0  ;;  %v7349_v55 = vpop.f32.mrf.mxu1 }
  0xec   :  { %v478_v56 = vmax.f32 %v420_v52, 0.0  ;;  %v269_v29 = vmax.f32 %v223_v19, 0.0 }
  0xed   :  { %v225_v57 = vpop.f32.mrf.mxu0  ;;  %v422_v58 = vpop.f32.mrf.mxu1 }
  0xee   :  { %v8867_v63 = vmax.f32 %v265_v49, %v478_v56  ;;  %v423_v0 = vadd.f32 %v8837_v5, %v422_v58  ;;  %v226_v30 = vadd.f32 %v8837_v5, %v225_v57 }
  0xef   :  { %v7318_v2 = vpop.f32.mrf.mxu0  ;;  %v7350_v3 = vpop.f32.mrf.mxu1 }
  0xf0   :  { %v479_v4 = vmax.f32 %v423_v0, 0.0  ;;  %v270_v39 = vmax.f32 %v226_v30, 0.0 }
  0xf1   :  { %v230_v6 = vpop.f32.mrf.mxu0  ;;  %v427_v8 = vpop.f32.mrf.mxu1 }
  0xf2   :  { %v8871_v11 = vmax.f32 %v266_v60, %v479_v4  ;;  %v428_v12 = vadd.f32 %v8837_v5, %v427_v8  ;;  %v231_v40 = vadd.f32 %v8837_v5, %v230_v6 }
  0xf3   :  { %v7321_v13 = vpop.f32.mrf.mxu0  ;;  %v7353_v14 = vpop.f32.mrf.mxu1 }
  0xf4   :  { %v480_v15 = vmax.f32 %v428_v12, 0.0  ;;  %v271_v49 = vmax.f32 %v231_v40, 0.0  ;;  %v250_v40 = vadd.f32 %v8837_v5, %v8818_v59 }
  0xf5   :  { %v233_v16 = vpop.f32.mrf.mxu0  ;;  %v430_v17 = vpop.f32.mrf.mxu1 }
  0xf6   :  { %v8875_v20 = vmax.f32 %v267_v9, %v480_v15  ;;  %v431_v22 = vadd.f32 %v8837_v5, %v430_v17  ;;  %v234_v50 = vadd.f32 %v8837_v5, %v233_v16 }
  0xf7   :  { %v7322_v23 = vpop.f32.mrf.mxu0  ;;  %v7354_v25 = vpop.f32.mrf.mxu1 }
  0xf8   :  { %v481_v26 = vmax.f32 %v431_v22, 0.0  ;;  %v272_v62 = vmax.f32 %v234_v50, 0.0  ;;  %v276_v50 = vmax.f32 %v250_v40, 0.0 }
  0xf9   :  { %v238_v27 = vpop.f32.mrf.mxu0  ;;  %v435_v28 = vpop.f32.mrf.mxu1 }
  0xfa   :  { %v8879_v31 = vmax.f32 %v268_v18, %v481_v26  ;;  %v436_v32 = vadd.f32 %v8837_v5, %v435_v28  ;;  %v239_v0 = vadd.f32 %v8837_v5, %v238_v27 }
  0xfb   :  { %v7325_v34 = vpop.f32.mrf.mxu0  ;;  %v7357_v35 = vpop.f32.mrf.mxu1 }
  0xfc   :  { %v482_v36 = vmax.f32 %v436_v32, 0.0  ;;  %v273_v12 = vmax.f32 %v239_v0, 0.0 }
  0xfd   :  { %v241_v37 = vpop.f32.mrf.mxu0  ;;  %v438_v38 = vpop.f32.mrf.mxu1 }
  0xfe   :  { %v8883_v41 = vmax.f32 %v269_v29, %v482_v36  ;;  %v439_v43 = vadd.f32 %v8837_v5, %v438_v38  ;;  %v242_v13 = vadd.f32 %v8837_v5, %v241_v37  ;;  %v247_v29 = vadd.f32 %v8837_v5, %v8813_v54 }
  0xff   :  { %v7326_v44 = vpop.f32.mrf.mxu0  ;;  %v7358_v45 = vpop.f32.mrf.mxu1 }
 0x100   :  { %v483_v46 = vmax.f32 %v439_v43, 0.0  ;;  %v274_v23 = vmax.f32 %v242_v13, 0.0 }
 0x101   :  { %v443_v47 = vpop.f32.mrf.mxu1  ;;  %v634_v48 = vpop.f32.mrf.mxu0 }
 0x102   :  { %v8887_v52 = vmax.f32 %v270_v39, %v483_v46  ;;  %v444_v53 = vadd.f32 %v8837_v5, %v443_v47  ;;  %v275_v39 = vmax.f32 %v247_v29, 0.0 }
 0x103   :  { %v7361_v55 = vpop.f32.mrf.mxu1  ;;  %v7381_v56 = vpop.f32.mrf.mxu0 }
 0x104   :  { %v484_v57 = vmax.f32 %v444_v53, 0.0  ;;  %v255_v53 = vadd.f32 %v8837_v5, %v8829_v1 }
 0x105   :  { %v446_v58 = vpop.f32.mrf.mxu1  ;;  %v637_v60 = vpop.f32.mrf.mxu0 }
 0x106   :  { %v8891_v2 = vmax.f32 %v271_v49, %v484_v57  ;;  %v447_v3 = vadd.f32 %v8837_v5, %v446_v58 }
 0x107   :  { %v7362_v4 = vpop.f32.mrf.mxu1  ;;  %v7382_v6 = vpop.f32.mrf.mxu0 }
 0x108   :  { %v485_v8 = vmax.f32 %v447_v3, 0.0  ;;  %v277_v3 = vmax.f32 %v255_v53, 0.0  ;;  %v258_v4 = vadd.f32 %v8837_v5, %v8839_v7  ;;  %v635_v6 = vadd.f32 %v8837_v5, %v634_v48 }
 0x109   :  { %v451_v9 = vpop.f32.mrf.mxu1  ;;  %v8894_v10 = vpop.f32.mrf.mxu0  ;;  %v35_v53 = vlaneseq }
 0x10a   :  { %v8897_v14 = vmax.f32 %v272_v62, %v485_v8  ;;  %v452_v15 = vadd.f32 %v8837_v5, %v451_v9 }
 0x10b   :  { %v7365_v16 = vpop.f32.mrf.mxu1  ;;  %v7385_v17 = vpop.f32.mrf.mxu0 }
 0x10c   :  { %v486_v18 = vmax.f32 %v452_v15, 0.0  ;;  %v278_v17 = vmax.f32 %v258_v4, 0.0 }
 0x10d   :  { %v454_v19 = vpop.f32.mrf.mxu1  ;;  %v8900_v22 = vpop.f32.mrf.mxu0 }
 0x10e   :  { %v8902_v25 = vmax.f32 %v273_v12, %v486_v18  ;;  %v455_v26 = vadd.f32 %v8837_v5, %v454_v19  ;;  %v705_v18 = vmax.f32 %v635_v6, 0.0  ;;  %v638_v19 = vadd.f32 %v8837_v5, %v637_v60 }
 0x10f   :  { %v7366_v27 = vpop.f32.mrf.mxu1  ;;  %v7386_v28 = vpop.f32.mrf.mxu0 }
 0x110   :  { %v487_v30 = vmax.f32 %v455_v26, 0.0 }
 0x111   :  { %v459_v32 = vpop.f32.mrf.mxu1  ;;  %v8907_v34 = vpop.f32.mrf.mxu0 }
 0x112   :  { %v8909_v35 = vmax.f32 %v274_v23, %v487_v30  ;;  %v460_v36 = vadd.f32 %v8837_v5, %v459_v32  ;;  %v723_v30 = vmax.f32 %v8850_v24, %v705_v18  ;;  %v706_v32 = vmax.f32 %v638_v19, 0.0 }
 0x113   :  { %v7369_v37 = vpop.f32.mrf.mxu1  ;;  %v7389_v38 = vpop.f32.mrf.mxu0  ;;  %v646_v24 = vadd.f32 %v8837_v5, %v8900_v22 }
 0x114   :  { %v488_v43 = vmax.f32 %v460_v36, 0.0  ;;  %v643_v36 = vadd.f32 %v8837_v5, %v8894_v10 }
 0x115   :  { %v462_v44 = vpop.f32.mrf.mxu1  ;;  %v8914_v45 = vpop.f32.mrf.mxu0 }
 0x116   :  { %v8916_v46 = vmax.f32 %v275_v39, %v488_v43  ;;  %v463_v54 = vadd.f32 %v8837_v5, %v462_v44  ;;  %v654_v18 = vadd.f32 %v8837_v5, %v8914_v45 }
 0x117   :  { %v7370_v47 = vpop.f32.mrf.mxu1  ;;  %v7390_v49 = vpop.f32.mrf.mxu0 }
 0x118   :  { %v489_v55 = vmax.f32 %v463_v54, 0.0  ;;  %v724_v54 = vmax.f32 %v8855_v33, %v706_v32  ;;  %v707_v47 = vmax.f32 %v643_v36, 0.0  ;;  %v708_v33 = vmax.f32 %v646_v24, 0.0 }
 0x119   :  { %v467_v56 = vpop.f32.mrf.mxu1  ;;  %v8921_v57 = vpop.f32.mrf.mxu0 }
 0x11a   :  { %v8923_v58 = vmax.f32 %v276_v50, %v489_v55  ;;  %v468_v59 = vadd.f32 %v8837_v5, %v467_v56  ;;  %v659_v45 = vadd.f32 %v8837_v5, %v8921_v57 }
 0x11b   :  { %v7373_v62 = vpop.f32.mrf.mxu1  ;;  %v7393_v0 = vpop.f32.mrf.mxu0 }
 0x11c   :  { %v490_v8 = vmax.f32 %v468_v59, 0.0  ;;  %v725_v0 = vmax.f32 %v8859_v42, %v707_v47  ;;  %v726_v42 = vmax.f32 %v8863_v51, %v708_v33 }
 0x11d   :  { %v470_v9 = vpop.f32.mrf.mxu1  ;;  %v8929_v12 = vpop.f32.mrf.mxu0 }
 0x11e   :  { %v8931_v1 = vmax.f32 %v277_v3, %v490_v8  ;;  %v471_v13 = vadd.f32 %v8837_v5, %v470_v9  ;;  %v651_v3 = vadd.f32 %v8837_v5, %v8907_v34  ;;  %v8964_v8 = vand.u32 127, %v35_v53 }
 0x11f   :  { %v7374_v15 = vpop.f32.mrf.mxu1  ;;  %v7394_v16 = vpop.f32.mrf.mxu0 }
 0x120   :  { %v491_v23 = vmax.f32 %v471_v13, 0.0  ;;  %vm40_vm2 = vcmp.lt.s32.totalorder %v8964_v8, 100  ;;  %vm39_vm3 = vcmp.lt.s32.totalorder %v8964_v8, 75  ;;  %vm38_vm4 = vcmp.lt.s32.totalorder %v8964_v8, 50 }
 0x121   :  { %v8935_v26 = vpop.f32.mrf.mxu0  ;;  %v865_v7 = vpop.f32.mrf.mxu1  ;;  %vm37_vm5 = vcmp.lt.s32.totalorder %v8964_v8, 25  ;;  %vm6386_vm7 = vcmp.lt.s32.totalorder %v8964_v8, 10 }
 0x122   :  { %v8937_v27 = vmax.f32 %v278_v17, %v491_v23  ;;  %v866_v48 = vadd.f32 %v8837_v5, %v865_v7  ;;  %v709_v17 = vmax.f32 %v651_v3, 0.0 }
 0x123   :  { %v7397_v28 = vpop.f32.mrf.mxu0  ;;  %v7421_v29 = vpop.f32.mrf.mxu1 }
 0x124   :  { %v936_v37 = vmax.f32 %v866_v48, 0.0  ;;  %v727_v32 = vmax.f32 %v8867_v63, %v709_v17 }
 0x125   :  { %v8943_v38 = vpop.f32.mrf.mxu0  ;;  %v868_v60 = vpop.f32.mrf.mxu1 }
 0x126   :  { %v8945_v39 = vmax.f32 %v723_v30, %v936_v37  ;;  %v869_v40 = vadd.f32 %v8837_v5, %v868_v60  ;;  %v710_v60 = vmax.f32 %v654_v18, 0.0 }
 0x127   :  { %v7398_v43 = vpop.f32.mrf.mxu0  ;;  %v7422_v44 = vpop.f32.mrf.mxu1 }
 0x128   :  { %972 = vst [vmem:[#allocation2] sm:$0xff] %v8945_v39  ;;  %v937_v49 = vmax.f32 %v869_v40, 0.0  ;;  %v728_v3 = vmax.f32 %v8871_v11, %v710_v60 }
 0x129   :  { %v8952_v10 = vpop.f32.mrf.mxu0  ;;  %v873_v50 = vpop.f32.mrf.mxu1 }
 0x12a   :  { %v8954_v55 = vmax.f32 %v724_v54, %v937_v49  ;;  %v874_v56 = vadd.f32 %v8837_v5, %v873_v50 }
 0x12b   :  { %v7401_v59 = vpop.f32.mrf.mxu0  ;;  %v7425_v62 = vpop.f32.mrf.mxu1 }
 0x12c   :  { %973 = vst [vmem:[#allocation2 + $0x8] sm:$0xff] %v8954_v55  ;;  %v938_v22 = vmax.f32 %v874_v56, 0.0  ;;  %v711_v62 = vmax.f32 %v659_v45, 0.0 }
 0x12d   :  { %v8961_v4 = vpop.f32.mrf.mxu0  ;;  %v876_v6 = vpop.f32.mrf.mxu1 }
 0x12e   :  { %v8966_v9 = vmax.f32 %v725_v0, %v938_v22  ;;  %v877_v13 = vadd.f32 %v8837_v5, %v876_v6  ;;  %v662_v22 = vadd.f32 %v8837_v5, %v8929_v12 }
 0x12f   :  { %v7402_v15 = vpop.f32.mrf.mxu0  ;;  %v7426_v16 = vpop.f32.mrf.mxu1 }
 0x130   :  { %974 = vst [vmem:[#allocation2 + $0x10] sm:$0xff] %v8966_v9  ;;  %v939_v34 = vmax.f32 %v877_v13, 0.0  ;;  %v712_v45 = vmax.f32 %v662_v22, 0.0 }
 0x131   :  { %v8973_v19 = vpop.f32.mrf.mxu0  ;;  %v881_v23 = vpop.f32.mrf.mxu1 }
 0x132   :  { %v8976_v7 = vmax.f32 %v726_v42, %v939_v34  ;;  %v882_v48 = vadd.f32 %v8837_v5, %v881_v23 }
 0x133   :  { %v1026_v28 = vld [vmem:[#allocation2 + $0x2] sm:$0xff]  ;;  %v7405_v29 = vpop.f32.mrf.mxu0  ;;  %v7429_v30 = vpop.f32.mrf.mxu1 }
 0x134   :  { %v1044_v51 = vld [vmem:[#allocation2 + $0x3] sm:$0xff]  ;;  %975 = vst [vmem:[#allocation2 + $0x18] sm:$0xff] %v8976_v7  ;;  %v940_v37 = vmax.f32 %v882_v48, 0.0 }
 0x135   :  { %v1062_v36 = vld [vmem:[#allocation2 + $0x4] sm:$0xff]  ;;  %v8987_v43 = vpop.f32.mrf.mxu0  ;;  %v884_v44 = vpop.f32.mrf.mxu1 }
 0x136   :  { %v1080_v40 = vsel %vm40_vm2, %v1044_v51, %v1062_v36  ;;  %v1008_v54 = vld [vmem:[#allocation2 + $0x1] sm:$0xff]  ;;  %v8992_v57 = vmax.f32 %v727_v32, %v940_v37  ;;  %v885_v50 = vadd.f32 %v8837_v5, %v884_v44  ;;  %v667_v51 = vadd.f32 %v8837_v5, %v8935_v26 }
 0x137   :  { %v1098_v63 = vsel %vm39_vm3, %v1026_v28, %v1080_v40  ;;  %v1027_v24 = vld [vmem:[#allocation2 + $0xa] sm:$0xff]  ;;  %v7406_v56 = vpop.f32.mrf.mxu0  ;;  %v7430_v59 = vpop.f32.mrf.mxu1  ;;  %v729_v28 = vmax.f32 %v8875_v20, %v711_v62  ;;  %v730_v62 = vmax.f32 %v8879_v31, %v712_v45 }
 0x138   :  { %v1116_v47 = vsel %vm38_vm4, %v1008_v54, %v1098_v63  ;;  %v1045_v49 = vld [vmem:[#allocation2 + $0xb] sm:$0xff]  ;;  %976 = vst [vmem:[#allocation2 + $0x20] sm:$0xff] %v8992_v57  ;;  %v941_v13 = vmax.f32 %v885_v50, 0.0  ;;  %v713_v50 = vmax.f32 %v667_v51, 0.0 }
 0x139   :  { %v1063_v0 = vld [vmem:[#allocation2 + $0xc] sm:$0xff]  ;;  %v1134_v33 = vsel %vm37_vm5, %v8945_v39, %v1116_v47  ;;  %v9006_v15 = vpop.f32.mrf.mxu0  ;;  %v889_v16 = vpop.f32.mrf.mxu1 }
 0x13a   :  { %v1081_v6 = vsel %vm40_vm2, %v1045_v49, %v1063_v0  ;;  %v1009_v42 = vld [vmem:[#allocation2 + $0x9] sm:$0xff]  ;;  %v890_v34 = vadd.f32 %v8837_v5, %v889_v16  ;;  %v9013_v23 = vmax.f32 %v728_v3, %v941_v13  ;;  %v670_v0 = vadd.f32 %v8837_v5, %v8943_v38 }
 0x13b   :  { %v1099_v17 = vsel %vm39_vm3, %v1027_v24, %v1081_v6  ;;  %v1028_v11 = vld [vmem:[#allocation2 + $0x12] sm:$0xff]  ;;  %v7409_v12 = vpop.f32.mrf.mxu0  ;;  %v7433_v48 = vpop.f32.mrf.mxu1 }
 0x13c   :  { %v1117_v39 = vsel %vm38_vm4, %v1009_v42, %v1099_v17  ;;  %v1046_v18 = vld [vmem:[#allocation2 + $0x13] sm:$0xff]  ;;  %v942_v30 = vmax.f32 %v890_v34, 0.0  ;;  %977 = vst [vmem:[#allocation2 + $0x28] sm:$0xff] %v9013_v23  ;;  %v731_v34 = vmax.f32 %v8883_v41, %v713_v50 }
 0x13d   :  { %v1064_v29 = vld [vmem:[#allocation2 + $0x14] sm:$0xff]  ;;  %v1135_v32 = vsel %vm37_vm5, %v8954_v55, %v1117_v39  ;;  %v9024_v37 = vpop.f32.mrf.mxu0  ;;  %v892_v60 = vpop.f32.mrf.mxu1  ;;  %v675_v39 = vadd.f32 %v8837_v5, %v8952_v10 }
 0x13e   :  { %v1082_v36 = vsel %vm40_vm2, %v1046_v18, %v1064_v29  ;;  %1153 = vst [vmem:[#allocation3 + $0x8] sm:$0xff] %v1135_v32  ;;  %v1182_v20 = vpack.c.bf16 %v1135_v32, %v1134_v33  ;;  %v1010_v40 = vld [vmem:[#allocation2 + $0x11] sm:$0xff]  ;;  %v9028_v44 = vmax.f32 %v729_v28, %v942_v30  ;;  %v893_v47 = vadd.f32 %v8837_v5, %v892_v60 }
 0x13f   :  { %v1100_v26 = vsel %vm39_vm3, %v1028_v11, %v1082_v36  ;;  %v1029_v54 = vld [vmem:[#allocation2 + $0x1a] sm:$0xff]  ;;  %v7410_v24 = vpop.f32.mrf.mxu0  ;;  %v7434_v49 = vpop.f32.mrf.mxu1  ;;  %v714_v28 = vmax.f32 %v670_v0, 0.0  ;;  %v7957_v10 = vld [vmem:[%s11519_s3 + $0xf0] sm:$0xff]  }
 0x140   :  { %v1118_v55 = vsel %vm38_vm4, %v1010_v40, %v1100_v26  ;;  %v1047_v63 = vld [vmem:[#allocation2 + $0x1b] sm:$0xff]  ;;  %7499 = vmatprep.mubr.bf16.mxu1 %v1182_v20  ;;  %978 = vst [vmem:[#allocation2 + $0x30] sm:$0xff] %v9028_v44  ;;  %v943_v3 = vmax.f32 %v893_v47, 0.0 }
 0x141   :  { %v1065_v56 = vld [vmem:[#allocation2 + $0x1c] sm:$0xff]  ;;  %v1136_v59 = vsel %vm37_vm5, %v8966_v9, %v1118_v55  ;;  %v9042_v22 = vpop.f32.mrf.mxu0  ;;  %v897_v6 = vpop.f32.mrf.mxu1  ;;  %v732_v49 = vmax.f32 %v8887_v52, %v714_v28 }
 0x142   :  { %v1083_v33 = vsel %vm40_vm2, %v1047_v63, %v1065_v56  ;;  %1154 = vst [vmem:[#allocation3 + $0x10] sm:$0xff] %v1136_v59  ;;  %v1011_v13 = vld [vmem:[#allocation2 + $0x19] sm:$0xff]  ;;  %v898_v42 = vadd.f32 %v8837_v5, %v897_v6  ;;  %v9049_v9 = vmax.f32 %v730_v62, %v943_v3  ;;  %v678_v63 = vadd.f32 %v8837_v5, %v8961_v4  ;;  %v7959_v62 = vld [vmem:[%s11519_s3 + $0xe8] sm:$0xff]  }
 0x143   :  { %v1101_v16 = vsel %vm39_vm3, %v1029_v54, %v1083_v33  ;;  %v7413_v38 = vpop.f32.mrf.mxu0  ;;  %v7437_v17 = vpop.f32.mrf.mxu1  ;;  %v1030_v11 = vld [vmem:[#allocation2 + $0x22] sm:$0xff]  ;;  %v715_v54 = vmax.f32 %v675_v39, 0.0  ;;  %v683_v33 = vadd.f32 %v8837_v5, %v8973_v19 }
 0x144   :  { %v1119_v31 = vsel %vm38_vm4, %v1011_v13, %v1101_v16  ;;  %v1048_v18 = vld [vmem:[#allocation2 + $0x23] sm:$0xff]  ;;  %v944_v12 = vmax.f32 %v898_v42, 0.0  ;;  %979 = vst [vmem:[#allocation2 + $0x38] sm:$0xff] %v9049_v9  ;;  %v716_v42 = vmax.f32 %v678_v63, 0.0 }
 0x145   :  { %v9057_v48 = vsel %vm37_vm5, %v8976_v7, %v1119_v31  ;;  %v1066_v51 = vld [vmem:[#allocation2 + $0x24] sm:$0xff]  ;;  %v9060_v29 = vpop.f32.mrf.mxu0  ;;  %v900_v30 = vpop.f32.mrf.mxu1  ;;  %v733_v16 = vmax.f32 %v8891_v2, %v715_v54 }
 0x146   :  { %1155 = vst [vmem:[#allocation3 + $0x18] sm:$0xff] %v9057_v48  ;;  %v1183_v41 = vpack.c.bf16 %v9057_v48, %v1136_v59  ;;  %v1084_v32 = vsel %vm40_vm2, %v1048_v18, %v1066_v51  ;;  %v9069_v7 = vmax.f32 %v731_v34, %v944_v12  ;;  %v1012_v45 = vld [vmem:[#allocation2 + $0x21] sm:$0xff]  ;;  %v901_v40 = vadd.f32 %v8837_v5, %v900_v30 }
 0x147   :  { %v1102_v36 = vsel %vm39_vm3, %v1030_v11, %v1084_v32  ;;  %v1031_v60 = vld [vmem:[#allocation2 + $0x2a] sm:$0xff]  ;;  %v7438_v26 = vpop.f32.mrf.mxu1  ;;  %v7414_v55 = vpop.f32.mrf.mxu0  ;;  %v7961_v19 = vld [vmem:[%s11519_s3 + $0xe0] sm:$0xff]  }
 0x148   :  { %v1049_v20 = vld [vmem:[#allocation2 + $0x2b] sm:$0xff]  ;;  %7500 = vmatmul.mubr.bf16.vlgmr.msra.gmra.mxu1 %v1183_v41  ;;  %v1120_v47 = vsel %vm38_vm4, %v1012_v45, %v1102_v36  ;;  %980 = vst [vmem:[#allocation2 + $0x40] sm:$0xff] %v9069_v7  ;;  %v945_v59 = vmax.f32 %v901_v40, 0.0  ;;  %v717_v41 = vmax.f32 %v683_v33, 0.0  ;;  %v686_v40 = vadd.f32 %v8837_v5, %v8987_v43  ;;  %v7963_v43 = vld [vmem:[%s11519_s3 + $0xd8] sm:$0xff]  }
 0x149   :  { %v1067_v24 = vld [vmem:[#allocation2 + $0x2c] sm:$0xff]  ;;  %7540 = vmatpush3.bf16.msra.mxu1 %v8826_v61  ;;  %v9084_v50 = vsel %vm37_vm5, %v8992_v57, %v1120_v47  ;;  %v905_v4 = vpop.f32.mrf.mxu1  ;;  %v1204_v11 = vld [vmem:[#allocation3 + $0xc] sm:$0xff] }
 0x14a   :  { %v1085_v56 = vsel %vm40_vm2, %v1049_v20, %v1067_v24  ;;  %7541 = vmatprep.subr.bf16.mxu1 %v7957_v10  ;;  %1156 = vst [vmem:[#allocation3 + $0x20] sm:$0xff] %v9084_v50  ;;  %v1013_v61 = vld [vmem:[#allocation2 + $0x29] sm:$0xff]  ;;  %v906_v0 = vadd.f32 %v8837_v5, %v905_v4  ;;  %v1509_v57 = vpack.c.bf16 %v9084_v50, %v9057_v48 }
 0x14b   :  { %v1103_v52 = vsel %vm39_vm3, %v1031_v60, %v1085_v56  ;;  %v9101_v6 = vmax.f32 %v732_v49, %v945_v59  ;;  %v7441_v13 = vpop.f32.mrf.mxu1  ;;  %v1032_v38 = vld [vmem:[#allocation2 + $0x32] sm:$0xff]  ;;  %v734_v20 = vmax.f32 %v8897_v14, %v716_v42 }
 0x14c   :  { %v1121_v3 = vsel %vm38_vm4, %v1013_v61, %v1103_v52  ;;  %v1050_v17 = vld [vmem:[#allocation2 + $0x33] sm:$0xff]  ;;  %v946_v34 = vmax.f32 %v906_v0, 0.0  ;;  %v718_v52 = vmax.f32 %v686_v40, 0.0  ;;  %v691_v0 = vadd.f32 %v8837_v5, %v9006_v15  ;;  %v7967_v40 = vld [vmem:[%s11519_s3 + $0xc8] sm:$0xff]  }
 0x14d   :  { %v9107_v31 = vsel %vm37_vm5, %v9013_v23, %v1121_v3  ;;  %7542 = vmatpush3.bf16.msra.mxu1 %v7957_v10  ;;  %v1068_v39 = vld [vmem:[#allocation2 + $0x34] sm:$0xff]  ;;  %981 = vst [vmem:[#allocation2 + $0x48] sm:$0xff] %v9101_v6  ;;  %v908_v2 = vpop.f32.mrf.mxu1  ;;  %v1205_v18 = vld [vmem:[#allocation3 + $0x14] sm:$0xff] }
 0x14e   :  { %1157 = vst [vmem:[#allocation3 + $0x28] sm:$0xff] %v9107_v31  ;;  %v1184_v23 = vpack.c.bf16 %v9107_v31, %v9084_v50  ;;  %7543 = vmatprep.subr.bf16.mxu1 %v7959_v62  ;;  %v1086_v12 = vsel %vm40_vm2, %v1050_v17, %v1068_v39  ;;  %v9118_v28 = vmax.f32 %v733_v16, %v946_v34  ;;  %v1014_v10 = vld [vmem:[#allocation2 + $0x31] sm:$0xff] }
 0x14f   :  { %v909_v51 = vadd.f32 %v8837_v5, %v908_v2  ;;  %v1216_v30 = vpack.c.bf16 %v1205_v18, %v1204_v11  ;;  %v1104_v32 = vsel %vm39_vm3, %v1032_v38, %v1086_v12  ;;  %v1033_v45 = vld [vmem:[#allocation2 + $0x3a] sm:$0xff]  ;;  %v7442_v60 = vpop.f32.mrf.mxu1  ;;  %v7960_v11 = vld [vmem:[%s11519_s3 + $0xb0] sm:$0xff]   ;;  %v694_v18 = vadd.f32 %v8837_v5, %v9024_v37 }
 0x150   :  { %v1051_v36 = vld [vmem:[#allocation2 + $0x3b] sm:$0xff]  ;;  %7503 = vmatprep.mubr.bf16.mxu1 %v1184_v23  ;;  %v1122_v26 = vsel %vm38_vm4, %v1014_v10, %v1104_v32  ;;  %982 = vst [vmem:[#allocation2 + $0x50] sm:$0xff] %v9118_v28  ;;  %v736_v10 = vmax.f32 %v8909_v35, %v718_v52  ;;  %v719_v32 = vmax.f32 %v691_v0, 0.0  ;;  %v7973_v48 = vld [vmem:[%s11519_s3 + $0x130] sm:$0xff]  }
 0x151   :  { %v1069_v55 = vld [vmem:[#allocation2 + $0x3c] sm:$0xff]  ;;  %v947_v54 = vmax.f32 %v909_v51, 0.0  ;;  %7471 = vmatprep.mubr.bf16.mxu0 %v1216_v30  ;;  %7544 = vmatpush3.bf16.msra.mxu1 %v7959_v62  ;;  %v913_v47 = vpop.f32.mrf.mxu1  ;;  %v9134_v14 = vsel %vm37_vm5, %v9028_v44, %v1122_v26  ;;  %v735_v44 = vmax.f32 %v8902_v25, %v717_v41  ;;  %v7965_v25 = vld [vmem:[%s11519_s3 + $0xd0] sm:$0xff]   ;;  %v1206_v17 = vld [vmem:[#allocation3 + $0x1c] sm:$0xff] }
 0x152   :  { %v1087_v63 = vsel %vm40_vm2, %v1051_v36, %v1069_v55  ;;  %7545 = vmatprep.subr.bf16.mxu1 %v7961_v19  ;;  %v1015_v24 = vld [vmem:[#allocation2 + $0x39] sm:$0xff]  ;;  %v914_v59 = vadd.f32 %v8837_v5, %v913_v47  ;;  %1158 = vst [vmem:[#allocation3 + $0x30] sm:$0xff] %v9134_v14  ;;  %v1510_v4 = vpack.c.bf16 %v9134_v14, %v9107_v31 }
 0x153   :  { %v1105_v49 = vsel %vm39_vm3, %v1033_v45, %v1087_v63  ;;  %v9141_v56 = vmax.f32 %v734_v20, %v947_v54  ;;  %v7445_v61 = vpop.f32.mrf.mxu1  ;;  %v7975_v31 = vld [vmem:[%s11519_s3 + $0x120] sm:$0xff]  }
 0x154   :  { %v1123_v62 = vsel %vm38_vm4, %v1015_v24, %v1105_v49  ;;  %v1034_v33 = vld [vmem:[#allocation2 + $0x42] sm:$0xff]  ;;  %v948_v13 = vmax.f32 %v914_v59, 0.0 }
 0x155   :  { %v1052_v3 = vld [vmem:[#allocation2 + $0x43] sm:$0xff]  ;;  %983 = vst [vmem:[#allocation2 + $0x58] sm:$0xff] %v9141_v56  ;;  %v9156_v16 = vsel %vm37_vm5, %v9049_v9, %v1123_v62  ;;  %7546 = vmatpush3.bf16.msra.mxu1 %v7961_v19  ;;  %v916_v38 = vpop.f32.mrf.mxu1  ;;  %v9161_v34 = vld [vmem:[#allocation3 + $0x24] sm:$0xff]  ;;  %v699_v62 = vadd.f32 %v8837_v5, %v9042_v22 }
 0x156   :  { %v1070_v42 = vld [vmem:[#allocation2 + $0x44] sm:$0xff]  ;;  %1159 = vst [vmem:[#allocation3 + $0x38] sm:$0xff] %v9156_v16  ;;  %v9166_v15 = vpack.c.bf16 %v9156_v16, %v9134_v14  ;;  %7547 = vmatprep.subr.bf16.mxu1 %v7963_v43  ;;  %v9170_v19 = vmax.f32 %v735_v44, %v948_v13  ;;  %v917_v39 = vadd.f32 %v8837_v5, %v916_v38 }
 0x157   :  { %v1088_v9 = vsel %vm40_vm2, %v1052_v3, %v1070_v42  ;;  %v1217_v2 = vpack.c.bf16 %v9161_v34, %v1206_v17  ;;  %v1016_v23 = vld [vmem:[#allocation2 + $0x41] sm:$0xff]  ;;  %v1035_v51 = vld [vmem:[#allocation2 + $0x4a] sm:$0xff]  ;;  %v7446_v41 = vpop.f32.mrf.mxu1  ;;  %v737_v44 = vmax.f32 %v8916_v46, %v719_v32 }
 0x158   :  { %v1106_v12 = vsel %vm39_vm3, %v1034_v33, %v1088_v9  ;;  %v1053_v30 = vld [vmem:[#allocation2 + $0x4b] sm:$0xff]  ;;  %7504 = vmatmul.mubr.bf16.gmra.mxu1 %v9166_v15  ;;  %984 = vst [vmem:[#allocation2 + $0x60] sm:$0xff] %v9170_v19  ;;  %v949_v60 = vmax.f32 %v917_v39, 0.0  ;;  %v7964_v39 = vld [vmem:[%s11519_s3 + $0xa0] sm:$0xff]  }
 0x159   :  { %v1124_v45 = vsel %vm38_vm4, %v1016_v23, %v1106_v12  ;;  %v1071_v36 = vld [vmem:[#allocation2 + $0x4c] sm:$0xff]  ;;  %7472 = vmatmul.mubr.bf16.vlgmr.msra.gmra.mxu0 %v1217_v2  ;;  %7548 = vmatpush3.bf16.msra.mxu1 %v7963_v43  ;;  %v921_v20 = vpop.f32.mrf.mxu1  ;;  %v9214_v0 = vld [vmem:[#allocation3 + $0x2c] sm:$0xff] }
 0x15a   :  { %v1089_v37 = vsel %vm40_vm2, %v1053_v30, %v1071_v36  ;;  %7512 = vmatpush3.bf16.msra.mxu0 %v8847_v21  ;;  %v9192_v35 = vsel %vm37_vm5, %v9069_v7, %v1124_v45  ;;  %7549 = vmatprep.subr.bf16.mxu1 %v7965_v25  ;;  %v1017_v26 = vld [vmem:[#allocation2 + $0x49] sm:$0xff]  ;;  %v9199_v54 = vmax.f32 %v736_v10, %v949_v60  ;;  %v720_v7 = vmax.f32 %v694_v18, 0.0 }
 0x15b   :  { %v1107_v55 = vsel %vm39_vm3, %v1035_v51, %v1089_v37  ;;  %v922_v63 = vadd.f32 %v8837_v5, %v921_v20  ;;  %7513 = vmatprep.subr.bf16.mxu0 %v7960_v11  ;;  %v7962_v21 = vld [vmem:[%s11519_s3 + $0xa8] sm:$0xff]   ;;  %1160 = vst [vmem:[#allocation3 + $0x40] sm:$0xff] %v9192_v35  ;;  %v7449_v49 = vpop.f32.mrf.mxu1  ;;  %v1511_v59 = vpack.c.bf16 %v9192_v35, %v9156_v16  ;;  %v721_v51 = vmax.f32 %v699_v62, 0.0  ;;  %v7966_v20 = vld [vmem:[%s11519_s3 + $0x98] sm:$0xff]   ;;  %v7978_v16 = vld [vmem:[%s11519_s3 + $0x110] sm:$0xff]  }
 0x15c   :  { %v1125_v47 = vsel %vm38_vm4, %v1017_v26, %v1107_v55  ;;  %v1036_v43 = vld [vmem:[#allocation2 + $0x52] sm:$0xff]  ;;  %985 = vst [vmem:[#allocation2 + $0x68] sm:$0xff] %v9199_v54  ;;  %v738_v2 = vmax.f32 %v8923_v58, %v720_v7  ;;  %v702_v30 = vadd.f32 %v8837_v5, %v9060_v29  ;;  %v7977_v14 = vld [vmem:[%s11516_s0 + $0x48] sm:$0xff]  }
 0x15d   :  { %v1054_v24 = vld [vmem:[#allocation2 + $0x53] sm:$0xff]  ;;  %v950_v52 = vmax.f32 %v922_v63, 0.0  ;;  %v9216_v33 = vld [vmem:[#allocation3 + $0x34] sm:$0xff]  ;;  %v9221_v3 = vsel %vm37_vm5, %v9101_v6, %v1125_v47  ;;  %7550 = vmatpush3.bf16.msra.mxu1 %v7965_v25  ;;  %v924_v13 = vpop.f32.mrf.mxu1 }
 0x15e   :  { %v1072_v61 = vld [vmem:[#allocation2 + $0x54] sm:$0xff]  ;;  %v1218_v22 = vpack.c.bf16 %v9216_v33, %v9214_v0  ;;  %7514 = vmatpush3.bf16.msra.mxu0 %v7960_v11  ;;  %1161 = vst [vmem:[#allocation3 + $0x48] sm:$0xff] %v9221_v3  ;;  %v9230_v42 = vpack.c.bf16 %v9221_v3, %v9192_v35  ;;  %7551 = vmatprep.subr.bf16.mxu1 %v7967_v40  ;;  %v7969_v6 = vld [vmem:[%s11519_s3 + $0xc0] sm:$0xff]   ;;  %v722_v7 = vmax.f32 %v702_v30, 0.0 }
 0x15f   :  { %v1090_v46 = vsel %vm40_vm2, %v1054_v24, %v1072_v61  ;;  %v1018_v25 = vld [vmem:[#allocation2 + $0x51] sm:$0xff]  ;;  %v9237_v17 = vmax.f32 %v737_v44, %v950_v52  ;;  %v925_v9 = vadd.f32 %v8837_v5, %v924_v13  ;;  %7515 = vmatprep.subr.bf16.mxu0 %v7962_v21  ;;  %v1037_v18 = vld [vmem:[#allocation2 + $0x5a] sm:$0xff]  ;;  %v7450_v12 = vpop.f32.mrf.mxu1 }
 0x160   :  { %v1108_v38 = vsel %vm39_vm3, %v1036_v43, %v1090_v46  ;;  %v1055_v23 = vld [vmem:[#allocation2 + $0x5b] sm:$0xff]  ;;  %7475 = vmatprep.mubr.bf16.mxu0 %v1218_v22  ;;  %7507 = vmatprep.mubr.bf16.mxu1 %v9230_v42  ;;  %v7980_v35 = vld [vmem:[%s11516_s0 + $0x50] sm:$0xff]  }
 0x161   :  { %v1126_v11 = vsel %vm38_vm4, %v1018_v25, %v1108_v38  ;;  %v1073_v41 = vld [vmem:[#allocation2 + $0x5c] sm:$0xff]  ;;  %986 = vst [vmem:[#allocation2 + $0x70] sm:$0xff] %v9237_v17  ;;  %v951_v10 = vmax.f32 %v925_v9, 0.0  ;;  %7552 = vmatpush3.bf16.msra.mxu1 %v7967_v40  ;;  %v929_v45 = vpop.f32.mrf.mxu1  ;;  %v1685_v25 = vpack.c.bf16 %v9214_v0, %v9161_v34  ;;  %v7968_v38 = vld [vmem:[%s11519_s3 + $0x90] sm:$0xff]  }
 0x162   :  { %v9253_v58 = vsel %vm37_vm5, %v9118_v28, %v1126_v11  ;;  %v1091_v32 = vsel %vm40_vm2, %v1055_v23, %v1073_v41  ;;  %7516 = vmatpush3.bf16.msra.mxu0 %v7962_v21  ;;  %7553 = vmatprep.subr.bf16.mxu1 %v7969_v6  ;;  %v1019_v29 = vld [vmem:[#allocation2 + $0x59] sm:$0xff]  ;;  %v739_v21 = vmax.f32 %v8931_v1, %v721_v51  ;;  %v9277_v24 = vld [vmem:[#allocation3 + $0x3c] sm:$0xff] }
 0x163   :  { %1162 = vst [vmem:[#allocation3 + $0x50] sm:$0xff] %v9253_v58  ;;  %v1512_v5 = vpack.c.bf16 %v9253_v58, %v9221_v3  ;;  %v1109_v36 = vsel %vm39_vm3, %v1037_v18, %v1091_v32  ;;  %v9262_v60 = vmax.f32 %v738_v2, %v951_v10  ;;  %v9267_v28 = vld [vmem:[%s11518_s2] ss:$0 sm:$0xff]  ;;  %7517 = vmatprep.subr.bf16.mxu0 %v7964_v39  ;;  %v1038_v26 = vld [vmem:[#allocation2 + $0x62] sm:$0xff]  ;;  %v7453_v63 = vpop.f32.mrf.mxu1 }
 0x164   :  { %v930_v37 = vadd.f32 %v9267_v28, %v929_v45  ;;  %v1127_v40 = vsel %vm38_vm4, %v1019_v29, %v1109_v36  ;;  %v1056_v55 = vld [vmem:[#allocation2 + $0x63] sm:$0xff]  ;;  %v740_v18 = vmax.f32 %v8937_v27, %v722_v7 }
 0x165   :  { %v1074_v47 = vld [vmem:[#allocation2 + $0x64] sm:$0xff]  ;;  %987 = vst [vmem:[#allocation2 + $0x78] sm:$0xff] %v9262_v60  ;;  %v9279_v49 = vld [vmem:[#allocation3 + $0x44] sm:$0xff]  ;;  %v9284_v44 = vsel %vm37_vm5, %v9141_v56, %v1127_v40  ;;  %7554 = vmatpush3.bf16.msra.mxu1 %v7969_v6  ;;  %v932_v61 = vpop.f32.mrf.mxu1 }
 0x166   :  { %v952_v43 = vmax.f32 %v930_v37, 0.0  ;;  %v1092_v62 = vsel %vm40_vm2, %v1056_v55, %v1074_v47  ;;  %v1219_v1 = vpack.c.bf16 %v9279_v49, %v9277_v24  ;;  %7518 = vmatpush3.bf16.msra.mxu0 %v7964_v39  ;;  %1163 = vst [vmem:[#allocation3 + $0x58] sm:$0xff] %v9284_v44  ;;  %v9293_v52 = vpack.c.bf16 %v9284_v44, %v9253_v58  ;;  %v9295_v46 = vld [vmem:[#allocation2 + $0x120] sm:$0xff] }
 0x167   :  { %7595 = vmatprep.subr.bf16.mxu1 %v9295_v46  ;;  %v1020_v56 = vld [vmem:[#allocation2 + $0x61] sm:$0xff]  ;;  %v1110_v13 = vsel %vm39_vm3, %v1038_v26, %v1092_v62  ;;  %v933_v6 = vadd.f32 %v9267_v28, %v932_v61  ;;  %7519 = vmatprep.subr.bf16.mxu0 %v7966_v20  ;;  %v7454_v11 = vpop.f32.mrf.mxu1  ;;  %v1686_v55 = vpack.c.bf16 %v9277_v24, %v9216_v33 }
 0x168   :  { %v9300_v22 = vmax.f32 %v739_v21, %v952_v43  ;;  %v1128_v9 = vsel %vm38_vm4, %v1020_v56, %v1110_v13  ;;  %v1039_v39 = vld [vmem:[#allocation2 + $0x6a] sm:$0xff]  ;;  %7476 = vmatmul.mubr.bf16.gmra.mxu0 %v1219_v1  ;;  %7508 = vmatmul.mubr.bf16.gmra.mxu1 %v9293_v52  ;;  %v7971_v47 = vld [vmem:[%s11519_s3 + $0x80] sm:$0xff]  }
 0x169   :  { %v1057_v2 = vld [vmem:[#allocation2 + $0x6b] sm:$0xff]  ;;  %v953_v12 = vmax.f32 %v933_v6, 0.0  ;;  %7555 = vmatprep.mubr.bf16.mxu1 %v1685_v25  ;;  %v9316_v34 = vsel %vm37_vm5, %v9170_v19, %v1128_v9  ;;  %v7972_v25 = vld [vmem:[%s11519_s3 + $0x138] sm:$0xff]   ;;  %v7981_v3 = vld [vmem:[%s11519_s3 + $0x100] sm:$0xff]  }
 0x16a   :  { %v1075_v23 = vld [vmem:[#allocation2 + $0x6c] sm:$0xff]  ;;  %988 = vst [vmem:[#allocation2 + $0x80] sm:$0xff] %v9300_v22  ;;  %7520 = vmatpush3.bf16.msra.mxu0 %v7966_v20  ;;  %1164 = vst [vmem:[#allocation3 + $0x60] sm:$0xff] %v9316_v34  ;;  %v1513_v51 = vpack.c.bf16 %v9316_v34, %v9284_v44  ;;  %v1212_v29 = vld [vmem:[#allocation3 + $0x4c] sm:$0xff] }
 0x16b   :  { %v1093_v0 = vsel %vm40_vm2, %v1057_v2, %v1075_v23  ;;  %v1021_v27 = vld [vmem:[#allocation2 + $0x69] sm:$0xff]  ;;  %v9325_v41 = vmax.f32 %v740_v18, %v953_v12  ;;  %7521 = vmatprep.subr.bf16.mxu0 %v7968_v38  ;;  %v9385_v23 = vld [vmem:[%s11517_s1] sm:$0xff]   ;;  %v7985_v44 = vld [vmem:[%s11516_s0 + $0xd8] sm:$0xff]  }
 0x16c   :  { %v1111_v30 = vsel %vm39_vm3, %v1039_v39, %v1093_v0  ;;  %v7970_v19 = vld [vmem:[%s11519_s3 + $0x88] sm:$0xff]   ;;  %v1040_v32 = vld [vmem:[#allocation2 + $0x72] sm:$0xff]  ;;  %v7983_v58 = vld [vmem:[%s11516_s0 + $0x60] sm:$0xff]  }
 0x16d   :  { %v1129_v10 = vsel %vm38_vm4, %v1021_v27, %v1111_v30  ;;  %v1058_v45 = vld [vmem:[#allocation2 + $0x73] sm:$0xff]  ;;  %989 = vst [vmem:[#allocation2 + $0x88] sm:$0xff] %v9325_v41  ;;  %v1213_v37 = vld [vmem:[#allocation3 + $0x54] sm:$0xff] }
 0x16e   :  { %v1076_v36 = vld [vmem:[#allocation2 + $0x74] sm:$0xff]  ;;  %v9336_v20 = vsel %vm37_vm5, %v9199_v54, %v1129_v10  ;;  %v1220_v26 = vpack.c.bf16 %v1213_v37, %v1212_v29  ;;  %7522 = vmatpush3.bf16.msra.mxu0 %v7968_v38  ;;  %v1687_v54 = vpack.c.bf16 %v1212_v29, %v9279_v49  ;;  %v9361_v49 = vld [vmem:[%s11517_s1 + $0x8] sm:$0xff]  }
 0x16f   :  { %v1094_v40 = vsel %vm40_vm2, %v1058_v45, %v1076_v36  ;;  %1165 = vst [vmem:[#allocation3 + $0x68] sm:$0xff] %v9336_v20  ;;  %v1864_v63 = vpack.c.bf16 %v9336_v20, %v9316_v34  ;;  %v1022_v21 = vld [vmem:[#allocation2 + $0x71] sm:$0xff]  ;;  %7523 = vmatprep.subr.bf16.mxu0 %v7970_v19  ;;  %v7987_v34 = vld [vmem:[%s11516_s0 + $0xe0] sm:$0xff]  }
 0x170   :  { %v1112_v7 = vsel %vm39_vm3, %v1040_v32, %v1094_v40  ;;  %7479 = vmatprep.mubr.bf16.mxu0 %v1220_v26  ;;  %7556 = vmatmul.mubr.bf16.vlgmr.msra.gmra.mxu1 %v1686_v55 }
 0x171   :  { %v1130_v43 = vsel %vm38_vm4, %v1022_v21, %v1112_v7  ;;  %v1041_v62 = vld [vmem:[#allocation2 + $0x7a] sm:$0xff]  ;;  %7559 = vmatprep.mubr.bf16.mxu1 %v1687_v54  ;;  %7596 = vmatpush3.bf16.msra.mxu1 %v9361_v49  ;;  %v1214_v6 = vld [vmem:[#allocation3 + $0x5c] sm:$0xff] }
 0x172   :  { %v1059_v61 = vld [vmem:[#allocation2 + $0x7b] sm:$0xff]  ;;  %v9356_v24 = vsel %vm37_vm5, %v9237_v17, %v1130_v43  ;;  %7524 = vmatpush3.bf16.msra.mxu0 %v7970_v19  ;;  %7597 = vmatprep.subr.bf16.mxu1 %v9295_v46  ;;  %v1688_v30 = vpack.c.bf16 %v1214_v6, %v1213_v37  ;;  %v7991_v43 = vld [vmem:[%s11516_s0 + $0xf0] sm:$0xff]  }
 0x173   :  { %v1077_v33 = vld [vmem:[#allocation2 + $0x7c] sm:$0xff]  ;;  %1166 = vst [vmem:[#allocation3 + $0x70] sm:$0xff] %v9356_v24  ;;  %v1514_v56 = vpack.c.bf16 %v9356_v24, %v9336_v20  ;;  %7525 = vmatprep.subr.bf16.mxu0 %v7971_v47  ;;  %v7989_v20 = vld [vmem:[%s11516_s0 + $0xe8] sm:$0xff]  }
 0x174   :  { %v1095_v1 = vsel %vm40_vm2, %v1059_v61, %v1077_v33  ;;  %v1023_v17 = vld [vmem:[#allocation2 + $0x79] sm:$0xff]  ;;  %v1042_v9 = vld [vmem:[#allocation2 + $0x82] sm:$0xff]  ;;  %v1043_v39 = vld [vmem:[#allocation2 + $0x8a] sm:$0xff] }
 0x175   :  { %v1113_v13 = vsel %vm39_vm3, %v1041_v62, %v1095_v1  ;;  %v1060_v2 = vld [vmem:[#allocation2 + $0x83] sm:$0xff]  ;;  %v1061_v11 = vld [vmem:[#allocation2 + $0x8b] sm:$0xff]  ;;  %7598 = vmatpush3.bf16.msra.mxu1 %v9385_v23  ;;  %v7993_v61 = vld [vmem:[%s11516_s0 + $0xf8] sm:$0xff]  }
 0x176   :  { %v1131_v38 = vsel %vm38_vm4, %v1023_v17, %v1113_v13  ;;  %v1078_v12 = vld [vmem:[#allocation2 + $0x84] sm:$0xff]  ;;  %v1079_v0 = vld [vmem:[#allocation2 + $0x8c] sm:$0xff]  ;;  %7526 = vmatpush3.bf16.msra.mxu0 %v7971_v47  ;;  %7675 = vmatprep.subr.bf16.mxu1 %v9295_v46 }
 0x177   :  { %v9380_v18 = vsel %vm37_vm5, %v9262_v60, %v1131_v38  ;;  %v1215_v27 = vld [vmem:[#allocation3 + $0x64] sm:$0xff]  ;;  %v1096_v60 = vsel %vm40_vm2, %v1060_v2, %v1078_v12  ;;  %v1097_v10 = vsel %vm40_vm2, %v1061_v11, %v1079_v0  ;;  %7567 = vmatprep.subr.bf16.mxu0 %v7972_v25  ;;  %v1024_v45 = vld [vmem:[#allocation2 + $0x81] sm:$0xff]  ;;  %v8003_v38 = vld [vmem:[%s11516_s0 + $0x1f8] sm:$0xff]  }
 0x178   :  { %1167 = vst [vmem:[#allocation3 + $0x78] sm:$0xff] %v9380_v18  ;;  %v1865_v19 = vpack.c.bf16 %v9380_v18, %v9356_v24  ;;  %v1221_v32 = vpack.c.bf16 %v1215_v27, %v1214_v6  ;;  %v1025_v29 = vld [vmem:[#allocation2 + $0x89] sm:$0xff]  ;;  %v1114_v36 = vsel %vm39_vm3, %v1042_v9, %v1096_v60  ;;  %v1115_v37 = vsel %vm39_vm3, %v1043_v39, %v1097_v10  ;;  %v7995_v24 = vld [vmem:[%s11516_s0 + $0x100] sm:$0xff]   ;;  %v8001_v6 = vld [vmem:[%s11516_s0 + $0x118] sm:$0xff]  }
 0x179   :  { %7560 = vmatmul.mubr.bf16.gmra.mxu1 %v1688_v30  ;;  %v1132_v40 = vsel %vm38_vm4, %v1024_v45, %v1114_v36  ;;  %v1133_v26 = vsel %vm38_vm4, %v1025_v29, %v1115_v37  ;;  %v7994_v62 = vld [vmem:[%s11516_s0 + $0x168] sm:$0xff]   ;;  %v7996_v33 = vld [vmem:[%s11516_s0 + $0x170] sm:$0xff]   ;;  %v8006_v9 = vld [vmem:[%s11516_s0 + $0x198] sm:$0xff]  }
 0x17a   :  { %7480 = vmatmul.mubr.bf16.gmra.mxu0 %v1221_v32  ;;  %v1682_v55 = vld [vmem:[#allocation3 + $0x6c] sm:$0xff]  ;;  %v9410_v7 = vsel %vm37_vm5, %v9300_v22, %v1132_v40  ;;  %v9415_v54 = vsel %vm37_vm5, %v9325_v41, %v1133_v26  ;;  %v7974_v22 = vld [vmem:[%s11519_s3 + $0x128] sm:$0xff]   ;;  %v8005_v39 = vld [vmem:[%s11516_s0 + $0x200] sm:$0xff]  }
 0x17b   :  { %7527 = vmatprep.mubr.bf16.mxu0 %v1509_v57  ;;  %v1689_v21 = vpack.c.bf16 %v1682_v55, %v1215_v27  ;;  %1168 = vst [vmem:[#allocation3 + $0x80] sm:$0xff] %v9410_v7  ;;  %v1866_v47 = vpack.c.bf16 %v9415_v54, %v9410_v7  ;;  %v7997_v1 = vld [vmem:[%s11516_s0 + $0x108] sm:$0xff]   ;;  %v7999_v17 = vld [vmem:[%s11516_s0 + $0x110] sm:$0xff]   ;;  %v8008_v2 = vld [vmem:[%s11516_s0 + $0x1a0] sm:$0xff]  }
 0x17c   :  { %v8002_v13 = vld [vmem:[%s11516_s0 + $0x188] sm:$0xff]   ;;  %v8009_v27 = vld [vmem:[%s11516_s0 + $0x210] sm:$0xff]   ;;  %v8011_v10 = vld [vmem:[%s11516_s0 + $0x218] sm:$0xff]  }
 0x17d   :  { %7563 = vmatprep.mubr.bf16.mxu1 %v1689_v21  ;;  %v8007_v18 = vld [vmem:[%s11516_s0 + $0x208] sm:$0xff]   ;;  %v8012_v37 = vld [vmem:[%s11516_s0 + $0x220] sm:$0xff]  }
 0x17e   :  { %v8010_v12 = vld [vmem:[%s11516_s0 + $0x1a8] sm:$0xff]  }
 0x17f   :  { %v1683_v50 = vld [vmem:[#allocation3 + $0x74] sm:$0xff] }
 0x182   :  { %7528 = vmatmul.mubr.bf16.vlgmr.msra.gmra.mxu0 %v1510_v4  ;;  %v1684_v57 = vld [vmem:[#allocation3 + $0x7c] sm:$0xff]  ;;  %v7976_v4 = vld [vmem:[%s11519_s3 + $0x118] sm:$0xff]  }
 0x183   :  { %7568 = vmatpush3.bf16.msra.mxu0 %v7972_v25  ;;  %7531 = vmatprep.mubr.bf16.mxu0 %v1511_v59  ;;  %v1690_v41 = vpack.c.bf16 %v1684_v57, %v1683_v50  ;;  %v7979_v59 = vld [vmem:[%s11519_s3 + $0x108] sm:$0xff]   ;;  %v8004_v25 = vld [vmem:[%s11516_s0 + $0x190] sm:$0xff]  }
 0x184   :  { %7569 = vmatprep.subr.bf16.mxu0 %v7973_v48 }
 0x185   :  { %7564 = vmatmul.mubr.bf16.gmra.mxu1 %v1690_v41 }
 0x186   :  { %7599 = vmatprep.mubr.msk.bf16.mxu1 %vm8491_vm0, %v9295_v46 }
 0x187   :  { %7570 = vmatpush3.bf16.msra.mxu0 %v7973_v48 }
 0x188   :  { %7571 = vmatprep.subr.bf16.mxu0 %v7974_v22 }
 0x18a   :  { %7532 = vmatmul.mubr.bf16.gmra.mxu0 %v1512_v5  ;;  %v7986_v5 = vld [vmem:[%s11516_s0 + $0x70] sm:$0xff]  }
 0x18b   :  { %7572 = vmatpush3.bf16.msra.mxu0 %v7974_v22  ;;  %7535 = vmatprep.mubr.bf16.mxu0 %v1513_v51  ;;  %v7990_v51 = vld [vmem:[%s11516_s0 + $0x80] sm:$0xff]  }
 0x18c   :  { %7573 = vmatprep.subr.bf16.mxu0 %v7975_v31 }
 0x18d   :  { %7600 = vmatmul.mubr.msk.bf16.vlgmr.msra.gmra.mxu1 %vm128_vm1, %v7977_v14  ;;  %v8014_v14 = vld [vmem:[%s11516_s0 + $0x230] sm:$0xff]  }
 0x18e   :  { %7603 = vmatprep.mubr.msk.bf16.mxu1 %vm8491_vm0, %v9295_v46  ;;  %7676 = vmatpush3.bf16.msra.mxu1 %v9361_v49 }
 0x18f   :  { %7574 = vmatpush3.bf16.msra.mxu0 %v7975_v31  ;;  %7677 = vmatprep.subr.bf16.mxu1 %v9295_v46 }
 0x190   :  { %7575 = vmatprep.subr.bf16.mxu0 %v7976_v4 }
 0x192   :  { %7536 = vmatmul.mubr.bf16.gmra.mxu0 %v1514_v56  ;;  %7678 = vmatpush3.bf16.msra.mxu1 %v9385_v23  ;;  %v8000_v56 = vld [vmem:[%s11516_s0 + $0x180] sm:$0xff]  }
 0x193   :  { %7576 = vmatpush3.bf16.msra.mxu0 %v7976_v4  ;;  %7583 = vmatprep.mubr.bf16.mxu0 %v9166_v15  ;;  %v7982_v15 = vld [vmem:[%s11516_s0 + $0x58] sm:$0xff]  }
 0x194   :  { %7577 = vmatprep.subr.bf16.mxu0 %v7978_v16 }
 0x195   :  { %7604 = vmatmul.mubr.msk.bf16.gmra.mxu1 %vm128_vm1, %v7980_v35 }
 0x196   :  { %7607 = vmatprep.mubr.msk.bf16.mxu1 %vm8491_vm0, %v9295_v46 }
 0x197   :  { %7578 = vmatpush3.bf16.msra.mxu0 %v7978_v16 }
 0x198   :  { %7579 = vmatprep.subr.bf16.mxu0 %v7979_v59 }
 0x19b   :  { %7580 = vmatpush3.bf16.msra.mxu0 %v7979_v59 }
 0x19c   :  { %7581 = vmatprep.subr.bf16.mxu0 %v7981_v3 }
 0x19d   :  { %7608 = vmatmul.mubr.msk.bf16.gmra.mxu1 %vm128_vm1, %v7982_v15 }
 0x19e   :  { %7611 = vmatprep.mubr.msk.bf16.mxu1 %vm8491_vm0, %v9295_v46 }
 0x19f   :  { %7582 = vmatpush3.bf16.msra.mxu0 %v7981_v3  ;;  %v8016_v3 = vld [vmem:[%s11519_s3 + $0x78] sm:$0xff]  }
 0x1a0   :  { %7635 = vmatprep.subr.bf16.mxu0 %v9295_v46  ;;  %7755 = vmatprep.subr.bf16.mxu1 %v8016_v3 }
 0x1a2   :  { %7584 = vmatmul.mubr.bf16.vlgmr.msra.gmra.mxu0 %v9230_v42  ;;  %v7984_v42 = vld [vmem:[%s11516_s0 + $0x68] sm:$0xff]  }
 0x1a3   :  { %7587 = vmatprep.mubr.bf16.mxu0 %v9293_v52  ;;  %7636 = vmatpush3.bf16.msra.mxu0 %v9361_v49  ;;  %v7988_v52 = vld [vmem:[%s11516_s0 + $0x78] sm:$0xff]  }
 0x1a4   :  { %7637 = vmatprep.subr.bf16.mxu0 %v9295_v46 }
 0x1a5   :  { %7612 = vmatmul.mubr.msk.bf16.gmra.mxu1 %vm128_vm1, %v7983_v58 }
 0x1a6   :  { %7615 = vmatprep.mubr.msk.bf16.mxu1 %vm8491_vm0, %v9295_v46 }
 0x1a7   :  { %7638 = vmatpush3.bf16.msra.mxu0 %v9385_v23 }
 0x1a8   :  { %7715 = vmatprep.subr.bf16.mxu0 %v9295_v46 }
 0x1aa   :  { %7588 = vmatmul.mubr.bf16.gmra.mxu0 %v1864_v63  ;;  %v7992_v63 = vld [vmem:[%s11516_s0 + $0x88] sm:$0xff]  }
 0x1ab   :  { %7591 = vmatprep.mubr.bf16.mxu0 %v1865_v19 }
 0x1ad   :  { %7616 = vmatmul.mubr.msk.bf16.gmra.mxu1 %vm128_vm1, %v7984_v42 }
 0x1ae   :  { %7619 = vmatprep.mubr.msk.bf16.mxu1 %vm8491_vm0, %v9295_v46 }
 0x1b2   :  { %7592 = vmatmul.mubr.bf16.gmra.mxu0 %v1866_v47  ;;  %v8013_v47 = vld [vmem:[%s11516_s0 + $0x228] sm:$0xff]  }
 0x1b3   :  { %7639 = vmatprep.mubr.msk.bf16.mxu0 %vm8491_vm0, %v9295_v46 }
 0x1b5   :  { %7620 = vmatmul.mubr.msk.bf16.gmra.mxu1 %vm128_vm1, %v7986_v5  ;;  %v8015_v5 = vld [vmem:[%s11516_s0 + $0x238] sm:$0xff]  }
 0x1b6   :  { %7623 = vmatprep.mubr.msk.bf16.mxu1 %vm8491_vm0, %v9295_v46 }
 0x1ba   :  { %7640 = vmatmul.mubr.msk.bf16.vlgmr.msra.gmra.mxu0 %vm128_vm1, %v7985_v44 }
 0x1bb   :  { %7716 = vmatpush3.bf16.msra.mxu0 %v9361_v49  ;;  %7643 = vmatprep.mubr.msk.bf16.mxu0 %vm8491_vm0, %v9295_v46  ;;  %v7998_v49 = vld [vmem:[%s11516_s0 + $0x178] sm:$0xff]  }
 0x1bc   :  { %7717 = vmatprep.subr.bf16.mxu0 %v9295_v46 }
 0x1bd   :  { %7624 = vmatmul.mubr.msk.bf16.gmra.mxu1 %vm128_vm1, %v7988_v52 }
 0x1be   :  { %7627 = vmatprep.mubr.msk.bf16.mxu1 %vm8491_vm0, %v9295_v46 }
 0x1bf   :  { %7718 = vmatpush3.bf16.msra.mxu0 %v9385_v23 }
 0x1c2   :  { %7644 = vmatmul.mubr.msk.bf16.gmra.mxu0 %vm128_vm1, %v7987_v34  ;;  %v8017_v34 = vld [vmem:[%s11519_s3 + $0x70] sm:$0xff]  }
 0x1c3   :  { %7647 = vmatprep.mubr.msk.bf16.mxu0 %vm8491_vm0, %v9295_v46 }
 0x1c5   :  { %7628 = vmatmul.mubr.msk.bf16.gmra.mxu1 %vm128_vm1, %v7990_v51 }
 0x1c6   :  { %7631 = vmatprep.mubr.msk.bf16.mxu1 %vm8491_vm0, %v9295_v46 }
 0x1ca   :  { %7648 = vmatmul.mubr.msk.bf16.gmra.mxu0 %vm128_vm1, %v7989_v20 }
 0x1cb   :  { %7651 = vmatprep.mubr.msk.bf16.mxu0 %vm8491_vm0, %v9295_v46 }
 0x1cd   :  { %7632 = vmatmul.mubr.msk.bf16.gmra.mxu1 %vm128_vm1, %v7992_v63 }
 0x1ce   :  { %7679 = vmatprep.mubr.msk.bf16.mxu1 %vm8491_vm0, %v9295_v46 }
 0x1d2   :  { %7652 = vmatmul.mubr.msk.bf16.gmra.mxu0 %vm128_vm1, %v7991_v43 }
 0x1d3   :  { %7655 = vmatprep.mubr.msk.bf16.mxu0 %vm8491_vm0, %v9295_v46 }
 0x1d5   :  { %7680 = vmatmul.mubr.msk.bf16.vlgmr.msra.gmra.mxu1 %vm128_vm1, %v7994_v62  ;;  %v8019_v62 = vld [vmem:[%s11519_s3 + $0x38] sm:$0xff]  }
 0x1d6   :  { %7683 = vmatprep.mubr.msk.bf16.mxu1 %vm8491_vm0, %v9295_v46  ;;  %7756 = vmatpush3.bf16.msra.mxu1 %v8016_v3 }
 0x1d7   :  { %7757 = vmatprep.subr.bf16.mxu1 %v8017_v34  ;;  %7783 = vmatprep.subr.bf16.mxu0 %v8019_v62 }
 0x1da   :  { %7656 = vmatmul.mubr.msk.bf16.gmra.mxu0 %vm128_vm1, %v7993_v61  ;;  %7758 = vmatpush3.bf16.msra.mxu1 %v8017_v34 }
 0x1db   :  { %7659 = vmatprep.mubr.msk.bf16.mxu0 %vm8491_vm0, %v9295_v46 }
 0x1dd   :  { %7684 = vmatmul.mubr.msk.bf16.gmra.mxu1 %vm128_vm1, %v7996_v33 }
 0x1de   :  { %7687 = vmatprep.mubr.msk.bf16.mxu1 %vm8491_vm0, %v9295_v46 }
 0x1e2   :  { %7660 = vmatmul.mubr.msk.bf16.gmra.mxu0 %vm128_vm1, %v7995_v24 }
 0x1e3   :  { %7663 = vmatprep.mubr.msk.bf16.mxu0 %vm8491_vm0, %v9295_v46 }
 0x1e5   :  { %7688 = vmatmul.mubr.msk.bf16.gmra.mxu1 %vm128_vm1, %v7998_v49 }
 0x1e6   :  { %7691 = vmatprep.mubr.msk.bf16.mxu1 %vm8491_vm0, %v9295_v46 }
 0x1ea   :  { %7664 = vmatmul.mubr.msk.bf16.gmra.mxu0 %vm128_vm1, %v7997_v1  ;;  %v8021_v1 = vld [vmem:[%s11519_s3 + $0x30] sm:$0xff]  }
 0x1eb   :  { %7667 = vmatprep.mubr.msk.bf16.mxu0 %vm8491_vm0, %v9295_v46 }
 0x1ed   :  { %7692 = vmatmul.mubr.msk.bf16.gmra.mxu1 %vm128_vm1, %v8000_v56 }
 0x1ee   :  { %7695 = vmatprep.mubr.msk.bf16.mxu1 %vm8491_vm0, %v9295_v46 }
 0x1f2   :  { %7668 = vmatmul.mubr.msk.bf16.gmra.mxu0 %vm128_vm1, %v7999_v17 }
 0x1f3   :  { %7671 = vmatprep.mubr.msk.bf16.mxu0 %vm8491_vm0, %v9295_v46 }
 0x1f5   :  { %7696 = vmatmul.mubr.msk.bf16.gmra.mxu1 %vm128_vm1, %v8002_v13 }
 0x1f6   :  { %7699 = vmatprep.mubr.msk.bf16.mxu1 %vm8491_vm0, %v9295_v46 }
 0x1fa   :  { %7672 = vmatmul.mubr.msk.bf16.gmra.mxu0 %vm128_vm1, %v8001_v6 }
 0x1fb   :  { %7719 = vmatprep.mubr.msk.bf16.mxu0 %vm8491_vm0, %v9295_v46 }
 0x1fd   :  { %7700 = vmatmul.mubr.msk.bf16.gmra.mxu1 %vm128_vm1, %v8004_v25  ;;  %v8022_v25 = vld [vmem:[%s11519_s3 + $0x28] sm:$0xff]  }
 0x1fe   :  { %7703 = vmatprep.mubr.msk.bf16.mxu1 %vm8491_vm0, %v9295_v46 }
 0x202   :  { %7720 = vmatmul.mubr.msk.bf16.vlgmr.msra.gmra.mxu0 %vm128_vm1, %v8003_v38 }
 0x203   :  { %7723 = vmatprep.mubr.msk.bf16.mxu0 %vm8491_vm0, %v9295_v46  ;;  %7784 = vmatpush3.bf16.msra.mxu0 %v8019_v62 }
 0x204   :  { %7785 = vmatprep.subr.bf16.mxu0 %v8021_v1 }
 0x205   :  { %7704 = vmatmul.mubr.msk.bf16.gmra.mxu1 %vm128_vm1, %v8006_v9 }
 0x206   :  { %7707 = vmatprep.mubr.msk.bf16.mxu1 %vm8491_vm0, %v9295_v46 }
 0x207   :  { %7786 = vmatpush3.bf16.msra.mxu0 %v8021_v1 }
 0x208   :  { %v9645_v11 = vpop.f32.mrf.mxu1  ;;  %7787 = vmatprep.subr.bf16.mxu0 %v8022_v25 }
 0x20a   :  { %7724 = vmatmul.mubr.msk.bf16.gmra.mxu0 %vm128_vm1, %v8005_v39  ;;  %v9653_v23 = vpop.f32.mrf.mxu1 }
 0x20b   :  { %7727 = vmatprep.mubr.msk.bf16.mxu0 %vm8491_vm0, %v9295_v46  ;;  %7788 = vmatpush3.bf16.msra.mxu0 %v8022_v25 }
 0x20c   :  { %v9661_v0 = vpop.f32.mrf.mxu1 }
 0x20d   :  { %7708 = vmatmul.mubr.msk.bf16.gmra.mxu1 %vm128_vm1, %v8008_v2  ;;  %v8024_v2 = vld [vmem:[%s11519_s3 + $0x20] sm:$0xff]  }
 0x20e   :  { %7711 = vmatprep.mubr.msk.bf16.mxu1 %vm8491_vm0, %v9295_v46  ;;  %v9667_v30 = vpop.f32.mrf.mxu1  ;;  %7789 = vmatprep.subr.bf16.mxu0 %v8024_v2 }
 0x20f   :  { %7790 = vmatpush3.bf16.msra.mxu0 %v8024_v2 }
 0x212   :  { %7728 = vmatmul.mubr.msk.bf16.gmra.mxu0 %vm128_vm1, %v8007_v18 }
 0x213   :  { %7731 = vmatprep.mubr.msk.bf16.mxu0 %vm8491_vm0, %v9295_v46 }
 0x215   :  { %7712 = vmatmul.mubr.msk.bf16.gmra.mxu1 %vm128_vm1, %v8010_v12 }
 0x218   :  { %v9672_v19 = vpop.f32.mrf.mxu1 }
 0x219   :  { %v9674_v60 = vpop.f32.mrf.mxu0 }
 0x21a   :  { %7732 = vmatmul.mubr.msk.bf16.gmra.mxu0 %vm128_vm1, %v8009_v27  ;;  %v9679_v32 = vpop.f32.mrf.mxu1  ;;  %v1459_v34 = vadd.f32 %v9645_v11, %v9674_v60 }
 0x21b   :  { %7735 = vmatprep.mubr.msk.bf16.mxu0 %vm8491_vm0, %v9295_v46  ;;  %v9681_v45 = vpop.f32.mrf.mxu0 }
 0x21c   :  { %v9684_v29 = vpop.f32.mrf.mxu1  ;;  %v1451_v25 = vadd.f32 %v9653_v23, %v9681_v45 }
 0x21d   :  { %v9688_v36 = vpop.f32.mrf.mxu0 }
 0x21e   :  { %v9693_v40 = vpop.f32.mrf.mxu1 }
 0x21f   :  { %v9697_v55 = vpop.f32.mrf.mxu0 }
 0x222   :  { %7736 = vmatmul.mubr.msk.bf16.gmra.mxu0 %vm128_vm1, %v8011_v10  ;;  %v8025_v10 = vld [vmem:[%s11519_s3 + $0x18] sm:$0xff]  }
 0x223   :  { %7739 = vmatprep.mubr.msk.bf16.mxu0 %vm8491_vm0, %v9295_v46  ;;  %7791 = vmatprep.subr.bf16.mxu0 %v8025_v10 }
 0x224   :  { %7792 = vmatpush3.bf16.msra.mxu0 %v8025_v10  ;;  %v1462_v10 = vadd.f32 %v9661_v0, %v9688_v36 }
 0x228   :  { %v9695_v26 = vpop.f32.mrf.mxu1  ;;  %v9704_v7 = vpop.f32.mrf.mxu0 }
 0x22a   :  { %7740 = vmatmul.mubr.msk.bf16.gmra.mxu0 %vm128_vm1, %v8012_v37  ;;  %v9702_v21 = vpop.f32.mrf.mxu1  ;;  %v9713_v50 = vpop.f32.mrf.mxu0 }
 0x22b   :  { %7743 = vmatprep.mubr.msk.bf16.mxu0 %vm8491_vm0, %v9295_v46 }
 0x22c   :  { %v9706_v54 = vpop.f32.mrf.mxu1  ;;  %v9722_v41 = vpop.f32.mrf.mxu0 }
 0x22e   :  { %v9711_v48 = vpop.f32.mrf.mxu1  ;;  %v9731_v16 = vpop.f32.mrf.mxu0 }
 0x230   :  { %v9715_v57 = vpop.f32.mrf.mxu1 }
 0x232   :  { %7744 = vmatmul.mubr.msk.bf16.gmra.mxu0 %vm128_vm1, %v8013_v47  ;;  %v9720_v22 = vpop.f32.mrf.mxu1 }
 0x233   :  { %7747 = vmatprep.mubr.msk.bf16.mxu0 %vm8491_vm0, %v9295_v46 }
 0x234   :  { %v9724_v31 = vpop.f32.mrf.mxu1 }
 0x236   :  { %v9729_v4 = vpop.f32.mrf.mxu1 }
 0x239   :  { %v9733_v35 = vpop.f32.mrf.mxu1 }
 0x23a   :  { %7748 = vmatmul.mubr.msk.bf16.gmra.mxu0 %vm128_vm1, %v8014_v14  ;;  %v9736_v59 = vpop.f32.mrf.mxu0  ;;  %v8018_v14 = vld [vmem:[%s11519_s3 + $0x68] sm:$0xff]  }
 0x23b   :  { %7751 = vmatprep.mubr.msk.bf16.mxu0 %vm8491_vm0, %v9295_v46  ;;  %v9745_v58 = vpop.f32.mrf.mxu1  ;;  %7759 = vmatprep.subr.bf16.mxu1 %v8018_v14 }
 0x23c   :  { %v9743_v15 = vpop.f32.mrf.mxu0  ;;  %7760 = vmatpush3.bf16.msra.mxu1 %v8018_v14  ;;  %v1454_v14 = vadd.f32 %v9667_v30, %v9697_v55  ;;  %v8029_v30 = vld [vmem:[%s11519_s3] sm:$0xff]  }
 0x23d   :  { %v9754_v52 = vpop.f32.mrf.mxu1 }
 0x23e   :  { %v9747_v42 = vpop.f32.mrf.mxu0 }
 0x23f   :  { %v9760_v20 = vpop.f32.mrf.mxu1 }
 0x240   :  { %v9752_v44 = vpop.f32.mrf.mxu0 }
 0x242   :  { %7752 = vmatmul.mubr.msk.bf16.gmra.mxu0 %vm128_vm1, %v8015_v5  ;;  %v7529_v46 = vpop.f32.mrf.mxu0  ;;  %v8026_v5 = vld [vmem:[%s11519_s3 + $0x10] sm:$0xff]  }
 0x243   :  { %7793 = vmatprep.subr.bf16.mxu0 %v8026_v5 }
 0x244   :  { %v1614_v51 = vpop.f32.mrf.mxu0  ;;  %7794 = vmatpush3.bf16.msra.mxu0 %v8026_v5  ;;  %v9832_v5 = vld [vmem:[%s11520_s4] ss:$0 sm:$0xff] }
 0x245   :  { %v9762_v43 = vpop.f32.mrf.mxu1  ;;  %v1661_v11 = vadd.f32 %v1614_v51, %v1451_v25  ;;  %v8020_v51 = vld [vmem:[%s11519_s3 + $0x60] sm:$0xff]  }
 0x246   :  { %v7530_v63 = vpop.f32.mrf.mxu0  ;;  %7761 = vmatprep.subr.bf16.mxu1 %v8020_v51 }
 0x247   :  { %v9767_v33 = vpop.f32.mrf.mxu1  ;;  %v1664_v23 = vadd.f32 %v7530_v63, %v1462_v10  ;;  %7762 = vmatpush3.bf16.msra.mxu1 %v8020_v51  ;;  %v1491_v51 = vadd.f32 %v9695_v26, %v9736_v59 }
 0x248   :  { %v1617_v61 = vpop.f32.mrf.mxu0 }
 0x249   :  { %v9769_v49 = vpop.f32.mrf.mxu1  ;;  %v1662_v55 = vadd.f32 %v1617_v61, %v1454_v14  ;;  %v1478_v61 = vadd.f32 %v9684_v29, %v9722_v41  ;;  %v1470_v14 = vadd.f32 %v9693_v40, %v9731_v16  ;;  %v8027_v16 = vld [vmem:[%s11519_s3 + $0x50] sm:$0xff]  }
 0x24a   :  { %v7533_v24 = vpop.f32.mrf.mxu0 }
 0x24b   :  { %v9776_v17 = vpop.f32.mrf.mxu1 }
 0x24c   :  { %v9774_v56 = vpop.f32.mrf.mxu0 }
 0x24d   :  { %v9780_v6 = vpop.f32.mrf.mxu1 }
 0x24e   :  { %v9778_v13 = vpop.f32.mrf.mxu0 }
 0x24f   :  { %v7601_v9 = vpop.f32.mrf.mxu1 }
 0x250   :  { %v9785_v38 = vpop.f32.mrf.mxu0  ;;  %v1663_v9 = vadd.f32 %v7529_v46, %v1459_v34  ;;  %v1475_v46 = vadd.f32 %v9672_v19, %v9704_v7  ;;  %v1837_v19 = vadd.f32 %v9720_v22, %v1661_v11  ;;  %v1467_v7 = vadd.f32 %v9679_v32, %v9713_v50  ;;  %v8023_v32 = vld [vmem:[%s11519_s3 + $0x58] sm:$0xff]  }
 0x251   :  { %v9787_v39 = vpop.f32.mrf.mxu1  ;;  %7763 = vmatprep.subr.bf16.mxu1 %v8023_v32 }
 0x252   :  { %v9792_v18 = vpop.f32.mrf.mxu0  ;;  %v1839_v45 = vadd.f32 %v9715_v57, %v1663_v9  ;;  %v1667_v63 = vadd.f32 %v7533_v24, %v1475_v46  ;;  %v1665_v22 = vadd.f32 %v9774_v56, %v1467_v7  ;;  %v1668_v56 = vadd.f32 %v9778_v13, %v1478_v61  ;;  %7764 = vmatpush3.bf16.msra.mxu1 %v8023_v32 }
 0x253   :  { %v7602_v12 = vpop.f32.mrf.mxu1  ;;  %v1671_v26 = vadd.f32 %v9792_v18, %v1491_v51  ;;  %7765 = vmatprep.subr.bf16.mxu1 %v8027_v16  ;;  %v9888_v18 = vld [vmem:[%s11519_s3 + $0xf8] sm:$0xff]  }
 0x254   :  { %v9799_v37 = vpop.f32.mrf.mxu0  ;;  %v8028_v12 = vld [vmem:[%s11519_s3 + $0x8] sm:$0xff]   ;;  %v1843_v29 = vadd.f32 %v9733_v35, %v1667_v63  ;;  %v1666_v35 = vadd.f32 %v9785_v38, %v1470_v14  ;;  %v1844_v38 = vadd.f32 %v9754_v52, %v1668_v56 }
 0x255   :  { %v9794_v27 = vpop.f32.mrf.mxu1  ;;  %7795 = vmatprep.subr.bf16.mxu0 %v8028_v12 }
 0x256   :  { %v9811_v62 = vpop.f32.mrf.mxu0  ;;  %7796 = vmatpush3.bf16.msra.mxu0 %v8028_v12  ;;  %v1840_v12 = vadd.f32 %v9724_v31, %v1664_v23  ;;  %v1838_v31 = vadd.f32 %v9729_v4, %v1662_v55  ;;  %7766 = vmatpush3.bf16.msra.mxu1 %v8027_v16 }
 0x257   :  { %v7605_v47 = vpop.f32.mrf.mxu1  ;;  %7797 = vmatprep.subr.bf16.mxu0 %v8029_v30 }
 0x258   :  { %v9822_v60 = vpop.f32.mrf.mxu0 }
 0x259   :  { %v9804_v3 = vpop.f32.mrf.mxu1 }
 0x25a   :  { %7798 = vmatpush3.bf16.msra.mxu0 %v8029_v30  ;;  %v1841_v30 = vadd.f32 %v9745_v58, %v1665_v22  ;;  %v1847_v22 = vadd.f32 %v9762_v43, %v1671_v26 }
 0x25b   :  { %v7606_v1 = vpop.f32.mrf.mxu1  ;;  %7839 = vmatprep.subr.bf16.mxu0 %v9888_v18 }
 0x25d   :  { %v9815_v2 = vpop.f32.mrf.mxu1 }
 0x25f   :  { %v7609_v47 = vpop.f32.mrf.mxu1 }
 0x261   :  { %v9834_v36 = vpop.f32.mrf.mxu1 }
 0x262   :  { %v7585_v0 = vpop.f32.mrf.mxu0 }
 0x263   :  { %v2015_v57 = vadd.f32 %v7585_v0, %v1839_v45  ;;  %v7610_v1 = vpop.f32.mrf.mxu1 }
 0x264   :  { %v1966_v34 = vpop.f32.mrf.mxu0  ;;  %v1494_v1 = vadd.f32 %v9706_v54, %v9747_v42  ;;  %v1842_v54 = vadd.f32 %v9760_v20, %v1666_v35  ;;  %v1486_v42 = vadd.f32 %v9711_v48, %v9752_v44  ;;  %v8031_v48 = vld [vmem:[%s11519_s3 + $0x40] sm:$0xff]  }
 0x265   :  { %v2033_v25 = vadd.f32 %v9832_v5, %v2015_v57  ;;  %v2013_v9 = vadd.f32 %v1966_v34, %v1837_v19  ;;  %v9850_v11 = vpop.f32.mrf.mxu1  ;;  %v1483_v19 = vadd.f32 %v9702_v21, %v9743_v15  ;;  %v8030_v15 = vld [vmem:[%s11519_s3 + $0x48] sm:$0xff]  }
 0x266   :  { %v7586_v10 = vpop.f32.mrf.mxu0  ;;  %7767 = vmatprep.subr.bf16.mxu1 %v8030_v15  ;;  %v1672_v32 = vadd.f32 %v9811_v62, %v1494_v1  ;;  %v1670_v44 = vadd.f32 %v9822_v60, %v1486_v42 }
 0x267   :  { %v2045_v50 = vmax.f32 %v2033_v25, 0.0  ;;  %v2031_v24 = vadd.f32 %v9832_v5, %v2013_v9  ;;  %v2016_v47 = vadd.f32 %v7586_v10, %v1840_v12  ;;  %v7613_v41 = vpop.f32.mrf.mxu1  ;;  %v1669_v25 = vadd.f32 %v9799_v37, %v1483_v19  ;;  %7768 = vmatpush3.bf16.msra.mxu1 %v8030_v15 }
 0x268   :  { %v1969_v23 = vpop.f32.mrf.mxu0  ;;  %7769 = vmatprep.subr.bf16.mxu1 %v8031_v48 }
 0x269   :  { %2057 = vst [vmem:[#allocation4 + $0x10] sm:$0xff] %v2045_v50  ;;  %v2043_v45 = vmax.f32 %v2031_v24, 0.0  ;;  %v2034_v46 = vadd.f32 %v9832_v5, %v2016_v47  ;;  %v2014_v0 = vadd.f32 %v1969_v23, %v1838_v31  ;;  %v9865_v40 = vpop.f32.mrf.mxu1  ;;  %v1845_v20 = vadd.f32 %v9767_v33, %v1669_v25 }
 0x26a   :  { %v7589_v4 = vpop.f32.mrf.mxu0 }
 0x26b   :  { %2055 = vst [vmem:[#allocation4] sm:$0xff] %v2043_v45  ;;  %v2046_v13 = vmax.f32 %v2034_v46, 0.0  ;;  %v2032_v55 = vadd.f32 %v9832_v5, %v2014_v0  ;;  %v2019_v57 = vadd.f32 %v7589_v4, %v1843_v29  ;;  %v7614_v58 = vpop.f32.mrf.mxu1  ;;  %v1848_v46 = vadd.f32 %v9769_v49, %v1672_v32  ;;  %7770 = vmatpush3.bf16.msra.mxu1 %v8031_v48 }
 0x26c   :  { %v1982_v59 = vpop.f32.mrf.mxu0  ;;  %v2288_v49 = vadd.f32 %v9267_v28, %v9780_v6 }
 0x26d   :  { %2058 = vst [vmem:[#allocation4 + $0x18] sm:$0xff] %v2046_v13  ;;  %v2044_v7 = vmax.f32 %v2032_v55, 0.0  ;;  %v2037_v63 = vadd.f32 %v9832_v5, %v2019_v57  ;;  %v2017_v34 = vadd.f32 %v1982_v59, %v1841_v30  ;;  %v9880_v21 = vpop.f32.mrf.mxu1  ;;  %v1846_v13 = vadd.f32 %v9776_v17, %v1670_v44 }
 0x26e   :  { %v7590_v9 = vpop.f32.mrf.mxu0  ;;  %v2358_v6 = vmax.f32 %v2288_v49, 0.0 }
 0x26f   :  { %2056 = vst [vmem:[#allocation4 + $0x8] sm:$0xff] %v2044_v7  ;;  %v2049_v52 = vmax.f32 %v2037_v63, 0.0  ;;  %v2035_v12 = vadd.f32 %v9832_v5, %v2017_v34  ;;  %v2020_v61 = vadd.f32 %v7590_v9, %v1844_v38  ;;  %v7617_v10 = vpop.f32.mrf.mxu1 }
 0x270   :  { %v1985_v37 = vpop.f32.mrf.mxu0 }
 0x271   :  { %2061 = vst [vmem:[#allocation4 + $0x30] sm:$0xff] %v2049_v52  ;;  %v2047_v50 = vmax.f32 %v2035_v12, 0.0  ;;  %v2038_v24 = vadd.f32 %v9832_v5, %v2020_v61  ;;  %v2018_v47 = vadd.f32 %v1985_v37, %v1842_v54  ;;  %v9899_v14 = vpop.f32.mrf.mxu1  ;;  %v2291_v54 = vadd.f32 %v9267_v28, %v9787_v39 }
 0x272   :  { %v7593_v31 = vpop.f32.mrf.mxu0  ;;  %v2067_v55 = vld [vmem:[#allocation4] sm:$0xff] }
 0x273   :  { %2059 = vst [vmem:[#allocation4 + $0x20] sm:$0xff] %v2047_v50  ;;  %v2050_v43 = vmax.f32 %v2038_v24, 0.0  ;;  %v2036_v62 = vadd.f32 %v9832_v5, %v2018_v47  ;;  %v2023_v23 = vadd.f32 %v7593_v31, %v1847_v22  ;;  %v7618_v41 = vpop.f32.mrf.mxu1  ;;  %v9924_v22 = vld [vmem:[%s11519_s3 + $0xb8] sm:$0xff]  }
 0x274   :  { %v1998_v29 = vpop.f32.mrf.mxu0  ;;  %v2070_v32 = vld [vmem:[#allocation4 + $0x18] sm:$0xff]  ;;  %7811 = vmatprep.subr.bf16.mxu1 %v9924_v22 }
 0x275   :  { %2062 = vst [vmem:[#allocation4 + $0x38] sm:$0xff] %v2050_v43  ;;  %v2048_v56 = vmax.f32 %v2036_v62, 0.0  ;;  %v2041_v33 = vadd.f32 %v9832_v5, %v2023_v23  ;;  %v2021_v45 = vadd.f32 %v1998_v29, %v1845_v20  ;;  %v9908_v51 = vpop.f32.mrf.mxu1  ;;  %v2359_v62 = vmax.f32 %v2291_v54, 0.0 }
 0x276   :  { %v7594_v0 = vpop.f32.mrf.mxu0  ;;  %v2077_v60 = vld [vmem:[#allocation4 + $0x1] sm:$0xff]  ;;  %v2097_v4 = vld [vmem:[#allocation4 + $0xc] sm:$0xff] }
 0x277   :  { %2060 = vst [vmem:[#allocation4 + $0x28] sm:$0xff] %v2048_v56  ;;  %v2053_v30 = vmax.f32 %v2041_v33, 0.0  ;;  %v2039_v16 = vadd.f32 %v9832_v5, %v2021_v45  ;;  %v2024_v35 = vadd.f32 %v7594_v0, %v1848_v46  ;;  %v2107_v57 = vld [vmem:[#allocation4 + $0xd] sm:$0xff]  ;;  %v7621_v26 = vpop.f32.mrf.mxu1  ;;  %v2087_v59 = vmax.f32 %v2067_v55, %v2077_v60 }
 0x278   :  { %v2001_v19 = vpop.f32.mrf.mxu0  ;;  %v2117_v58 = vmax.f32 %v2097_v4, %v2107_v57  ;;  %v2073_v45 = vld [vmem:[#allocation4 + $0x30] sm:$0xff] }
 0x279   :  { %2065 = vst [vmem:[#allocation4 + $0x50] sm:$0xff] %v2053_v30  ;;  %v2051_v7 = vmax.f32 %v2039_v16, 0.0  ;;  %v2042_v63 = vadd.f32 %v9832_v5, %v2024_v35  ;;  %v2022_v34 = vadd.f32 %v2001_v19, %v1846_v13  ;;  %v9915_v1 = vpop.f32.mrf.mxu1 }
 0x27a   :  { %v2500_v38 = vpop.f32.mrf.mxu0  ;;  %v2127_v25 = vmax.f32 %v2087_v59, %v2117_v58  ;;  %v2080_v61 = vld [vmem:[#allocation4 + $0x19] sm:$0xff] }
 0x27b   :  { %2063 = vst [vmem:[#allocation4 + $0x40] sm:$0xff] %v2051_v7  ;;  %v2054_v17 = vmax.f32 %v2042_v63, 0.0  ;;  %v2040_v9 = vadd.f32 %v9832_v5, %v2022_v34  ;;  %v2501_v15 = vadd.f32 %v9267_v28, %v2500_v38  ;;  %v7622_v12 = vpop.f32.mrf.mxu1  ;;  %v9933_v28 = vld [vmem:[%s11518_s2] ss:$0 sm:$0xff]  ;;  %v2090_v31 = vmax.f32 %v2070_v32, %v2080_v61 }
 0x27c   :  { %v7641_v52 = vpop.f32.mrf.mxu0  ;;  %2137 = vst [vmem:[#allocation5] sm:$0xff] %v2127_v25  ;;  %v2083_v43 = vld [vmem:[#allocation4 + $0x31] sm:$0xff]  ;;  %v2296_v23 = vadd.f32 %v9933_v28, %v9794_v27  ;;  %v2299_v19 = vadd.f32 %v9933_v28, %v9804_v3  ;;  %v2304_v3 = vadd.f32 %v9933_v28, %v9815_v2 }
 0x27d   :  { %2066 = vst [vmem:[#allocation4 + $0x58] sm:$0xff] %v2054_v17  ;;  %v2052_v42 = vmax.f32 %v2040_v9, 0.0  ;;  %v2571_v37 = vmax.f32 %v2501_v15, 0.0  ;;  %v9926_v5 = vpop.f32.mrf.mxu1  ;;  %v2093_v30 = vmax.f32 %v2073_v45, %v2083_v43 }
 0x27e   :  { %v2503_v10 = vpop.f32.mrf.mxu0  ;;  %v2100_v50 = vld [vmem:[#allocation4 + $0x24] sm:$0xff]  ;;  %v2360_v27 = vmax.f32 %v2296_v23, 0.0  ;;  %v2361_v52 = vmax.f32 %v2299_v19, 0.0  ;;  %v2312_v23 = vadd.f32 %v9933_v28, %v9850_v11 }
 0x27f   :  { %v2110_v24 = vld [vmem:[#allocation4 + $0x25] sm:$0xff]  ;;  %2064 = vst [vmem:[#allocation4 + $0x48] sm:$0xff] %v2052_v42  ;;  %v9928_v47 = vmax.f32 %v2358_v6, %v2571_v37  ;;  %v2504_v39 = vadd.f32 %v9933_v28, %v2503_v10  ;;  %v7625_v44 = vpop.f32.mrf.mxu1 }
 0x280   :  { %v2120_v20 = vmax.f32 %v2100_v50, %v2110_v24  ;;  %v7642_v48 = vpop.f32.mrf.mxu0  ;;  %v2362_v50 = vmax.f32 %v2304_v3, 0.0  ;;  %v2307_v24 = vadd.f32 %v9933_v28, %v9834_v36 }
 0x281   :  { %v2572_v29 = vmax.f32 %v2504_v39, 0.0  ;;  %v9939_v33 = vpop.f32.mrf.mxu1 }
 0x282   :  { %v2130_v41 = vmax.f32 %v2090_v31, %v2120_v20  ;;  %v2508_v56 = vpop.f32.mrf.mxu0  ;;  %v2103_v46 = vld [vmem:[#allocation4 + $0x3c] sm:$0xff] }
 0x283   :  { %v2113_v0 = vld [vmem:[#allocation4 + $0x3d] sm:$0xff]  ;;  %v9941_v60 = vmax.f32 %v2359_v62, %v2572_v29  ;;  %v2509_v4 = vadd.f32 %v9933_v28, %v2508_v56  ;;  %v7626_v13 = vpop.f32.mrf.mxu1  ;;  %v2363_v62 = vmax.f32 %v2307_v24, 0.0 }
 0x284   :  { %2140 = vst [vmem:[#allocation5 + $0x18] sm:$0xff] %v2130_v41  ;;  %v2123_v16 = vmax.f32 %v2103_v46, %v2113_v0  ;;  %v7645_v35 = vpop.f32.mrf.mxu0  ;;  %v2106_v55 = vld [vmem:[#allocation4 + $0x54] sm:$0xff] }
 0x285   :  { %v2116_v57 = vld [vmem:[#allocation4 + $0x55] sm:$0xff]  ;;  %v2573_v26 = vmax.f32 %v2509_v4, 0.0  ;;  %v9946_v49 = vpop.f32.mrf.mxu1  ;;  %v2364_v4 = vmax.f32 %v2312_v23, 0.0 }
 0x286   :  { %v2133_v59 = vmax.f32 %v2093_v30, %v2123_v16  ;;  %v2511_v58 = vpop.f32.mrf.mxu0  ;;  %v2076_v7 = vld [vmem:[#allocation4 + $0x48] sm:$0xff]  ;;  %v2126_v17 = vmax.f32 %v2106_v55, %v2116_v57  ;;  %v2315_v30 = vadd.f32 %v9933_v28, %v9865_v40 }
 0x287   :  { %v2086_v63 = vld [vmem:[#allocation4 + $0x49] sm:$0xff]  ;;  %v9948_v34 = vmax.f32 %v2360_v27, %v2573_v26  ;;  %v2512_v38 = vadd.f32 %v9933_v28, %v2511_v58  ;;  %v7629_v15 = vpop.f32.mrf.mxu1  ;;  %v2320_v26 = vadd.f32 %v9933_v28, %v9880_v21 }
 0x288   :  { %v2096_v25 = vmax.f32 %v2076_v7, %v2086_v63  ;;  %2143 = vst [vmem:[#allocation5 + $0x30] sm:$0xff] %v2133_v59  ;;  %v7646_v9 = vpop.f32.mrf.mxu0  ;;  %v2365_v19 = vmax.f32 %v2315_v30, 0.0 }
 0x289   :  { %v2574_v12 = vmax.f32 %v2512_v38, 0.0  ;;  %v9953_v54 = vpop.f32.mrf.mxu1  ;;  %v2323_v9 = vadd.f32 %v9933_v28, %v9899_v14 }
 0x28a   :  { %v2136_v61 = vmax.f32 %v2096_v25, %v2126_v17  ;;  %v2516_v6 = vpop.f32.mrf.mxu0  ;;  %v2366_v17 = vmax.f32 %v2320_v26, 0.0  ;;  %v2339_v26 = vadd.f32 %v9933_v28, %v9939_v33 }
 0x28b   :  { %v9955_v42 = vmax.f32 %v2361_v52, %v2574_v12  ;;  %v2517_v37 = vadd.f32 %v9933_v28, %v2516_v6  ;;  %v7630_v32 = vpop.f32.mrf.mxu1 }
 0x28c   :  { %2146 = vst [vmem:[#allocation5 + $0x48] sm:$0xff] %v2136_v61  ;;  %v7649_v10 = vpop.f32.mrf.mxu0 }
 0x28d   :  { %v2575_v39 = vmax.f32 %v2517_v37, 0.0  ;;  %v9960_v20 = vpop.f32.mrf.mxu1  ;;  %v2367_v37 = vmax.f32 %v2323_v9, 0.0  ;;  %v2328_v10 = vadd.f32 %v9933_v28, %v9908_v51  ;;  %v2371_v9 = vmax.f32 %v2339_v26, 0.0 }
 0x28e   :  { %v2519_v31 = vpop.f32.mrf.mxu0 }
 0x28f   :  { %v9962_v2 = vmax.f32 %v2362_v50, %v2575_v39  ;;  %v2520_v48 = vadd.f32 %v9933_v28, %v2519_v31  ;;  %v7633_v43 = vpop.f32.mrf.mxu1 }
 0x290   :  { %v7650_v44 = vpop.f32.mrf.mxu0  ;;  %v2331_v43 = vadd.f32 %v9933_v28, %v9915_v1 }
 0x291   :  { %v2576_v29 = vmax.f32 %v2520_v48, 0.0  ;;  %v9967_v56 = vpop.f32.mrf.mxu1  ;;  %v2368_v44 = vmax.f32 %v2328_v10, 0.0 }
 0x292   :  { %v2524_v41 = vpop.f32.mrf.mxu0 }
 0x293   :  { %v9969_v45 = vmax.f32 %v2363_v62, %v2576_v29  ;;  %v2525_v36 = vadd.f32 %v9933_v28, %v2524_v41  ;;  %v7634_v0 = vpop.f32.mrf.mxu1 }
 0x294   :  { %v7653_v46 = vpop.f32.mrf.mxu0  ;;  %v2369_v0 = vmax.f32 %v2331_v43, 0.0 }
 0x295   :  { %v2577_v16 = vmax.f32 %v2525_v36, 0.0  ;;  %v9974_v13 = vpop.f32.mrf.mxu1 }
 0x296   :  { %v2527_v35 = vpop.f32.mrf.mxu0 }
 0x297   :  { %v9976_v55 = vmax.f32 %v2364_v4, %v2577_v16  ;;  %v2528_v11 = vadd.f32 %v9933_v28, %v2527_v35  ;;  %v7681_v27 = vpop.f32.mrf.mxu1  ;;  %v2336_v4 = vadd.f32 %v9933_v28, %v9926_v5 }
 0x298   :  { %v7654_v57 = vpop.f32.mrf.mxu0 }
 0x299   :  { %v2578_v59 = vmax.f32 %v2528_v11, 0.0  ;;  %v9981_v7 = vpop.f32.mrf.mxu1 }
 0x29a   :  { %v2532_v58 = vpop.f32.mrf.mxu0 }
 0x29b   :  { %v9983_v63 = vmax.f32 %v2365_v19, %v2578_v59  ;;  %v2533_v40 = vadd.f32 %v9933_v28, %v2532_v58  ;;  %v7682_v25 = vpop.f32.mrf.mxu1  ;;  %v2370_v19 = vmax.f32 %v2336_v4, 0.0 }
 0x29c   :  { %v7657_v38 = vpop.f32.mrf.mxu0 }
 0x29d   :  { %v2579_v15 = vmax.f32 %v2533_v40, 0.0  ;;  %v9988_v3 = vpop.f32.mrf.mxu1 }
 0x29e   :  { %v2535_v52 = vpop.f32.mrf.mxu0 }
 0x29f   :  { %v9990_v12 = vmax.f32 %v2366_v17, %v2579_v15  ;;  %v2536_v21 = vadd.f32 %v9933_v28, %v2535_v52  ;;  %v7685_v6 = vpop.f32.mrf.mxu1  ;;  %v2344_v15 = vadd.f32 %v9933_v28, %v9946_v49 }
 0x2a0   :  { %v7658_v61 = vpop.f32.mrf.mxu0 }
 0x2a1   :  { %v2580_v32 = vmax.f32 %v2536_v21, 0.0  ;;  %v9995_v24 = vpop.f32.mrf.mxu1 }
 0x2a2   :  { %v2540_v50 = vpop.f32.mrf.mxu0 }
 0x2a3   :  { %v9997_v39 = vmax.f32 %v2367_v37, %v2580_v32  ;;  %v2541_v14 = vadd.f32 %v9933_v28, %v2540_v50  ;;  %v7686_v48 = vpop.f32.mrf.mxu1  ;;  %v2372_v32 = vmax.f32 %v2344_v15, 0.0  ;;  %v2347_v50 = vadd.f32 %v9933_v28, %v9953_v54 }
 0x2a4   :  { %v7661_v31 = vpop.f32.mrf.mxu0  ;;  %v2735_v15 = vadd.f32 %v9933_v28, %v9981_v7 }
 0x2a5   :  { %v2581_v62 = vmax.f32 %v2541_v14, 0.0  ;;  %v10002_v29 = vpop.f32.mrf.mxu1 }
 0x2a6   :  { %v2543_v23 = vpop.f32.mrf.mxu0 }
 0x2a7   :  { %v10004_v41 = vmax.f32 %v2368_v44, %v2581_v62  ;;  %v2544_v51 = vadd.f32 %v9933_v28, %v2543_v23  ;;  %v7689_v46 = vpop.f32.mrf.mxu1  ;;  %v2373_v23 = vmax.f32 %v2347_v50, 0.0  ;;  %v2803_v50 = vmax.f32 %v2735_v15, 0.0 }
 0x2a8   :  { %v7662_v36 = vpop.f32.mrf.mxu0 }
 0x2a9   :  { %v2582_v30 = vmax.f32 %v2544_v51, 0.0  ;;  %v10009_v35 = vpop.f32.mrf.mxu1  ;;  %v2352_v51 = vadd.f32 %v9933_v28, %v9960_v20 }
 0x2aa   :  { %v2548_v16 = vpop.f32.mrf.mxu0 }
 0x2ab   :  { %v10011_v11 = vmax.f32 %v2369_v0, %v2582_v30  ;;  %v2549_v1 = vadd.f32 %v9933_v28, %v2548_v16  ;;  %v7690_v27 = vpop.f32.mrf.mxu1 }
 0x2ac   :  { %v7665_v57 = vpop.f32.mrf.mxu0  ;;  %v2732_v27 = vadd.f32 %v9933_v28, %v9974_v13 }
 0x2ad   :  { %v2583_v59 = vmax.f32 %v2549_v1, 0.0  ;;  %v10016_v40 = vpop.f32.mrf.mxu1  ;;  %v2374_v1 = vmax.f32 %v2352_v51, 0.0  ;;  %v2355_v57 = vadd.f32 %v9933_v28, %v9967_v56 }
 0x2ae   :  { %v2551_v58 = vpop.f32.mrf.mxu0 }
 0x2af   :  { %v10018_v38 = vmax.f32 %v2370_v19, %v2583_v59  ;;  %v2552_v5 = vadd.f32 %v9933_v28, %v2551_v58  ;;  %v7693_v17 = vpop.f32.mrf.mxu1 }
 0x2b0   :  { %v7666_v25 = vpop.f32.mrf.mxu0  ;;  %v2375_v17 = vmax.f32 %v2355_v57, 0.0 }
 0x2b1   :  { %v2584_v52 = vmax.f32 %v2552_v5, 0.0  ;;  %v10023_v61 = vpop.f32.mrf.mxu1 }
 0x2b2   :  { %v2556_v21 = vpop.f32.mrf.mxu0 }
 0x2b3   :  { %v10025_v6 = vmax.f32 %v2371_v9, %v2584_v52  ;;  %v2557_v33 = vadd.f32 %v9933_v28, %v2556_v21  ;;  %v7694_v10 = vpop.f32.mrf.mxu1  ;;  %v2802_v9 = vmax.f32 %v2732_v27, 0.0 }
 0x2b4   :  { %v7669_v37 = vpop.f32.mrf.mxu0 }
 0x2b5   :  { %v2585_v14 = vmax.f32 %v2557_v33, 0.0  ;;  %v10030_v48 = vpop.f32.mrf.mxu1 }
 0x2b6   :  { %v2559_v31 = vpop.f32.mrf.mxu0 }
 0x2b7   :  { %v10032_v44 = vmax.f32 %v2372_v32, %v2585_v14  ;;  %v2560_v49 = vadd.f32 %v9933_v28, %v2559_v31  ;;  %v7697_v62 = vpop.f32.mrf.mxu1  ;;  %v2820_v32 = vmax.f32 %v9928_v47, %v2802_v9  ;;  %v2740_v14 = vadd.f32 %v9933_v28, %v9988_v3 }
 0x2b8   :  { %v7670_v43 = vpop.f32.mrf.mxu0  ;;  %v2743_v47 = vadd.f32 %v9933_v28, %v9995_v24 }
 0x2b9   :  { %v2586_v36 = vmax.f32 %v2560_v49, 0.0  ;;  %v10037_v0 = vpop.f32.mrf.mxu1 }
 0x2ba   :  { %v2564_v46 = vpop.f32.mrf.mxu0 }
 0x2bb   :  { %v10039_v4 = vmax.f32 %v2373_v23, %v2586_v36  ;;  %v2565_v54 = vadd.f32 %v9933_v28, %v2564_v46  ;;  %v7698_v16 = vpop.f32.mrf.mxu1  ;;  %v2821_v36 = vmax.f32 %v9941_v60, %v2803_v50  ;;  %v2804_v46 = vmax.f32 %v2740_v14, 0.0 }
 0x2bc   :  { %v7673_v30 = vpop.f32.mrf.mxu0  ;;  %v2748_v60 = vadd.f32 %v9933_v28, %v10002_v29  ;;  %v2756_v50 = vadd.f32 %v9933_v28, %v10016_v40 }
 0x2bd   :  { %v2587_v19 = vmax.f32 %v2565_v54, 0.0  ;;  %v10046_v20 = vpop.f32.mrf.mxu1 }
 0x2be   :  { %v2567_v26 = vpop.f32.mrf.mxu0 }
 0x2bf   :  { %v10048_v59 = vmax.f32 %v2374_v1, %v2587_v19  ;;  %v2568_v58 = vadd.f32 %v9933_v28, %v2567_v26  ;;  %v7701_v25 = vpop.f32.mrf.mxu1  ;;  %v2822_v19 = vmax.f32 %v9948_v34, %v2804_v46  ;;  %v2805_v26 = vmax.f32 %v2743_v47, 0.0 }
 0x2c0   :  { %v7674_v5 = vpop.f32.mrf.mxu0  ;;  %v2751_v34 = vadd.f32 %v9933_v28, %v10009_v35 }
 0x2c1   :  { %v2588_v52 = vmax.f32 %v2568_v58, 0.0  ;;  %v10053_v21 = vpop.f32.mrf.mxu1 }
 0x2c2   :  { %v2962_v56 = vpop.f32.mrf.mxu0  ;;  %v2807_v35 = vmax.f32 %v2751_v34, 0.0 }
 0x2c3   :  { %v10055_v13 = vmax.f32 %v2375_v17, %v2588_v52  ;;  %v2963_v33 = vadd.f32 %v9933_v28, %v2962_v56  ;;  %v7702_v10 = vpop.f32.mrf.mxu1  ;;  %v2823_v52 = vmax.f32 %v9955_v42, %v2805_v26  ;;  %v2806_v56 = vmax.f32 %v2748_v60, 0.0 }
 0x2c4   :  { %v7721_v37 = vpop.f32.mrf.mxu0 }
 0x2c5   :  { %v3033_v31 = vmax.f32 %v2963_v33, 0.0  ;;  %v10061_v43 = vpop.f32.mrf.mxu1 }
 0x2c6   :  { %v2965_v49 = vpop.f32.mrf.mxu0 }
 0x2c7   :  { %v10063_v7 = vmax.f32 %v2820_v32, %v3033_v31  ;;  %v2966_v62 = vadd.f32 %v9933_v28, %v2965_v49  ;;  %v7705_v51 = vpop.f32.mrf.mxu1 }
 0x2c8   :  { %v7722_v23 = vpop.f32.mrf.mxu0 }
 0x2c9   :  { %3069 = vst [vmem:[#allocation2 + $0x90] sm:$0xff] %v10063_v7  ;;  %v3034_v54 = vmax.f32 %v2966_v62, 0.0  ;;  %v10070_v30 = vpop.f32.mrf.mxu1  ;;  %v2824_v62 = vmax.f32 %v9962_v2, %v2806_v56  ;;  %v2808_v2 = vmax.f32 %v2756_v50, 0.0 }
 0x2ca   :  { %v2970_v3 = vpop.f32.mrf.mxu0 }
 0x2cb   :  { %v10072_v16 = vmax.f32 %v2821_v36, %v3034_v54  ;;  %v2971_v1 = vadd.f32 %v9933_v28, %v2970_v3  ;;  %v7706_v27 = vpop.f32.mrf.mxu1 }
 0x2cc   :  { %v7725_v57 = vpop.f32.mrf.mxu0 }
 0x2cd   :  { %3070 = vst [vmem:[#allocation2 + $0x98] sm:$0xff] %v10072_v16  ;;  %v3035_v24 = vmax.f32 %v2971_v1, 0.0  ;;  %v10079_v5 = vpop.f32.mrf.mxu1 }
 0x2ce   :  { %v2973_v58 = vpop.f32.mrf.mxu0 }
 0x2cf   :  { %v10081_v25 = vmax.f32 %v2822_v19, %v3035_v24  ;;  %v2974_v17 = vadd.f32 %v9933_v28, %v2973_v58  ;;  %v7709_v15 = vpop.f32.mrf.mxu1  ;;  %v2825_v24 = vmax.f32 %v9969_v45, %v2807_v35  ;;  %v2759_v58 = vadd.f32 %v9933_v28, %v10023_v61 }
 0x2d0   :  { %v7726_v9 = vpop.f32.mrf.mxu0 }
 0x2d1   :  { %3071 = vst [vmem:[#allocation2 + $0xa0] sm:$0xff] %v10081_v25  ;;  %v3036_v29 = vmax.f32 %v2974_v17, 0.0  ;;  %v10088_v37 = vpop.f32.mrf.mxu1 }
 0x2d2   :  { %v2978_v33 = vpop.f32.mrf.mxu0 }
 0x2d3   :  { %v10090_v10 = vmax.f32 %v2823_v52, %v3036_v29  ;;  %v2979_v32 = vadd.f32 %v9933_v28, %v2978_v33  ;;  %v7710_v49 = vpop.f32.mrf.mxu1 }
 0x2d4   :  { %v3123_v14 = vld [vmem:[#allocation2 + $0x92] sm:$0xff]  ;;  %v7729_v42 = vpop.f32.mrf.mxu0  ;;  %v2809_v49 = vmax.f32 %v2759_v58, 0.0 }
 0x2d5   :  { %v3141_v31 = vld [vmem:[#allocation2 + $0x93] sm:$0xff]  ;;  %3072 = vst [vmem:[#allocation2 + $0xa8] sm:$0xff] %v10090_v10  ;;  %v3037_v51 = vmax.f32 %v2979_v32, 0.0  ;;  %v10099_v47 = vpop.f32.mrf.mxu1  ;;  %v2826_v32 = vmax.f32 %v9976_v55, %v2808_v2  ;;  %v2767_v2 = vadd.f32 %v9933_v28, %v10037_v0 }
 0x2d6   :  { %v3159_v23 = vld [vmem:[#allocation2 + $0x94] sm:$0xff]  ;;  %v2981_v46 = vpop.f32.mrf.mxu0 }
 0x2d7   :  { %v3177_v36 = vsel %vm40_vm2, %v3141_v31, %v3159_v23  ;;  %v3105_v54 = vld [vmem:[#allocation2 + $0x91] sm:$0xff]  ;;  %v10103_v3 = vmax.f32 %v2824_v62, %v3037_v51  ;;  %v2982_v1 = vadd.f32 %v9933_v28, %v2981_v46  ;;  %v7713_v60 = vpop.f32.mrf.mxu1  ;;  %v2764_v62 = vadd.f32 %v9933_v28, %v10030_v48 }
 0x2d8   :  { %v3195_v40 = vsel %vm39_vm3, %v3123_v14, %v3177_v36  ;;  %v3124_v27 = vld [vmem:[#allocation2 + $0x9a] sm:$0xff]  ;;  %v7730_v26 = vpop.f32.mrf.mxu0 }
 0x2d9   :  { %v3213_v57 = vsel %vm38_vm4, %v3105_v54, %v3195_v40  ;;  %v3142_v19 = vld [vmem:[#allocation2 + $0x9b] sm:$0xff]  ;;  %3073 = vst [vmem:[#allocation2 + $0xb0] sm:$0xff] %v10103_v3  ;;  %v3038_v9 = vmax.f32 %v2982_v1, 0.0  ;;  %v10117_v34 = vpop.f32.mrf.mxu1  ;;  %v2827_v26 = vmax.f32 %v9983_v63, %v2809_v49  ;;  %v2810_v60 = vmax.f32 %v2764_v62, 0.0 }
 0x2da   :  { %v3160_v17 = vld [vmem:[#allocation2 + $0x9c] sm:$0xff]  ;;  %v3231_v15 = vsel %vm37_vm5, %v10063_v7, %v3213_v57  ;;  %v2986_v56 = vpop.f32.mrf.mxu0 }
 0x2db   :  { %v3178_v52 = vsel %vm40_vm2, %v3142_v19, %v3160_v17  ;;  %v3106_v29 = vld [vmem:[#allocation2 + $0x99] sm:$0xff]  ;;  %v10121_v33 = vmax.f32 %v2825_v24, %v3038_v9  ;;  %v2987_v61 = vadd.f32 %v9933_v28, %v2986_v56  ;;  %v7714_v42 = vpop.f32.mrf.mxu1 }
 0x2dc   :  { %v3196_v45 = vsel %vm39_vm3, %v3124_v27, %v3178_v52  ;;  %v3125_v7 = vld [vmem:[#allocation2 + $0xa2] sm:$0xff]  ;;  %v7733_v31 = vpop.f32.mrf.mxu0 }
 0x2dd   :  { %v3214_v50 = vsel %vm38_vm4, %v3106_v29, %v3196_v45  ;;  %v3143_v14 = vld [vmem:[#allocation2 + $0xa3] sm:$0xff]  ;;  %3074 = vst [vmem:[#allocation2 + $0xb8] sm:$0xff] %v10121_v33  ;;  %v3039_v23 = vmax.f32 %v2987_v61, 0.0  ;;  %v2811_v29 = vmax.f32 %v2767_v2, 0.0  ;;  %v2775_v2 = vadd.f32 %v9933_v28, %v10053_v21 }
 0x2de   :  { %v3161_v35 = vld [vmem:[#allocation2 + $0xa4] sm:$0xff]  ;;  %v3232_v51 = vsel %vm37_vm5, %v10072_v16, %v3214_v50  ;;  %v2989_v36 = vpop.f32.mrf.mxu0  ;;  %v2828_v50 = vmax.f32 %v9990_v12, %v2810_v60 }
 0x2df   :  { %v3179_v55 = vsel %vm40_vm2, %v3143_v14, %v3161_v35  ;;  %3250 = vst [vmem:[#allocation3 + $0x98] sm:$0xff] %v3232_v51  ;;  %v3279_v46 = vpack.c.bf16 %v3232_v51, %v3231_v15  ;;  %v3107_v54 = vld [vmem:[#allocation2 + $0xa1] sm:$0xff]  ;;  %v10137_v1 = vmax.f32 %v2826_v32, %v3039_v23  ;;  %v2990_v48 = vadd.f32 %v9933_v28, %v2989_v36 }
 0x2e0   :  { %v3197_v40 = vsel %vm39_vm3, %v3125_v7, %v3179_v55  ;;  %v3126_v57 = vld [vmem:[#allocation2 + $0xaa] sm:$0xff]  ;;  %v7734_v19 = vpop.f32.mrf.mxu0  ;;  %v2772_v7 = vadd.f32 %v9933_v28, %v10046_v20  ;;  %v2829_v55 = vmax.f32 %v9997_v39, %v2811_v29 }
 0x2e1   :  { %v3215_v16 = vsel %vm38_vm4, %v3107_v54, %v3197_v40  ;;  %v3144_v27 = vld [vmem:[#allocation2 + $0xab] sm:$0xff]  ;;  %7799 = vmatprep.mubr.bf16.mxu0 %v3279_v46  ;;  %3075 = vst [vmem:[#allocation2 + $0xc0] sm:$0xff] %v10137_v1  ;;  %v3040_v58 = vmax.f32 %v2990_v48, 0.0 }
 0x2e2   :  { %v3162_v24 = vld [vmem:[#allocation2 + $0xac] sm:$0xff]  ;;  %v3233_v17 = vsel %vm37_vm5, %v10081_v25, %v3215_v16  ;;  %v2994_v9 = vpop.f32.mrf.mxu0  ;;  %v2812_v48 = vmax.f32 %v2772_v7, 0.0 }
 0x2e3   :  { %v3180_v0 = vsel %vm40_vm2, %v3144_v27, %v3162_v24  ;;  %3251 = vst [vmem:[#allocation3 + $0xa0] sm:$0xff] %v3233_v17  ;;  %v3108_v15 = vld [vmem:[#allocation2 + $0xa9] sm:$0xff]  ;;  %v10153_v56 = vmax.f32 %v2827_v26, %v3040_v58  ;;  %v2995_v63 = vadd.f32 %v9933_v28, %v2994_v9  ;;  %v2780_v58 = vadd.f32 %v9933_v28, %v10061_v43 }
 0x2e4   :  { %v3198_v52 = vsel %vm39_vm3, %v3126_v57, %v3180_v0  ;;  %v3127_v61 = vld [vmem:[#allocation2 + $0xb2] sm:$0xff]  ;;  %v7737_v25 = vpop.f32.mrf.mxu0  ;;  %v8035_v21 = vld [vmem:[%s11519_s3 + $0xe8] sm:$0xff]  }
 0x2e5   :  { %v3216_v45 = vsel %vm38_vm4, %v3108_v15, %v3198_v52  ;;  %v3145_v32 = vld [vmem:[#allocation2 + $0xb3] sm:$0xff]  ;;  %3076 = vst [vmem:[#allocation2 + $0xc8] sm:$0xff] %v10153_v56  ;;  %v3041_v31 = vmax.f32 %v2995_v63, 0.0  ;;  %v2830_v52 = vmax.f32 %v10004_v41, %v2812_v48  ;;  %v2813_v63 = vmax.f32 %v2775_v2, 0.0 }
 0x2e6   :  { %v3163_v14 = vld [vmem:[#allocation2 + $0xb4] sm:$0xff]  ;;  %v10165_v42 = vsel %vm37_vm5, %v10090_v10, %v3216_v45  ;;  %v2997_v62 = vpop.f32.mrf.mxu0 }
 0x2e7   :  { %v3181_v49 = vsel %vm40_vm2, %v3145_v32, %v3163_v14  ;;  %3252 = vst [vmem:[#allocation3 + $0xa8] sm:$0xff] %v10165_v42  ;;  %v3280_v12 = vpack.c.bf16 %v10165_v42, %v3233_v17  ;;  %v8033_v20 = vld [vmem:[%s11519_s3 + $0xf0] sm:$0xff]   ;;  %v10176_v51 = vmax.f32 %v2828_v50, %v3041_v31  ;;  %v2998_v10 = vadd.f32 %v9933_v28, %v2997_v62 }
 0x2e8   :  { %v3109_v35 = vld [vmem:[#allocation2 + $0xb1] sm:$0xff]  ;;  %v3199_v23 = vsel %vm39_vm3, %v3127_v61, %v3181_v49  ;;  %v3128_v46 = vld [vmem:[#allocation2 + $0xba] sm:$0xff]  ;;  %v7738_v40 = vpop.f32.mrf.mxu0 }
 0x2e9   :  { %v3217_v36 = vsel %vm38_vm4, %v3109_v35, %v3199_v23  ;;  %v3146_v54 = vld [vmem:[#allocation2 + $0xbb] sm:$0xff]  ;;  %7800 = vmatmul.mubr.bf16.vlgmr.msra.gmra.mxu0 %v3280_v12  ;;  %3077 = vst [vmem:[#allocation2 + $0xd0] sm:$0xff] %v10176_v51  ;;  %v3042_v39 = vmax.f32 %v2998_v10, 0.0  ;;  %v2814_v12 = vmax.f32 %v2780_v58, 0.0 }
 0x2ea   :  { %v10187_v16 = vsel %vm37_vm5, %v10103_v3, %v3217_v36  ;;  %v3164_v57 = vld [vmem:[#allocation2 + $0xbc] sm:$0xff]  ;;  %7840 = vmatpush3.bf16.msra.mxu0 %v9888_v18  ;;  %v3002_v19 = vpop.f32.mrf.mxu0  ;;  %v3301_v32 = vld [vmem:[#allocation3 + $0x9c] sm:$0xff]  ;;  %v2783_v36 = vadd.f32 %v9933_v28, %v10070_v30 }
 0x2eb   :  { %3253 = vst [vmem:[#allocation3 + $0xb0] sm:$0xff] %v10187_v16  ;;  %v3182_v27 = vsel %vm40_vm2, %v3146_v54, %v3164_v57  ;;  %7841 = vmatprep.subr.bf16.mxu0 %v8033_v20  ;;  %v3605_v3 = vpack.c.bf16 %v10187_v16, %v10165_v42  ;;  %v3110_v26 = vld [vmem:[#allocation2 + $0xb9] sm:$0xff]  ;;  %v10201_v24 = vmax.f32 %v2829_v55, %v3042_v39 }
 0x2ec   :  { %v3200_v60 = vsel %vm39_vm3, %v3128_v46, %v3182_v27  ;;  %v3003_v18 = vadd.f32 %v9933_v28, %v3002_v19  ;;  %v3129_v0 = vld [vmem:[#allocation2 + $0xc2] sm:$0xff]  ;;  %v7741_v15 = vpop.f32.mrf.mxu0  ;;  %v2831_v55 = vmax.f32 %v10011_v11, %v2813_v63  ;;  %v8039_v11 = vld [vmem:[%s11519_s3 + $0xd8] sm:$0xff]   ;;  %v2832_v19 = vmax.f32 %v10018_v38, %v2814_v12 }
 0x2ed   :  { %v3218_v17 = vsel %vm38_vm4, %v3110_v26, %v3200_v60  ;;  %v3147_v9 = vld [vmem:[#allocation2 + $0xc3] sm:$0xff]  ;;  %3078 = vst [vmem:[#allocation2 + $0xd8] sm:$0xff] %v10201_v24  ;;  %v2815_v58 = vmax.f32 %v2783_v36, 0.0 }
 0x2ee   :  { %v10212_v29 = vsel %vm37_vm5, %v10121_v33, %v3218_v17  ;;  %v3165_v45 = vld [vmem:[#allocation2 + $0xc4] sm:$0xff]  ;;  %v3043_v61 = vmax.f32 %v3003_v18, 0.0  ;;  %v3302_v43 = vld [vmem:[#allocation3 + $0xa4] sm:$0xff]  ;;  %7842 = vmatpush3.bf16.msra.mxu0 %v8033_v20  ;;  %v3005_v50 = vpop.f32.mrf.mxu0  ;;  %v2788_v17 = vadd.f32 %v9933_v28, %v10079_v5 }
 0x2ef   :  { %3254 = vst [vmem:[#allocation3 + $0xb8] sm:$0xff] %v10212_v29  ;;  %v3183_v25 = vsel %vm40_vm2, %v3147_v9, %v3165_v45  ;;  %v3313_v41 = vpack.c.bf16 %v3302_v43, %v3301_v32  ;;  %v3281_v7 = vpack.c.bf16 %v10212_v29, %v10187_v16  ;;  %7843 = vmatprep.subr.bf16.mxu0 %v8035_v21  ;;  %v8037_v33 = vld [vmem:[%s11519_s3 + $0xe0] sm:$0xff]   ;;  %v8036_v32 = vld [vmem:[%s11519_s3 + $0xb0] sm:$0xff]   ;;  %v8050_v16 = vld [vmem:[%s11519_s3 + $0x128] sm:$0xff]  }
 0x2f0   :  { %v3111_v14 = vld [vmem:[#allocation2 + $0xc1] sm:$0xff]  ;;  %v3201_v31 = vsel %vm39_vm3, %v3129_v0, %v3183_v25  ;;  %v10225_v49 = vmax.f32 %v2830_v52, %v3043_v61  ;;  %v3006_v62 = vadd.f32 %v9933_v28, %v3005_v50  ;;  %v3130_v35 = vld [vmem:[#allocation2 + $0xca] sm:$0xff]  ;;  %v7742_v10 = vpop.f32.mrf.mxu0  ;;  %v2833_v12 = vmax.f32 %v10025_v6, %v2815_v58 }
 0x2f1   :  { %v3219_v20 = vsel %vm38_vm4, %v3111_v14, %v3201_v31  ;;  %v3148_v23 = vld [vmem:[#allocation2 + $0xcb] sm:$0xff]  ;;  %7771 = vmatprep.mubr.bf16.mxu1 %v3313_v41  ;;  %7803 = vmatprep.mubr.bf16.mxu0 %v3281_v7  ;;  %v2791_v7 = vadd.f32 %v9933_v28, %v10088_v37 }
 0x2f2   :  { %v3166_v46 = vld [vmem:[#allocation2 + $0xcc] sm:$0xff]  ;;  %3079 = vst [vmem:[#allocation2 + $0xe0] sm:$0xff] %v10225_v49  ;;  %v3044_v54 = vmax.f32 %v3006_v62, 0.0  ;;  %v10237_v40 = vsel %vm37_vm5, %v10137_v1, %v3219_v20  ;;  %7844 = vmatpush3.bf16.msra.mxu0 %v8035_v21  ;;  %v3010_v2 = vpop.f32.mrf.mxu0  ;;  %v3303_v15 = vld [vmem:[#allocation3 + $0xac] sm:$0xff]  ;;  %v2816_v20 = vmax.f32 %v2788_v17, 0.0 }
 0x2f3   :  { %v3184_v48 = vsel %vm40_vm2, %v3148_v23, %v3166_v46  ;;  %3255 = vst [vmem:[#allocation3 + $0xc0] sm:$0xff] %v10237_v40  ;;  %7845 = vmatprep.subr.bf16.mxu0 %v8037_v33  ;;  %v3606_v30 = vpack.c.bf16 %v10237_v40, %v10212_v29  ;;  %v3112_v57 = vld [vmem:[#allocation2 + $0xc9] sm:$0xff]  ;;  %v3011_v27 = vadd.f32 %v9933_v28, %v3010_v2  ;;  %v2817_v2 = vmax.f32 %v2791_v7, 0.0  ;;  %v8051_v29 = vld [vmem:[%s11519_s3 + $0x120] sm:$0xff]  }
 0x2f4   :  { %v3202_v1 = vsel %vm39_vm3, %v3130_v35, %v3184_v48  ;;  %v10249_v39 = vmax.f32 %v2831_v55, %v3044_v54  ;;  %v3131_v26 = vld [vmem:[#allocation2 + $0xd2] sm:$0xff]  ;;  %v7745_v18 = vpop.f32.mrf.mxu0  ;;  %v8038_v6 = vld [vmem:[%s11519_s3 + $0xa8] sm:$0xff]  }
 0x2f5   :  { %v3220_v21 = vsel %vm38_vm4, %v3112_v57, %v3202_v1  ;;  %v3149_v60 = vld [vmem:[#allocation2 + $0xd3] sm:$0xff]  ;;  %v3045_v9 = vmax.f32 %v3011_v27, 0.0 }
 0x2f6   :  { %v3167_v0 = vld [vmem:[#allocation2 + $0xd4] sm:$0xff]  ;;  %3080 = vst [vmem:[#allocation2 + $0xe8] sm:$0xff] %v10249_v39  ;;  %v10258_v52 = vld [vmem:[#allocation3 + $0xb4] sm:$0xff]  ;;  %v10263_v38 = vsel %vm37_vm5, %v10153_v56, %v3220_v21  ;;  %7846 = vmatpush3.bf16.msra.mxu0 %v8037_v33  ;;  %v3013_v45 = vpop.f32.mrf.mxu0  ;;  %v2796_v21 = vadd.f32 %v9933_v28, %v10099_v47 }
 0x2f7   :  { %v3185_v63 = vsel %vm40_vm2, %v3149_v60, %v3167_v0  ;;  %v3314_v61 = vpack.c.bf16 %v10258_v52, %v3303_v15  ;;  %3256 = vst [vmem:[#allocation3 + $0xc8] sm:$0xff] %v10263_v38  ;;  %v10271_v5 = vpack.c.bf16 %v10263_v38, %v10237_v40  ;;  %7847 = vmatprep.subr.bf16.mxu0 %v8039_v11  ;;  %v8041_v56 = vld [vmem:[%s11519_s3 + $0xd0] sm:$0xff]   ;;  %v8045_v15 = vld [vmem:[%s11519_s3 + $0xc0] sm:$0xff]   ;;  %v8052_v40 = vld [vmem:[%s11519_s3 + $0x118] sm:$0xff]  }
 0x2f8   :  { %v3113_v43 = vld [vmem:[#allocation2 + $0xd1] sm:$0xff]  ;;  %v3203_v25 = vsel %vm39_vm3, %v3131_v26, %v3185_v63  ;;  %v10281_v50 = vmax.f32 %v2832_v19, %v3045_v9  ;;  %v3014_v41 = vadd.f32 %v9933_v28, %v3013_v45  ;;  %v7746_v62 = vpop.f32.mrf.mxu0  ;;  %v2834_v19 = vmax.f32 %v10032_v44, %v2816_v20  ;;  %v8040_v9 = vld [vmem:[%s11519_s3 + $0xa0] sm:$0xff]  }
 0x2f9   :  { %v3221_v33 = vsel %vm38_vm4, %v3113_v43, %v3203_v25  ;;  %v3132_v14 = vld [vmem:[#allocation2 + $0xda] sm:$0xff]  ;;  %7772 = vmatmul.mubr.bf16.vlgmr.msra.gmra.mxu1 %v3314_v61  ;;  %7804 = vmatmul.mubr.bf16.gmra.mxu0 %v10271_v5 }
 0x2fa   :  { %v3150_v31 = vld [vmem:[#allocation2 + $0xdb] sm:$0xff]  ;;  %v10293_v35 = vsel %vm37_vm5, %v10176_v51, %v3221_v33  ;;  %3081 = vst [vmem:[#allocation2 + $0xf0] sm:$0xff] %v10281_v50  ;;  %v3046_v37 = vmax.f32 %v3014_v41, 0.0  ;;  %7812 = vmatpush3.bf16.msra.mxu1 %v9924_v22  ;;  %7848 = vmatpush3.bf16.msra.mxu0 %v8039_v11  ;;  %v3018_v55 = vpop.f32.mrf.mxu0  ;;  %v8043_v51 = vld [vmem:[%s11519_s3 + $0xc8] sm:$0xff]   ;;  %v2818_v33 = vmax.f32 %v2796_v21, 0.0 }
 0x2fb   :  { %v3168_v23 = vld [vmem:[#allocation2 + $0xdc] sm:$0xff]  ;;  %3257 = vst [vmem:[#allocation3 + $0xd0] sm:$0xff] %v10293_v35  ;;  %7813 = vmatprep.subr.bf16.mxu1 %v8036_v32  ;;  %7849 = vmatprep.subr.bf16.mxu0 %v8041_v56  ;;  %v3607_v22 = vpack.c.bf16 %v10293_v35, %v10263_v38  ;;  %v3019_v48 = vadd.f32 %v9933_v28, %v3018_v55  ;;  %v10324_v58 = vld [vmem:[#allocation3 + $0xbc] sm:$0xff] }
 0x2fc   :  { %v3186_v10 = vsel %vm40_vm2, %v3150_v31, %v3168_v23  ;;  %v3114_v36 = vld [vmem:[#allocation2 + $0xd9] sm:$0xff]  ;;  %v10310_v54 = vmax.f32 %v2833_v12, %v3046_v37  ;;  %v7749_v27 = vpop.f32.mrf.mxu0  ;;  %v8054_v38 = vld [vmem:[%s11519_s3 + $0x108] sm:$0xff]  }
 0x2fd   :  { %v3204_v46 = vsel %vm39_vm3, %v3132_v14, %v3186_v10  ;;  %v3133_v57 = vld [vmem:[#allocation2 + $0xe2] sm:$0xff]  ;;  %v3047_v18 = vmax.f32 %v3019_v48, 0.0  ;;  %v2799_v14 = vadd.f32 %v9933_v28, %v10117_v34  ;;  %v8042_v34 = vld [vmem:[%s11519_s3 + $0x98] sm:$0xff]   ;;  %v2836_v48 = vmax.f32 %v10048_v59, %v2818_v33 }
 0x2fe   :  { %v3222_v11 = vsel %vm38_vm4, %v3114_v36, %v3204_v46  ;;  %v3151_v1 = vld [vmem:[#allocation2 + $0xe3] sm:$0xff]  ;;  %3082 = vst [vmem:[#allocation2 + $0xf8] sm:$0xff] %v10310_v54  ;;  %v10326_v17 = vld [vmem:[#allocation3 + $0xc4] sm:$0xff]  ;;  %7814 = vmatpush3.bf16.msra.mxu1 %v8036_v32  ;;  %7850 = vmatpush3.bf16.msra.mxu0 %v8041_v56  ;;  %v3021_v47 = vpop.f32.mrf.mxu0  ;;  %v2835_v56 = vmax.f32 %v10039_v4, %v2817_v2 }
 0x2ff   :  { %v10321_v26 = vsel %vm37_vm5, %v10201_v24, %v3222_v11  ;;  %v3169_v60 = vld [vmem:[#allocation2 + $0xe4] sm:$0xff]  ;;  %v3315_v24 = vpack.c.bf16 %v10326_v17, %v10324_v58  ;;  %7815 = vmatprep.subr.bf16.mxu1 %v8038_v6  ;;  %7851 = vmatprep.subr.bf16.mxu0 %v8043_v51  ;;  %v10345_v61 = vmax.f32 %v2834_v19, %v3047_v18  ;;  %v2819_v2 = vmax.f32 %v2799_v14, 0.0  ;;  %v8044_v18 = vld [vmem:[%s11519_s3 + $0x90] sm:$0xff]  }
 0x300   :  { %3258 = vst [vmem:[#allocation3 + $0xd8] sm:$0xff] %v10321_v26  ;;  %v3187_v44 = vsel %vm40_vm2, %v3151_v1, %v3169_v60  ;;  %v10335_v0 = vpack.c.bf16 %v10321_v26, %v10293_v35  ;;  %v3115_v63 = vld [vmem:[#allocation2 + $0xe1] sm:$0xff]  ;;  %v3022_v32 = vadd.f32 %v9933_v28, %v3021_v47  ;;  %v7750_v7 = vpop.f32.mrf.mxu0 }
 0x301   :  { %v3205_v45 = vsel %vm39_vm3, %v3133_v57, %v3187_v44  ;;  %v3134_v25 = vld [vmem:[#allocation2 + $0xea] sm:$0xff]  ;;  %7775 = vmatprep.mubr.bf16.mxu1 %v3315_v24  ;;  %3083 = vst [vmem:[#allocation2 + $0x100] sm:$0xff] %v10345_v61  ;;  %v8466_v24 = vld [vmem:[%s11518_s2] ss:$0 sm:$0xff] }
 0x302   :  { %v3223_v43 = vsel %vm38_vm4, %v3115_v63, %v3205_v45  ;;  %v3152_v41 = vld [vmem:[#allocation2 + $0xeb] sm:$0xff]  ;;  %7807 = vmatprep.mubr.bf16.mxu0 %v10335_v0  ;;  %v3048_v62 = vmax.f32 %v3022_v32, 0.0  ;;  %7816 = vmatpush3.bf16.msra.mxu1 %v8038_v6  ;;  %v3026_v20 = vpop.f32.mrf.mxu0  ;;  %v3307_v1 = vld [vmem:[#allocation3 + $0xcc] sm:$0xff]  ;;  %v8055_v35 = vld [vmem:[%s11519_s3 + $0x100] sm:$0xff]  }
 0x303   :  { %v3170_v31 = vld [vmem:[#allocation2 + $0xec] sm:$0xff]  ;;  %v10358_v4 = vsel %vm37_vm5, %v10225_v49, %v3223_v43  ;;  %7852 = vmatpush3.bf16.msra.mxu0 %v8043_v51  ;;  %7817 = vmatprep.subr.bf16.mxu1 %v8040_v9  ;;  %v3027_v55 = vadd.f32 %v9933_v28, %v3026_v20  ;;  %v2837_v43 = vmax.f32 %v10055_v13, %v2819_v2 }
 0x304   :  { %v3188_v12 = vsel %vm40_vm2, %v3152_v41, %v3170_v31  ;;  %3259 = vst [vmem:[#allocation3 + $0xe0] sm:$0xff] %v10358_v4  ;;  %7853 = vmatprep.subr.bf16.mxu0 %v8045_v15  ;;  %v3608_v23 = vpack.c.bf16 %v10358_v4, %v10321_v26  ;;  %v3116_v37 = vld [vmem:[#allocation2 + $0xe9] sm:$0xff]  ;;  %v10370_v10 = vmax.f32 %v2835_v56, %v3048_v62  ;;  %v7753_v46 = vpop.f32.mrf.mxu0 }
 0x305   :  { %v3206_v49 = vsel %vm39_vm3, %v3134_v25, %v3188_v12  ;;  %v3135_v51 = vld [vmem:[#allocation2 + $0xf2] sm:$0xff]  ;;  %v3049_v57 = vmax.f32 %v3027_v55, 0.0  ;;  %v8046_v13 = vld [vmem:[%s11519_s3 + $0x88] sm:$0xff]  }
 0x306   :  { %v3224_v6 = vsel %vm38_vm4, %v3116_v37, %v3206_v49  ;;  %v3153_v36 = vld [vmem:[#allocation2 + $0xf3] sm:$0xff]  ;;  %3084 = vst [vmem:[#allocation2 + $0x108] sm:$0xff] %v10370_v10  ;;  %7818 = vmatpush3.bf16.msra.mxu1 %v8040_v9  ;;  %v3029_v21 = vpop.f32.mrf.mxu0 }
 0x307   :  { %v3171_v11 = vld [vmem:[#allocation2 + $0xf4] sm:$0xff]  ;;  %v10377_v27 = vld [vmem:[#allocation3 + $0xd4] sm:$0xff]  ;;  %v10382_v28 = vsel %vm37_vm5, %v10249_v39, %v3224_v6  ;;  %7854 = vmatpush3.bf16.msra.mxu0 %v8045_v15  ;;  %7819 = vmatprep.subr.bf16.mxu1 %v8042_v34  ;;  %v10397_v47 = vmax.f32 %v2836_v48, %v3049_v57  ;;  %v3030_v9 = vadd.f32 %v8466_v24, %v3029_v21 }
 0x308   :  { %v3189_v19 = vsel %vm40_vm2, %v3153_v36, %v3171_v11  ;;  %v3316_v59 = vpack.c.bf16 %v10377_v27, %v3307_v1  ;;  %3260 = vst [vmem:[#allocation3 + $0xe8] sm:$0xff] %v10382_v28  ;;  %v10390_v60 = vpack.c.bf16 %v10382_v28, %v10358_v4  ;;  %v3117_v39 = vld [vmem:[#allocation2 + $0xf1] sm:$0xff]  ;;  %v3780_v15 = vpack.c.bf16 %v10324_v58, %v10258_v52  ;;  %v3136_v45 = vld [vmem:[#allocation2 + $0xfa] sm:$0xff]  ;;  %v7754_v56 = vpop.f32.mrf.mxu0  ;;  %v8064_v4 = vld [vmem:[%s11521_s5 + $0x64] ss:$8 sps:$4 sm:$0xff]  }
 0x309   :  { %v3207_v44 = vsel %vm39_vm3, %v3135_v51, %v3189_v19  ;;  %v3154_v32 = vld [vmem:[#allocation2 + $0xfb] sm:$0xff]  ;;  %3085 = vst [vmem:[#allocation2 + $0x110] sm:$0xff] %v10397_v47  ;;  %v3050_v52 = vmax.f32 %v3030_v9, 0.0  ;;  %v3781_v51 = vpack.c.bf16 %v3307_v1, %v10326_v17 }
 0x30a   :  { %v3225_v63 = vsel %vm38_vm4, %v3117_v39, %v3207_v44  ;;  %7776 = vmatmul.mubr.bf16.gmra.mxu1 %v3316_v59  ;;  %7808 = vmatmul.mubr.bf16.gmra.mxu0 %v10390_v60  ;;  %v3172_v41 = vld [vmem:[#allocation2 + $0xfc] sm:$0xff]  ;;  %v8056_v26 = vld [vmem:[%s11521_s5 + $0x70] ss:$8 sps:$4 sm:$0xff]  }
 0x30b   :  { %v10411_v25 = vsel %vm37_vm5, %v10281_v50, %v3225_v63  ;;  %7820 = vmatpush3.bf16.msra.mxu1 %v8042_v34  ;;  %7855 = vmatprep.mubr.bf16.mxu0 %v3780_v15  ;;  %v3190_v58 = vsel %vm40_vm2, %v3154_v32, %v3172_v41  ;;  %v3118_v7 = vld [vmem:[#allocation2 + $0xf9] sm:$0xff]  ;;  %v10424_v14 = vmax.f32 %v2837_v43, %v3050_v52  ;;  %v3309_v20 = vld [vmem:[#allocation3 + $0xdc] sm:$0xff] }
 0x30c   :  { %3261 = vst [vmem:[#allocation3 + $0xf0] sm:$0xff] %v10411_v25  ;;  %7821 = vmatprep.subr.bf16.mxu1 %v8044_v18  ;;  %v3609_v50 = vpack.c.bf16 %v10411_v25, %v10382_v28  ;;  %v3208_v33 = vsel %vm39_vm3, %v3136_v45, %v3190_v58  ;;  %v8047_v36 = vld [vmem:[%s11519_s3 + $0x80] sm:$0xff]   ;;  %v3782_v2 = vpack.c.bf16 %v3309_v20, %v10377_v27  ;;  %v8048_v27 = vld [vmem:[%s11519_s3 + $0x138] sm:$0xff]  }
 0x30d   :  { %v3226_v31 = vsel %vm38_vm4, %v3118_v7, %v3208_v33  ;;  %v3137_v62 = vld [vmem:[#allocation2 + $0x102] sm:$0xff]  ;;  %3086 = vst [vmem:[#allocation2 + $0x118] sm:$0xff] %v10424_v14 }
 0x30e   :  { %v3155_v12 = vld [vmem:[#allocation2 + $0x103] sm:$0xff]  ;;  %v10431_v34 = vsel %vm37_vm5, %v10310_v54, %v3226_v31 }
 0x30f   :  { %v3173_v37 = vld [vmem:[#allocation2 + $0x104] sm:$0xff]  ;;  %v3310_v49 = vld [vmem:[#allocation3 + $0xe4] sm:$0xff]  ;;  %7822 = vmatpush3.bf16.msra.mxu1 %v8044_v18  ;;  %3262 = vst [vmem:[#allocation3 + $0xf8] sm:$0xff] %v10431_v34  ;;  %v3958_v54 = vpack.c.bf16 %v10431_v34, %v10411_v25  ;;  %v8070_v25 = vld [vmem:[%s11521_s5 + $0x54] ss:$8 sps:$4 sm:$0xff]  }
 0x310   :  { %v3191_v55 = vsel %vm40_vm2, %v3155_v12, %v3173_v37  ;;  %v3317_v6 = vpack.c.bf16 %v3310_v49, %v3309_v20  ;;  %7823 = vmatprep.subr.bf16.mxu1 %v8046_v13  ;;  %v3119_v46 = vld [vmem:[#allocation2 + $0x101] sm:$0xff]  ;;  %v3138_v57 = vld [vmem:[#allocation2 + $0x10a] sm:$0xff] }
 0x311   :  { %v3209_v48 = vsel %vm39_vm3, %v3137_v62, %v3191_v55  ;;  %v3156_v19 = vld [vmem:[#allocation2 + $0x10b] sm:$0xff] }
 0x312   :  { %v3227_v11 = vsel %vm38_vm4, %v3119_v46, %v3209_v48  ;;  %7779 = vmatprep.mubr.bf16.mxu1 %v3317_v6  ;;  %7856 = vmatmul.mubr.bf16.vlgmr.msra.gmra.mxu0 %v3781_v51  ;;  %v3174_v17 = vld [vmem:[#allocation2 + $0x10c] sm:$0xff]  ;;  %v8062_v28 = vld [vmem:[%s11521_s5 + $0x60] ss:$8 sps:$4 sm:$0xff]  }
 0x313   :  { %7824 = vmatpush3.bf16.msra.mxu1 %v8046_v13  ;;  %7859 = vmatprep.mubr.bf16.mxu0 %v3782_v2  ;;  %v10451_v1 = vsel %vm37_vm5, %v10345_v61, %v3227_v11  ;;  %v3192_v21 = vsel %vm40_vm2, %v3156_v19, %v3174_v17  ;;  %v3120_v18 = vld [vmem:[#allocation2 + $0x109] sm:$0xff]  ;;  %v3311_v44 = vld [vmem:[#allocation3 + $0xec] sm:$0xff] }
 0x314   :  { %7825 = vmatprep.subr.bf16.mxu1 %v8047_v36  ;;  %3263 = vst [vmem:[#allocation3 + $0x100] sm:$0xff] %v10451_v1  ;;  %v3610_v59 = vpack.c.bf16 %v10451_v1, %v10431_v34  ;;  %v3210_v39 = vsel %vm39_vm3, %v3138_v57, %v3192_v21  ;;  %v3139_v24 = vld [vmem:[#allocation2 + $0x112] sm:$0xff]  ;;  %v3140_v15 = vld [vmem:[#allocation2 + $0x11a] sm:$0xff]  ;;  %v3783_v41 = vpack.c.bf16 %v3311_v44, %v3310_v49  ;;  %v8079_v46 = vld [vmem:[%s11521_s5 + $0x144] ss:$8 sps:$4 sm:$0xff]  }
 0x315   :  { %v3228_v61 = vsel %vm38_vm4, %v3120_v18, %v3210_v39  ;;  %v3157_v63 = vld [vmem:[#allocation2 + $0x113] sm:$0xff]  ;;  %v3158_v45 = vld [vmem:[#allocation2 + $0x11b] sm:$0xff]  ;;  %v8088_v21 = vld [vmem:[%s11521_s5 + $0x24] ss:$8 sps:$4 sm:$0xff]  }
 0x316   :  { %v10468_v9 = vsel %vm37_vm5, %v10370_v10, %v3228_v61  ;;  %v3175_v32 = vld [vmem:[#allocation2 + $0x114] sm:$0xff]  ;;  %v3176_v56 = vld [vmem:[#allocation2 + $0x11c] sm:$0xff] }
 0x317   :  { %7826 = vmatpush3.bf16.msra.mxu1 %v8047_v36  ;;  %3264 = vst [vmem:[#allocation3 + $0x108] sm:$0xff] %v10468_v9  ;;  %v3312_v43 = vld [vmem:[#allocation3 + $0xf4] sm:$0xff]  ;;  %v3959_v52 = vpack.c.bf16 %v10468_v9, %v10451_v1  ;;  %v3193_v58 = vsel %vm40_vm2, %v3157_v63, %v3175_v32  ;;  %v3194_v10 = vsel %vm40_vm2, %v3158_v45, %v3176_v56  ;;  %v3121_v7 = vld [vmem:[#allocation2 + $0x111] sm:$0xff]  ;;  %v8103_v9 = vld [vmem:[%s11521_s5 + $0x104] ss:$8 sps:$4 sm:$0xff]  }
 0x318   :  { %7867 = vmatprep.subr.bf16.mxu1 %v8048_v27  ;;  %v3318_v13 = vpack.c.bf16 %v3312_v43, %v3311_v44  ;;  %v3122_v33 = vld [vmem:[#allocation2 + $0x119] sm:$0xff]  ;;  %v3211_v31 = vsel %vm39_vm3, %v3139_v24, %v3193_v58  ;;  %v3212_v62 = vsel %vm39_vm3, %v3140_v15, %v3194_v10  ;;  %v8049_v36 = vld [vmem:[%s11519_s3 + $0x130] sm:$0xff]   ;;  %v8100_v24 = vld [vmem:[%s11521_s5 + $0x4] ss:$8 sps:$4 sm:$0xff]  }
 0x319   :  { %v3229_v12 = vsel %vm38_vm4, %v3121_v7, %v3211_v31  ;;  %v3230_v20 = vsel %vm38_vm4, %v3122_v33, %v3212_v62  ;;  %v8071_v34 = vld [vmem:[%s11521_s5 + $0x150] ss:$8 sps:$4 sm:$0xff]   ;;  %v8074_v48 = vld [vmem:[%s11521_s5 + $0x40] ss:$8 sps:$4 sm:$0xff]   ;;  %v8082_v11 = vld [vmem:[%s11521_s5 + $0x34] ss:$8 sps:$4 sm:$0xff]  }
 0x31a   :  { %7860 = vmatmul.mubr.bf16.gmra.mxu0 %v3783_v41  ;;  %7780 = vmatmul.mubr.bf16.gmra.mxu1 %v3318_v13  ;;  %v3247_v49 = vsel %vm37_vm5, %v10397_v47, %v3229_v12  ;;  %v3248_v55 = vsel %vm37_vm5, %v10424_v14, %v3230_v20  ;;  %v8068_v14 = vld [vmem:[%s11521_s5 + $0x50] ss:$8 sps:$4 sm:$0xff]   ;;  %v8077_v2 = vld [vmem:[%s11521_s5 + $0x140] ss:$8 sps:$4 sm:$0xff]   ;;  %v8085_v57 = vld [vmem:[%s11521_s5 + $0x134] ss:$8 sps:$4 sm:$0xff]  }
 0x31b   :  { %v3777_v37 = vld [vmem:[#allocation3 + $0xfc] sm:$0xff]  ;;  %7827 = vmatprep.mubr.bf16.mxu1 %v3605_v3  ;;  %3265 = vst [vmem:[#allocation3 + $0x110] sm:$0xff] %v3247_v49  ;;  %v3960_v51 = vpack.c.bf16 %v3248_v55, %v3247_v49  ;;  %v8080_v19 = vld [vmem:[%s11521_s5 + $0x30] ss:$8 sps:$4 sm:$0xff]   ;;  %v8094_v18 = vld [vmem:[%s11521_s5 + $0x14] ss:$8 sps:$4 sm:$0xff]  }
 0x31c   :  { %v3784_v6 = vpack.c.bf16 %v3777_v37, %v3312_v43  ;;  %v8083_v17 = vld [vmem:[%s11521_s5 + $0x130] ss:$8 sps:$4 sm:$0xff]   ;;  %v8086_v1 = vld [vmem:[%s11521_s5 + $0x20] ss:$8 sps:$4 sm:$0xff]   ;;  %v8097_v39 = vld [vmem:[%s11521_s5 + $0x114] ss:$8 sps:$4 sm:$0xff]  }
 0x31d   :  { %v8092_v44 = vld [vmem:[%s11521_s5 + $0x10] ss:$8 sps:$4 sm:$0xff]   ;;  %v8098_v15 = vld [vmem:[%s11521_s5] ss:$8 sps:$4 sm:$0xff]   ;;  %v8106_v45 = vld [vmem:[%s11521_s5 + $0xf4] ss:$8 sps:$4 sm:$0xff]  }
 0x31e   :  { %7863 = vmatprep.mubr.bf16.mxu0 %v3784_v6  ;;  %v3778_v47 = vld [vmem:[#allocation3 + $0x104] sm:$0xff]  ;;  %v8101_v63 = vld [vmem:[%s11521_s5 + $0x100] ss:$8 sps:$4 sm:$0xff]   ;;  %v8109_v32 = vld [vmem:[%s11521_s5 + $0x1f4] ss:$8 sps:$4 sm:$0xff]  }
 0x31f   :  { %v8095_v61 = vld [vmem:[%s11521_s5 + $0x110] ss:$8 sps:$4 sm:$0xff]   ;;  %v8112_v41 = vld [vmem:[%s11521_s5 + $0xe4] ss:$8 sps:$4 sm:$0xff]   ;;  %v8110_v58 = vld [vmem:[%s11521_s5 + $0xe0] ss:$8 sps:$4 sm:$0xff]  }
 0x320   :  { %v8104_v56 = vld [vmem:[%s11521_s5 + $0xf0] ss:$8 sps:$4 sm:$0xff]   ;;  %v8113_v10 = vld [vmem:[%s11521_s5 + $0x1e0] ss:$8 sps:$4 sm:$0xff]   ;;  %v8118_v13 = vld [vmem:[%s11521_s5 + $0xd4] ss:$8 sps:$4 sm:$0xff]  }
 0x321   :  { %v8107_v43 = vld [vmem:[%s11521_s5 + $0x1f0] ss:$8 sps:$4 sm:$0xff]   ;;  %v8121_v7 = vld [vmem:[%s11521_s5 + $0x1d4] ss:$8 sps:$4 sm:$0xff]   ;;  %v8124_v62 = vld [vmem:[%s11521_s5 + $0xc4] ss:$8 sps:$4 sm:$0xff]  }
 0x322   :  { %7828 = vmatmul.mubr.bf16.vlgmr.msra.gmra.mxu1 %v3606_v30  ;;  %v3779_v42 = vld [vmem:[#allocation3 + $0x10c] sm:$0xff]  ;;  %v8127_v12 = vld [vmem:[%s11521_s5 + $0x1c4] ss:$8 sps:$4 sm:$0xff]   ;;  %v8122_v20 = vld [vmem:[%s11521_s5 + $0xc0] ss:$8 sps:$4 sm:$0xff]  }
 0x323   :  { %7868 = vmatpush3.bf16.msra.mxu1 %v8048_v27  ;;  %7831 = vmatprep.mubr.bf16.mxu1 %v3607_v22  ;;  %v3785_v3 = vpack.c.bf16 %v3779_v42, %v3778_v47  ;;  %v8053_v30 = vld [vmem:[%s11519_s3 + $0x110] sm:$0xff]   ;;  %v8089_v27 = vld [vmem:[%s11521_s5 + $0x120] ss:$8 sps:$4 sm:$0xff]   ;;  %v8139_v47 = vld [vmem:[%s11521_s5 + $0x1a4] ss:$8 sps:$4 sm:$0xff]  }
 0x324   :  { %7869 = vmatprep.subr.bf16.mxu1 %v8049_v36  ;;  %v8061_v22 = vld [vmem:[%s11521_s5 + $0x174] ss:$8 sps:$4 sm:$0xff]   ;;  %v8116_v33 = vld [vmem:[%s11521_s5 + $0xd0] ss:$8 sps:$4 sm:$0xff]   ;;  %v8125_v37 = vld [vmem:[%s11521_s5 + $0x1c0] ss:$8 sps:$4 sm:$0xff]  }
 0x325   :  { %7864 = vmatmul.mubr.bf16.gmra.mxu0 %v3785_v3  ;;  %v8119_v31 = vld [vmem:[%s11521_s5 + $0x1d0] ss:$8 sps:$4 sm:$0xff]   ;;  %v8130_v49 = vld [vmem:[%s11521_s5 + $0xb4] ss:$8 sps:$4 sm:$0xff]   ;;  %v8134_v42 = vld [vmem:[%s11521_s5 + $0xa0] ss:$8 sps:$4 sm:$0xff]  }
 0x326   :  { %v8133_v55 = vld [vmem:[%s11521_s5 + $0x1b4] ss:$8 sps:$4 sm:$0xff]   ;;  %v8128_v6 = vld [vmem:[%s11521_s5 + $0xb0] ss:$8 sps:$4 sm:$0xff]  }
 0x327   :  { %7870 = vmatpush3.bf16.msra.mxu1 %v8049_v36  ;;  %v8136_v36 = vld [vmem:[%s11521_s5 + $0xa4] ss:$8 sps:$4 sm:$0xff]   ;;  %v8142_v3 = vld [vmem:[%s11521_s5 + $0x94] ss:$8 sps:$4 sm:$0xff]  }
 0x328   :  { %7871 = vmatprep.subr.bf16.mxu1 %v8050_v16 }
 0x32a   :  { %7832 = vmatmul.mubr.bf16.gmra.mxu1 %v3608_v23  ;;  %v8067_v23 = vld [vmem:[%s11521_s5 + $0x164] ss:$8 sps:$4 sm:$0xff]  }
 0x32b   :  { %7872 = vmatpush3.bf16.msra.mxu1 %v8050_v16  ;;  %7835 = vmatprep.mubr.bf16.mxu1 %v3609_v50  ;;  %v8073_v50 = vld [vmem:[%s11521_s5 + $0x154] ss:$8 sps:$4 sm:$0xff]   ;;  %v8137_v16 = vld [vmem:[%s11521_s5 + $0x1a0] ss:$8 sps:$4 sm:$0xff]  }
 0x32c   :  { %7873 = vmatprep.subr.bf16.mxu1 %v8051_v29 }
 0x32f   :  { %7874 = vmatpush3.bf16.msra.mxu1 %v8051_v29  ;;  %v8145_v29 = vld [vmem:[%s11521_s5 + $0x194] ss:$8 sps:$4 sm:$0xff]  }
 0x330   :  { %7875 = vmatprep.subr.bf16.mxu1 %v8052_v40 }
 0x332   :  { %7836 = vmatmul.mubr.bf16.gmra.mxu1 %v3610_v59  ;;  %v8091_v59 = vld [vmem:[%s11521_s5 + $0x124] ss:$8 sps:$4 sm:$0xff]  }
 0x333   :  { %7876 = vmatpush3.bf16.msra.mxu1 %v8052_v40  ;;  %7883 = vmatprep.mubr.bf16.mxu1 %v10271_v5  ;;  %v8058_v5 = vld [vmem:[%s11521_s5 + $0x74] ss:$8 sps:$4 sm:$0xff]   ;;  %v8140_v40 = vld [vmem:[%s11521_s5 + $0x90] ss:$8 sps:$4 sm:$0xff]  }
 0x334   :  { %7877 = vmatprep.subr.bf16.mxu1 %v8053_v30  ;;  %5879 = vmatprep.subr.bf16.mxu0 %v8058_v5  ;;  %v8146_v5 = vld [vmem:[%s11521_s5 + $0x80] ss:$8 sps:$4 sm:$0xff]  }
 0x335   :  { %5880 = vmatpush1.bf16.msra.mxu0 %v8056_v26  ;;  %v8154_v26 = vld [vmem:[%s11521_s5 + $0x274] ss:$8 sps:$4 sm:$0xff]  }
 0x336   :  { %5881 = vmatprep.subr.bf16.mxu0 %v8064_v4 }
 0x337   :  { %7878 = vmatpush3.bf16.msra.mxu1 %v8053_v30  ;;  %v8143_v30 = vld [vmem:[%s11521_s5 + $0x190] ss:$8 sps:$4 sm:$0xff]  }
 0x338   :  { %7879 = vmatprep.subr.bf16.mxu1 %v8054_v38 }
 0x339   :  { %5882 = vmatpush1.bf16.msra.mxu0 %v8062_v28 }
 0x33a   :  { %5883 = vmatprep.subr.bf16.mxu0 %v8070_v25 }
 0x33b   :  { %7880 = vmatpush3.bf16.msra.mxu1 %v8054_v38  ;;  %v8148_v38 = vld [vmem:[%s11521_s5 + $0x84] ss:$8 sps:$4 sm:$0xff]  }
 0x33c   :  { %7881 = vmatprep.subr.bf16.mxu1 %v8055_v35 }
 0x33d   :  { %5884 = vmatpush1.bf16.msra.mxu0 %v8068_v14 }
 0x33f   :  { %7882 = vmatpush3.bf16.msra.mxu1 %v8055_v35  ;;  %v8151_v35 = vld [vmem:[%s11521_s5 + $0x184] ss:$8 sps:$4 sm:$0xff]  }
 0x340   :  { %5920 = vmatprep.subr.bf16.mxu1 %v8061_v22  ;;  %v8149_v22 = vld [vmem:[%s11521_s5 + $0x180] ss:$8 sps:$4 sm:$0xff]  }
 0x342   :  { %7884 = vmatmul.mubr.bf16.vlgmr.msra.gmra.mxu1 %v10335_v0  ;;  %v8059_v0 = vld [vmem:[%s11521_s5 + $0x170] ss:$8 sps:$4 sm:$0xff]  }
 0x343   :  { %7887 = vmatprep.mubr.bf16.mxu1 %v10390_v60  ;;  %5921 = vmatpush1.bf16.msra.mxu1 %v8059_v0  ;;  %v8065_v60 = vld [vmem:[%s11521_s5 + $0x160] ss:$8 sps:$4 sm:$0xff]   ;;  %v8157_v0 = vld [vmem:[%s11521_s5 + $0x374] ss:$8 sps:$4 sm:$0xff]  }
 0x344   :  { %5922 = vmatprep.subr.bf16.mxu1 %v8067_v23 }
 0x347   :  { %5923 = vmatpush1.bf16.msra.mxu1 %v8065_v60 }
 0x348   :  { %5924 = vmatprep.subr.bf16.mxu1 %v8073_v50 }
 0x34a   :  { %7888 = vmatmul.mubr.bf16.gmra.mxu1 %v3958_v54  ;;  %v8076_v54 = vld [vmem:[%s11521_s5 + $0x44] ss:$8 sps:$4 sm:$0xff]  }
 0x34b   :  { %7891 = vmatprep.mubr.bf16.mxu1 %v3959_v52  ;;  %5925 = vmatpush1.bf16.msra.mxu1 %v8071_v34  ;;  %v8115_v52 = vld [vmem:[%s11521_s5 + $0x1e4] ss:$8 sps:$4 sm:$0xff]  }
 0x34c   :  { %5885 = vmatprep.subr.bf16.mxu0 %v8076_v54  ;;  %5926 = vmatprep.subr.bf16.mxu1 %v8079_v46 }
 0x34d   :  { %5886 = vmatpush1.bf16.msra.mxu0 %v8074_v48 }
 0x34e   :  { %5887 = vmatprep.subr.bf16.mxu0 %v8082_v11 }
 0x34f   :  { %5927 = vmatpush1.bf16.msra.mxu1 %v8077_v2 }
 0x350   :  { %5928 = vmatprep.subr.bf16.mxu1 %v8085_v57 }
 0x351   :  { %5888 = vmatpush1.bf16.msra.mxu0 %v8080_v19 }
 0x352   :  { %7892 = vmatmul.mubr.bf16.gmra.mxu1 %v3960_v51  ;;  %5889 = vmatprep.subr.bf16.mxu0 %v8088_v21  ;;  %v8131_v51 = vld [vmem:[%s11521_s5 + $0x1b0] ss:$8 sps:$4 sm:$0xff]  }
 0x353   :  { %5929 = vmatpush1.bf16.msra.mxu1 %v8083_v17 }
 0x354   :  { %5930 = vmatprep.subr.bf16.mxu1 %v8091_v59 }
 0x355   :  { %5890 = vmatpush1.bf16.msra.mxu0 %v8086_v1 }
 0x356   :  { %5891 = vmatprep.subr.bf16.mxu0 %v8094_v18 }
 0x357   :  { %5931 = vmatpush1.bf16.msra.mxu1 %v8089_v27 }
 0x358   :  { %5932 = vmatprep.subr.bf16.mxu1 %v8097_v39 }
 0x359   :  { %5892 = vmatpush1.bf16.msra.mxu0 %v8092_v44 }
 0x35a   :  { %5893 = vmatprep.subr.bf16.mxu0 %v8100_v24 }
 0x35b   :  { %5933 = vmatpush1.bf16.msra.mxu1 %v8095_v61 }
 0x35c   :  { %5934 = vmatprep.subr.bf16.mxu1 %v8103_v9 }
 0x35d   :  { %5894 = vmatpush1.bf16.msra.mxu0 %v8098_v15 }
 0x35e   :  { %5895 = vmatprep.subr.bf16.mxu0 %v8106_v45 }
 0x35f   :  { %5935 = vmatpush1.bf16.msra.mxu1 %v8101_v63 }
 0x360   :  { %5936 = vmatprep.subr.bf16.mxu1 %v8109_v32 }
 0x361   :  { %5896 = vmatpush2.bf16.msra.mxu0 %v8104_v56 }
 0x362   :  { %5897 = vmatprep.subr.bf16.mxu0 %v8112_v41 }
 0x363   :  { %5937 = vmatpush2.bf16.msra.mxu1 %v8107_v43 }
 0x364   :  { %5938 = vmatprep.subr.bf16.mxu1 %v8115_v52 }
 0x365   :  { %5898 = vmatpush2.bf16.msra.mxu0 %v8110_v58 }
 0x366   :  { %5899 = vmatprep.subr.bf16.mxu0 %v8118_v13 }
 0x367   :  { %5939 = vmatpush2.bf16.msra.mxu1 %v8113_v10 }
 0x368   :  { %5940 = vmatprep.subr.bf16.mxu1 %v8121_v7 }
 0x369   :  { %5900 = vmatpush2.bf16.msra.mxu0 %v8116_v33 }
 0x36a   :  { %5901 = vmatprep.subr.bf16.mxu0 %v8124_v62 }
 0x36b   :  { %5941 = vmatpush2.bf16.msra.mxu1 %v8119_v31 }
 0x36c   :  { %5942 = vmatprep.subr.bf16.mxu1 %v8127_v12 }
 0x36d   :  { %5902 = vmatpush2.bf16.msra.mxu0 %v8122_v20 }
 0x36e   :  { %5903 = vmatprep.subr.bf16.mxu0 %v8130_v49 }
 0x36f   :  { %5943 = vmatpush2.bf16.msra.mxu1 %v8125_v37 }
 0x370   :  { %5944 = vmatprep.subr.bf16.mxu1 %v8133_v55 }
 0x371   :  { %5904 = vmatpush2.bf16.msra.mxu0 %v8128_v6 }
 0x372   :  { %5905 = vmatprep.subr.bf16.mxu0 %v8136_v36 }
 0x373   :  { %5945 = vmatpush2.bf16.msra.mxu1 %v8131_v51 }
 0x374   :  { %5946 = vmatprep.subr.bf16.mxu1 %v8139_v47 }
 0x375   :  { %5906 = vmatpush2.bf16.msra.mxu0 %v8134_v42 }
 0x376   :  { %5907 = vmatprep.subr.bf16.mxu0 %v8142_v3 }
 0x377   :  { %5947 = vmatpush2.bf16.msra.mxu1 %v8137_v16 }
 0x378   :  { %5948 = vmatprep.subr.bf16.mxu1 %v8145_v29 }
 0x379   :  { %5908 = vmatpush2.bf16.msra.mxu0 %v8140_v40 }
 0x37a   :  { %5909 = vmatprep.subr.bf16.mxu0 %v8148_v38 }
 0x37b   :  { %5949 = vmatpush2.bf16.msra.mxu1 %v8143_v30 }
 0x37c   :  { %5950 = vmatprep.subr.bf16.mxu1 %v8151_v35 }
 0x37d   :  { %5910 = vmatpush2.bf16.msra.mxu0 %v8146_v5 }
 0x37e   :  { %5961 = vmatprep.subr.bf16.mxu0 %v8154_v26 }
 0x37f   :  { %5951 = vmatpush2.bf16.msra.mxu1 %v8149_v22  ;;  %v10756_v22 = vld [vmem:[%s11520_s4] ss:$0 sm:$0xff] }
 0x380   :  { %6002 = vmatprep.subr.bf16.mxu1 %v8157_v0 }
 0x3a9   :  { %v7801_v23 = vpop.f32.mrf.mxu0 }
 0x3ab   :  { %v3546_v60 = vpop.f32.mrf.mxu0 }
 0x3ad   :  { %v7802_v50 = vpop.f32.mrf.mxu0 }
 0x3af   :  { %v3549_v34 = vpop.f32.mrf.mxu0 }
 0x3b9   :  { %v7773_v4 = vpop.f32.mrf.mxu1  ;;  %v7805_v46 = vpop.f32.mrf.mxu0 }
 0x3ba   :  { %v3555_v33 = vadd.f32 %v7801_v23, %v7773_v4 }
 0x3bb   :  { %v3417_v28 = vpop.f32.mrf.mxu1  ;;  %v3562_v2 = vpop.f32.mrf.mxu0 }
 0x3bc   :  { %v3547_v12 = vadd.f32 %v3546_v60, %v3417_v28 }
 0x3bd   :  { %v7774_v25 = vpop.f32.mrf.mxu1  ;;  %v7806_v57 = vpop.f32.mrf.mxu0 }
 0x3be   :  { %v3558_v37 = vadd.f32 %v7802_v50, %v7774_v25 }
 0x3bf   :  { %v3420_v14 = vpop.f32.mrf.mxu1  ;;  %v3565_v17 = vpop.f32.mrf.mxu0 }
 0x3c0   :  { %v3550_v6 = vadd.f32 %v3549_v34, %v3420_v14 }
 0x3ca   :  { %v7777_v54 = vpop.f32.mrf.mxu1  ;;  %v10733_v21 = vpop.f32.mrf.mxu0 }
 0x3cb   :  { %v3571_v42 = vadd.f32 %v7805_v46, %v7777_v54 }
 0x3cc   :  { %v3433_v48 = vpop.f32.mrf.mxu1  ;;  %v10739_v18 = vpop.f32.mrf.mxu0 }
 0x3cd   :  { %v3563_v5 = vadd.f32 %v3562_v2, %v3433_v48 }
 0x3ce   :  { %v7778_v11 = vpop.f32.mrf.mxu1  ;;  %v10743_v61 = vpop.f32.mrf.mxu0 }
 0x3cf   :  { %v3574_v23 = vadd.f32 %v7806_v57, %v7778_v11 }
 0x3d0   :  { %v3436_v19 = vpop.f32.mrf.mxu1  ;;  %v10745_v15 = vpop.f32.mrf.mxu0 }
 0x3d1   :  { %v3566_v46 = vadd.f32 %v3565_v17, %v3436_v19 }
 0x3d2   :  { %v7857_v32 = vpop.f32.mrf.mxu0 }
 0x3d4   :  { %v3884_v41 = vpop.f32.mrf.mxu0 }
 0x3d6   :  { %v7858_v58 = vpop.f32.mrf.mxu0 }
 0x3d8   :  { %v3887_v13 = vpop.f32.mrf.mxu0 }
 0x3da   :  { %v10731_v1 = vpop.f32.mrf.mxu1  ;;  %v7861_v31 = vpop.f32.mrf.mxu0 }
 0x3db   :  { %v3587_v57 = vadd.f32 %v10733_v21, %v10731_v1 }
 0x3dc   :  { %v10735_v27 = vpop.f32.mrf.mxu1  ;;  %v3900_v55 = vpop.f32.mrf.mxu0 }
 0x3de   :  { %v10737_v59 = vpop.f32.mrf.mxu1  ;;  %v7862_v29 = vpop.f32.mrf.mxu0 }
 0x3e0   :  { %v10741_v39 = vpop.f32.mrf.mxu1  ;;  %v3903_v25 = vpop.f32.mrf.mxu0 }
 0x3e2   :  { %v7829_v44 = vpop.f32.mrf.mxu1 }
 0x3e3   :  { %v3758_v20 = vadd.f32 %v7829_v44, %v3555_v33 }
 0x3e4   :  { %v3709_v24 = vpop.f32.mrf.mxu1 }
 0x3e5   :  { %v3756_v49 = vadd.f32 %v3709_v24, %v3547_v12  ;;  %v3933_v47 = vadd.f32 %v7857_v32, %v3758_v20  ;;  %v7865_v44 = vpop.f32.mrf.mxu0 }
 0x3e6   :  { %v7830_v9 = vpop.f32.mrf.mxu1 }
 0x3e7   :  { %v3759_v36 = vadd.f32 %v7830_v9, %v3558_v37  ;;  %v3931_v30 = vadd.f32 %v3884_v41, %v3756_v49  ;;  %v3916_v33 = vpop.f32.mrf.mxu0 }
 0x3e8   :  { %v3712_v63 = vpop.f32.mrf.mxu1 }
 0x3e9   :  { %v3757_v16 = vadd.f32 %v3712_v63, %v3550_v6  ;;  %v3934_v4 = vadd.f32 %v7858_v58, %v3759_v36 }
 0x3ea   :  { %v7833_v45 = vpop.f32.mrf.mxu1 }
 0x3eb   :  { %v3762_v38 = vadd.f32 %v7833_v45, %v3571_v42  ;;  %v3932_v60 = vadd.f32 %v3887_v13, %v3757_v16 }
 0x3ec   :  { %v3725_v56 = vpop.f32.mrf.mxu1 }
 0x3ed   :  { %v3760_v50 = vadd.f32 %v3725_v56, %v3563_v5  ;;  %v3937_v2 = vadd.f32 %v7861_v31, %v3762_v38 }
 0x3ee   :  { %v7834_v43 = vpop.f32.mrf.mxu1 }
 0x3ef   :  { %v3763_v24 = vadd.f32 %v7834_v43, %v3574_v23  ;;  %v3935_v41 = vadd.f32 %v3900_v55, %v3760_v50  ;;  %v3579_v43 = vadd.f32 %v10739_v18, %v10735_v27  ;;  %v3582_v55 = vadd.f32 %v10745_v15, %v10741_v39 }
 0x3f0   :  { %v3728_v52 = vpop.f32.mrf.mxu1 }
 0x3f1   :  { %v3761_v45 = vadd.f32 %v3728_v52, %v3566_v46  ;;  %v3938_v21 = vadd.f32 %v7862_v29, %v3763_v24  ;;  %v3590_v52 = vadd.f32 %v10743_v61, %v10737_v59  ;;  %v2148_v24 = vld [vmem:[#allocation5 + $0x2] sm:$0x1] }
 0x3f2   :  { %v7837_v10 = vpop.f32.mrf.mxu1 }
 0x3f3   :  { %v3766_v58 = vadd.f32 %v7837_v10, %v3587_v57  ;;  %v3936_v37 = vadd.f32 %v3903_v25, %v3761_v45 }
 0x3f4   :  { %v10747_v7 = vpop.f32.mrf.mxu1 }
 0x3f5   :  { %v3764_v49 = vadd.f32 %v10747_v7, %v3579_v43  ;;  %v3941_v36 = vadd.f32 %v7865_v44, %v3766_v58  ;;  %v2147_v44 = vld [vmem:[#allocation5] sm:$0x1] }
 0x3f6   :  { %v10749_v62 = vpop.f32.mrf.mxu1 }
 0x3f7   :  { %v3767_v42 = vadd.f32 %v10749_v62, %v3590_v52  ;;  %v3939_v39 = vadd.f32 %v3916_v33, %v3764_v49  ;;  %v10802_v52 = vld [vmem:[#allocation5 + $0x1e] sm:$0x1] }
 0x3f8   :  { %v10751_v51 = vpop.f32.mrf.mxu1 }
 0x3f9   :  { %v3765_v7 = vadd.f32 %v10751_v51, %v3582_v55 }
 0x402   :  { %v7885_v3 = vpop.f32.mrf.mxu1 }
 0x403   :  { %v4108_v40 = vadd.f32 %v7885_v3, %v3933_v47  ;;  %v7866_v47 = vpop.f32.mrf.mxu0 }
 0x404   :  { %v4059_v35 = vpop.f32.mrf.mxu1 }
 0x405   :  { %v4120_v26 = vadd.f32 %v10756_v22, %v4108_v40  ;;  %v4106_v0 = vadd.f32 %v4059_v35, %v3931_v30  ;;  %v3919_v38 = vpop.f32.mrf.mxu0 }
 0x406   :  { %v7886_v28 = vpop.f32.mrf.mxu1 }
 0x407   :  { %v4132_v14 = vmax.f32 %v4120_v26, 0.0  ;;  %v10760_v34 = vadd.f32 %v10756_v22, %v4106_v0  ;;  %v4109_v54 = vadd.f32 %v7886_v28, %v3934_v4  ;;  %v3942_v26 = vadd.f32 %v7866_v47, %v3767_v42  ;;  %v10806_v42 = vld [vmem:[#allocation5 + $0x30] sm:$0x1] }
 0x408   :  { %v4062_v48 = vpop.f32.mrf.mxu1  ;;  %v3940_v4 = vadd.f32 %v3919_v38, %v3765_v7  ;;  %v8152_v7 = vld [vmem:[%s11521_s5 + $0x270] ss:$8 sps:$4 sm:$0xff]  }
 0x409   :  { %v4130_v9 = vmax.f32 %v10760_v34, 0.0  ;;  %4144 = vst [vmem:[#allocation4 + $0x10] sm:$0xff] %v4132_v14  ;;  %v10764_v63 = vadd.f32 %v10756_v22, %v4109_v54  ;;  %v4107_v11 = vadd.f32 %v4062_v48, %v3932_v60 }
 0x40a   :  { %v7889_v32 = vpop.f32.mrf.mxu1 }
 0x40b   :  { %4142 = vst [vmem:[#allocation4] sm:$0xff] %v4130_v9  ;;  %v4133_v56 = vmax.f32 %v10764_v63, 0.0  ;;  %v4119_v19 = vadd.f32 %v10756_v22, %v4107_v11  ;;  %v4112_v17 = vadd.f32 %v7889_v32, %v3937_v2  ;;  %v2149_v32 = vld [vmem:[#allocation5 + $0x4] sm:$0x1] }
 0x40c   :  { %v4075_v13 = vpop.f32.mrf.mxu1 }
 0x40d   :  { %v4131_v31 = vmax.f32 %v4119_v19, 0.0  ;;  %v10773_v12 = vadd.f32 %v10756_v22, %v4112_v17  ;;  %v4110_v1 = vadd.f32 %v4075_v13, %v3935_v41  ;;  %4145 = vst [vmem:[#allocation4 + $0x18] sm:$0xff] %v4133_v56  ;;  %v2150_v19 = vld [vmem:[#allocation5 + $0x6] sm:$0x1] }
 0x40e   :  { %v7890_v20 = vpop.f32.mrf.mxu1 }
 0x40f   :  { %4143 = vst [vmem:[#allocation4 + $0x8] sm:$0xff] %v4131_v31  ;;  %v4136_v27 = vmax.f32 %v10773_v12, 0.0  ;;  %v4122_v18 = vadd.f32 %v10756_v22, %v4110_v1  ;;  %v4113_v10 = vadd.f32 %v7890_v20, %v3938_v21  ;;  %v10796_v31 = vld [vmem:[#allocation5 + $0x18] sm:$0x1]  ;;  %v10798_v1 = vld [vmem:[#allocation5 + $0x1a] sm:$0x1] }
 0x410   :  { %v4078_v6 = vpop.f32.mrf.mxu1 }
 0x411   :  { %v4134_v16 = vmax.f32 %v4122_v18, 0.0  ;;  %v4125_v59 = vadd.f32 %v10756_v22, %v4113_v10  ;;  %v4111_v61 = vadd.f32 %v4078_v6, %v3936_v37  ;;  %4148 = vst [vmem:[#allocation4 + $0x30] sm:$0xff] %v4136_v27 }
 0x412   :  { %v7893_v3 = vpop.f32.mrf.mxu1 }
 0x413   :  { %v4137_v29 = vmax.f32 %v4125_v59, 0.0  ;;  %v4123_v40 = vadd.f32 %v10756_v22, %v4111_v61  ;;  %v4116_v30 = vadd.f32 %v7893_v3, %v3941_v36  ;;  %4146 = vst [vmem:[#allocation4 + $0x20] sm:$0xff] %v4134_v16  ;;  %v10808_v16 = vld [vmem:[#allocation5 + $0x32] sm:$0x1]  ;;  %v10810_v59 = vld [vmem:[#allocation5 + $0x34] sm:$0x1] }
 0x414   :  { %v4091_v15 = vpop.f32.mrf.mxu1  ;;  %v10812_v61 = vld [vmem:[#allocation5 + $0x36] sm:$0x1] }
 0x415   :  { %v4135_v35 = vmax.f32 %v4123_v40, 0.0  ;;  %v4128_v62 = vadd.f32 %v10756_v22, %v4116_v30  ;;  %v4114_v5 = vadd.f32 %v4091_v15, %v3939_v39  ;;  %4149 = vst [vmem:[#allocation4 + $0x38] sm:$0xff] %v4137_v29 }
 0x416   :  { %v7894_v0 = vpop.f32.mrf.mxu1  ;;  %v4164_v23 = vld [vmem:[#allocation4 + $0x1] sm:$0xff]  ;;  %v4184_v28 = vld [vmem:[#allocation4 + $0xc] sm:$0xff] }
 0x417   :  { %v4140_v51 = vmax.f32 %v4128_v62, 0.0  ;;  %v4126_v60 = vadd.f32 %v10756_v22, %v4114_v5  ;;  %v4117_v25 = vadd.f32 %v7894_v0, %v3942_v26  ;;  %v4194_v50 = vld [vmem:[#allocation4 + $0xd] sm:$0xff]  ;;  %4147 = vst [vmem:[#allocation4 + $0x28] sm:$0xff] %v4135_v35  ;;  %v4174_v34 = vmax.f32 %v4130_v9, %v4164_v23  ;;  %v8160_v26 = vld [vmem:[%s11521_s5 + $0x264] ss:$8 sps:$4 sm:$0xff]  }
 0x418   :  { %v4094_v14 = vpop.f32.mrf.mxu1  ;;  %v4204_v54 = vmax.f32 %v4184_v28, %v4194_v50  ;;  %v8155_v35 = vld [vmem:[%s11521_s5 + $0x370] ss:$8 sps:$4 sm:$0xff]   ;;  %v8158_v28 = vld [vmem:[%s11521_s5 + $0x260] ss:$8 sps:$4 sm:$0xff]  }
 0x419   :  { %v4138_v46 = vmax.f32 %v4126_v60, 0.0  ;;  %v4129_v48 = vadd.f32 %v10756_v22, %v4117_v25  ;;  %4152 = vst [vmem:[#allocation4 + $0x50] sm:$0xff] %v4140_v51  ;;  %v4115_v2 = vadd.f32 %v4094_v14, %v3940_v4  ;;  %v8163_v51 = vld [vmem:[%s11521_s5 + $0x364] ss:$8 sps:$4 sm:$0xff]  }
 0x41a   :  { %v4214_v11 = vmax.f32 %v4174_v34, %v4204_v54  ;;  %v4167_v17 = vld [vmem:[#allocation4 + $0x19] sm:$0xff]  ;;  %v10833_v54 = vld [vmem:[#allocation5 + $0x48] sm:$0x1] }
 0x41b   :  { %v4141_v57 = vmax.f32 %v4129_v48, 0.0  ;;  %v4127_v45 = vadd.f32 %v10756_v22, %v4115_v2  ;;  %4150 = vst [vmem:[#allocation4 + $0x40] sm:$0xff] %v4138_v46  ;;  %v4177_v58 = vmax.f32 %v4133_v56, %v4167_v17  ;;  %v10800_v22 = vld [vmem:[#allocation5 + $0x1c] sm:$0x1]  ;;  %v10835_v46 = vld [vmem:[#allocation5 + $0x4a] sm:$0x1] }
 0x41c   :  { %4224 = vst [vmem:[#allocation5] sm:$0xff] %v4214_v11  ;;  %v4170_v33 = vld [vmem:[#allocation4 + $0x31] sm:$0xff]  ;;  %v10837_v48 = vld [vmem:[#allocation5 + $0x4c] sm:$0x1]  ;;  %v2162_v2 = vld [vmem:[#allocation5 + $0x4e] sm:$0x1] }
 0x41d   :  { %4153 = vst [vmem:[#allocation4 + $0x58] sm:$0xff] %v4141_v57  ;;  %v4139_v41 = vmax.f32 %v4127_v45, 0.0  ;;  %v4180_v63 = vmax.f32 %v4136_v27, %v4170_v33 }
 0x41e   :  { %v4187_v9 = vld [vmem:[#allocation4 + $0x24] sm:$0xff] }
 0x41f   :  { %v4197_v43 = vld [vmem:[#allocation4 + $0x25] sm:$0xff]  ;;  %4151 = vst [vmem:[#allocation4 + $0x48] sm:$0xff] %v4139_v41 }
 0x420   :  { %v4207_v13 = vmax.f32 %v4187_v9, %v4197_v43  ;;  %v8164_v41 = vld [vmem:[%s11521_s5 + $0x250] ss:$8 sps:$4 sm:$0xff]   ;;  %v8169_v43 = vld [vmem:[%s11521_s5 + $0x354] ss:$8 sps:$4 sm:$0xff]  }
 0x422   :  { %v4217_v21 = vmax.f32 %v4177_v58, %v4207_v13  ;;  %v4190_v20 = vld [vmem:[#allocation4 + $0x3c] sm:$0xff] }
 0x423   :  { %v4200_v37 = vld [vmem:[#allocation4 + $0x3d] sm:$0xff]  ;;  %v4237_v18 = vld [vmem:[#allocation5 + $0x6] sm:$0x1] }
 0x424   :  { %v4235_v49 = vld [vmem:[#allocation5 + $0x2] sm:$0x1]  ;;  %v4234_v10 = vld [vmem:[#allocation5] sm:$0x1]  ;;  %4227 = vst [vmem:[#allocation5 + $0x18] sm:$0xff] %v4217_v21  ;;  %v4210_v56 = vmax.f32 %v4190_v20, %v4200_v37  ;;  %v4269_v6 = vrot.slane %v4237_v18, 7 }
 0x425   :  { %v4267_v55 = vrot.slane %v4235_v49, 7  ;;  %v4266_v36 = vrot.slane %v4234_v10, 7  ;;  %v4236_v47 = vld [vmem:[#allocation5 + $0x4] sm:$0x1]  ;;  %v4193_v27 = vld [vmem:[#allocation4 + $0x54] sm:$0xff] }
 0x426   :  { %v4268_v3 = vrot.slane %v4236_v47, 7  ;;  %v4220_v12 = vmax.f32 %v4180_v63, %v4210_v56  ;;  %v4203_v29 = vld [vmem:[#allocation4 + $0x55] sm:$0xff]  ;;  %v4302_v30 = vsel %vm4298_vm6, %v2150_v19, %v4269_v6  ;;  %v4163_v0 = vld [vmem:[#allocation4 + $0x48] sm:$0xff] }
 0x427   :  { %v4300_v40 = vsel %vm4298_vm6, %v2148_v24, %v4267_v55  ;;  %v4299_v39 = vsel %vm4298_vm6, %v2147_v44, %v4266_v36  ;;  %v4318_v38 = vpack.c.bf16 %v4302_v30, %v4302_v30  ;;  %v4173_v4 = vld [vmem:[#allocation4 + $0x49] sm:$0xff]  ;;  %v4213_v25 = vmax.f32 %v4193_v27, %v4203_v29  ;;  %v8175_v55 = vld [vmem:[%s11521_s5 + $0x344] ss:$8 sps:$4 sm:$0xff]  }
 0x428   :  { %v4316_v15 = vpack.c.bf16 %v4300_v40, %v4300_v40  ;;  %v4315_v62 = vpack.c.bf16 %v4299_v39, %v4299_v39  ;;  %4230 = vst [vmem:[#allocation5 + $0x30] sm:$0xff] %v4220_v12  ;;  %v4301_v5 = vsel %vm4298_vm6, %v2149_v32, %v4268_v3  ;;  %v4183_v60 = vmax.f32 %v4163_v0, %v4173_v4  ;;  %v8161_v32 = vld [vmem:[%s11521_s5 + $0x360] ss:$8 sps:$4 sm:$0xff]   ;;  %v8166_v19 = vld [vmem:[%s11521_s5 + $0x254] ss:$8 sps:$4 sm:$0xff]  }
 0x429   :  { %5952 = vmatprep.mubr.bf16.mxu1 %v4318_v38  ;;  %v4317_v23 = vpack.c.bf16 %v4301_v5, %v4301_v5  ;;  %v8170_v3 = vld [vmem:[%s11521_s5 + $0x240] ss:$8 sps:$4 sm:$0xff]   ;;  %v8176_v39 = vld [vmem:[%s11521_s5 + $0x230] ss:$8 sps:$4 sm:$0xff]   ;;  %v8187_v0 = vld [vmem:[%s11521_s5 + $0x324] ss:$8 sps:$4 sm:$0xff]  }
 0x42a   :  { %5911 = vmatprep.mubr.bf16.mxu0 %v4316_v15  ;;  %v4223_v45 = vmax.f32 %v4183_v60, %v4213_v25  ;;  %v8179_v5 = vld [vmem:[%s11521_s5 + $0x330] ss:$8 sps:$4 sm:$0xff]   ;;  %v8190_v60 = vld [vmem:[%s11521_s5 + $0x214] ss:$8 sps:$4 sm:$0xff]  }
 0x42b   :  { %5912 = vmatmul.mubr.bf16.vlgmr.msra.gmra.mxu0 %v4315_v62  ;;  %v4239_v50 = vld [vmem:[#allocation5 + $0x1a] sm:$0x1]  ;;  %v4241_v14 = vld [vmem:[#allocation5 + $0x1e] sm:$0x1]  ;;  %v4238_v34 = vld [vmem:[#allocation5 + $0x18] sm:$0x1]  ;;  %5953 = vmatmul.mubr.bf16.vlgmr.msra.gmra.mxu1 %v4317_v23 }
 0x42c   :  { %5962 = vmatpush1.bf16.msra.mxu0 %v8152_v7  ;;  %v4271_v44 = vrot.slane %v4239_v50, 7  ;;  %v4273_v24 = vrot.slane %v4241_v14, 7  ;;  %v4270_v11 = vrot.slane %v4238_v34, 7  ;;  %v4240_v57 = vld [vmem:[#allocation5 + $0x1c] sm:$0x1]  ;;  %6003 = vmatpush1.bf16.msra.mxu1 %v8155_v35  ;;  %4233 = vst [vmem:[#allocation5 + $0x48] sm:$0xff] %v4223_v45 }
 0x42d   :  { %5963 = vmatprep.subr.bf16.mxu0 %v8160_v26  ;;  %v4272_v17 = vrot.slane %v4240_v57, 7  ;;  %6004 = vmatprep.subr.bf16.mxu1 %v8163_v51  ;;  %v8184_v26 = vld [vmem:[%s11521_s5 + $0x224] ss:$8 sps:$4 sm:$0xff]   ;;  %v8185_v51 = vld [vmem:[%s11521_s5 + $0x320] ss:$8 sps:$4 sm:$0xff]  }
 0x42e   :  { %v4304_v9 = vsel %vm4298_vm6, %v10798_v1, %v4271_v44  ;;  %v4306_v58 = vsel %vm4298_vm6, %v10802_v52, %v4273_v24  ;;  %v10857_v13 = vsel %vm4298_vm6, %v10796_v31, %v4270_v11  ;;  %v8167_v31 = vld [vmem:[%s11521_s5 + $0x350] ss:$8 sps:$4 sm:$0xff]   ;;  %v8172_v52 = vld [vmem:[%s11521_s5 + $0x244] ss:$8 sps:$4 sm:$0xff]   ;;  %v8193_v25 = vld [vmem:[%s11521_s5 + $0x314] ss:$8 sps:$4 sm:$0xff]  }
 0x42f   :  { %v4320_v33 = vpack.c.bf16 %v4304_v9, %v4304_v9  ;;  %v4322_v21 = vpack.c.bf16 %v4306_v58, %v4306_v58  ;;  %v10861_v20 = vsel %vm4298_vm6, %v10800_v22, %v4272_v17  ;;  %v4243_v37 = vld [vmem:[#allocation5 + $0x32] sm:$0x1]  ;;  %v4245_v1 = vld [vmem:[#allocation5 + $0x36] sm:$0x1]  ;;  %v4242_v49 = vld [vmem:[#allocation5 + $0x30] sm:$0x1] }
 0x430   :  { %5964 = vmatpush1.bf16.msra.mxu0 %v8158_v28  ;;  %v4275_v18 = vrot.slane %v4243_v37, 7  ;;  %v4277_v10 = vrot.slane %v4245_v1, 7  ;;  %v4274_v63 = vrot.slane %v4242_v49, 7  ;;  %v4244_v56 = vld [vmem:[#allocation5 + $0x34] sm:$0x1]  ;;  %6005 = vmatpush1.bf16.msra.mxu1 %v8161_v32 }
 0x431   :  { %5965 = vmatprep.subr.bf16.mxu0 %v8166_v19  ;;  %v4276_v22 = vrot.slane %v4244_v56, 7  ;;  %5993 = vmatprep.mubr.bf16.mxu0 %v4320_v33  ;;  %v8182_v28 = vld [vmem:[%s11521_s5 + $0x220] ss:$8 sps:$4 sm:$0xff]   ;;  %v8188_v50 = vld [vmem:[%s11521_s5 + $0x210] ss:$8 sps:$4 sm:$0xff]  }
 0x432   :  { %6006 = vmatprep.subr.bf16.mxu1 %v8169_v43  ;;  %v10874_v6 = vsel %vm4298_vm6, %v10808_v16, %v4275_v18  ;;  %v10878_v36 = vsel %vm4298_vm6, %v10812_v61, %v4277_v10  ;;  %v10882_v47 = vsel %vm4298_vm6, %v10806_v42, %v4274_v63  ;;  %6034 = vmatprep.mubr.bf16.mxu1 %v4322_v21  ;;  %v8173_v16 = vld [vmem:[%s11521_s5 + $0x340] ss:$8 sps:$4 sm:$0xff]   ;;  %v8178_v42 = vld [vmem:[%s11521_s5 + $0x234] ss:$8 sps:$4 sm:$0xff]   ;;  %v8191_v14 = vld [vmem:[%s11521_s5 + $0x310] ss:$8 sps:$4 sm:$0xff]  }
 0x433   :  { %v10886_v7 = vsel %vm4298_vm6, %v10810_v59, %v4276_v22  ;;  %v4247_v61 = vld [vmem:[#allocation5 + $0x4a] sm:$0x1]  ;;  %v4249_v12 = vld [vmem:[#allocation5 + $0x4e] sm:$0x1]  ;;  %v4246_v40 = vld [vmem:[#allocation5 + $0x48] sm:$0x1] }
 0x434   :  { %5966 = vmatpush1.bf16.msra.mxu0 %v8164_v41  ;;  %6007 = vmatpush1.bf16.msra.mxu1 %v8167_v31  ;;  %v8181_v59 = vld [vmem:[%s11521_s5 + $0x334] ss:$8 sps:$4 sm:$0xff]   ;;  %v4279_v27 = vrot.slane %v4247_v61, 7  ;;  %v4281_v29 = vrot.slane %v4249_v12, 7  ;;  %v4278_v35 = vrot.slane %v4246_v40, 7 }
 0x435   :  { %5967 = vmatprep.subr.bf16.mxu0 %v8172_v52  ;;  %6008 = vmatprep.subr.bf16.mxu1 %v8175_v55  ;;  %v4248_v30 = vld [vmem:[#allocation5 + $0x4c] sm:$0x1]  ;;  %v8196_v34 = vld [vmem:[%s11521_s5 + $0x204] ss:$8 sps:$4 sm:$0xff]   ;;  %v8200_v24 = vld [vmem:[%s11521_s5 + $0x2f0] ss:$8 sps:$4 sm:$0xff]  }
 0x436   :  { %v10905_v15 = vsel %vm4298_vm6, %v10835_v46, %v4279_v27  ;;  %v10908_v38 = vsel %vm4298_vm6, %v2162_v2, %v4281_v29  ;;  %v4280_v62 = vrot.slane %v4248_v30, 7  ;;  %v10921_v4 = vsel %vm4298_vm6, %v10833_v54, %v4278_v35  ;;  %v8199_v54 = vld [vmem:[%s11521_s5 + $0x304] ss:$8 sps:$4 sm:$0xff]   ;;  %v8194_v46 = vld [vmem:[%s11521_s5 + $0x200] ss:$8 sps:$4 sm:$0xff]  }
 0x437   :  { %v8202_v2 = vld [vmem:[%s11521_s5 + $0x2f4] ss:$8 sps:$4 sm:$0xff]   ;;  %v8203_v11 = vld [vmem:[%s11521_s5 + $0x3f0] ss:$8 sps:$4 sm:$0xff]   ;;  %v8208_v57 = vld [vmem:[%s11521_s5 + $0x2e4] ss:$8 sps:$4 sm:$0xff]   ;;  %v4319_v30 = vpack.c.bf16 %v10857_v13, %v10857_v13  ;;  %v4321_v35 = vpack.c.bf16 %v10861_v20, %v10861_v20 }
 0x438   :  { %5968 = vmatpush1.bf16.msra.mxu0 %v8170_v3  ;;  %6009 = vmatpush1.bf16.msra.mxu1 %v8173_v16  ;;  %v10925_v23 = vsel %vm4298_vm6, %v10837_v48, %v4280_v62  ;;  %v8197_v48 = vld [vmem:[%s11521_s5 + $0x300] ss:$8 sps:$4 sm:$0xff]   ;;  %v8205_v44 = vld [vmem:[%s11521_s5 + $0x3f4] ss:$8 sps:$4 sm:$0xff]   ;;  %v8211_v45 = vld [vmem:[%s11521_s5 + $0x3e4] ss:$8 sps:$4 sm:$0xff]  }
 0x439   :  { %5969 = vmatprep.subr.bf16.mxu0 %v8178_v42  ;;  %6010 = vmatprep.subr.bf16.mxu1 %v8181_v59  ;;  %v8206_v32 = vld [vmem:[%s11521_s5 + $0x2e0] ss:$8 sps:$4 sm:$0xff]   ;;  %v8214_v17 = vld [vmem:[%s11521_s5 + $0x2d4] ss:$8 sps:$4 sm:$0xff]   ;;  %v8212_v9 = vld [vmem:[%s11521_s5 + $0x2d0] ss:$8 sps:$4 sm:$0xff]  }
 0x43a   :  { %v8209_v19 = vld [vmem:[%s11521_s5 + $0x3e0] ss:$8 sps:$4 sm:$0xff]   ;;  %v8217_v41 = vld [vmem:[%s11521_s5 + $0x3d4] ss:$8 sps:$4 sm:$0xff]   ;;  %v8215_v43 = vld [vmem:[%s11521_s5 + $0x3d0] ss:$8 sps:$4 sm:$0xff]  }
 0x43b   :  { %v8220_v58 = vld [vmem:[%s11521_s5 + $0x2c4] ss:$8 sps:$4 sm:$0xff]   ;;  %v8218_v21 = vld [vmem:[%s11521_s5 + $0x2c0] ss:$8 sps:$4 sm:$0xff]   ;;  %v8226_v1 = vld [vmem:[%s11521_s5 + $0x2b4] ss:$8 sps:$4 sm:$0xff]  }
 0x43c   :  { %5970 = vmatpush1.bf16.msra.mxu0 %v8176_v39  ;;  %6011 = vmatpush1.bf16.msra.mxu1 %v8179_v5  ;;  %v8223_v33 = vld [vmem:[%s11521_s5 + $0x3c4] ss:$8 sps:$4 sm:$0xff]   ;;  %v8221_v37 = vld [vmem:[%s11521_s5 + $0x3c0] ss:$8 sps:$4 sm:$0xff]   ;;  %v8229_v49 = vld [vmem:[%s11521_s5 + $0x3b4] ss:$8 sps:$4 sm:$0xff]   ;;  %v4324_v5 = vpack.c.bf16 %v10874_v6, %v10874_v6 }
 0x43d   :  { %5971 = vmatprep.subr.bf16.mxu0 %v8184_v26  ;;  %6012 = vmatprep.subr.bf16.mxu1 %v8187_v0  ;;  %v8224_v18 = vld [vmem:[%s11521_s5 + $0x2b0] ss:$8 sps:$4 sm:$0xff]   ;;  %v8232_v63 = vld [vmem:[%s11521_s5 + $0x2a4] ss:$8 sps:$4 sm:$0xff]   ;;  %v8230_v31 = vld [vmem:[%s11521_s5 + $0x2a0] ss:$8 sps:$4 sm:$0xff]   ;;  %v4326_v26 = vpack.c.bf16 %v10878_v36, %v10878_v36 }
 0x43e   :  { %v8227_v10 = vld [vmem:[%s11521_s5 + $0x3b0] ss:$8 sps:$4 sm:$0xff]   ;;  %v8235_v56 = vld [vmem:[%s11521_s5 + $0x3a4] ss:$8 sps:$4 sm:$0xff]   ;;  %v8233_v52 = vld [vmem:[%s11521_s5 + $0x3a0] ss:$8 sps:$4 sm:$0xff]  }
 0x43f   :  { %v8238_v22 = vld [vmem:[%s11521_s5 + $0x294] ss:$8 sps:$4 sm:$0xff]   ;;  %v8236_v3 = vld [vmem:[%s11521_s5 + $0x290] ss:$8 sps:$4 sm:$0xff]   ;;  %v8244_v42 = vld [vmem:[%s11521_s5 + $0x284] ss:$8 sps:$4 sm:$0xff]  }
 0x440   :  { %5972 = vmatpush1.bf16.msra.mxu0 %v8182_v28  ;;  %6013 = vmatpush1.bf16.msra.mxu1 %v8185_v51  ;;  %v8241_v55 = vld [vmem:[%s11521_s5 + $0x394] ss:$8 sps:$4 sm:$0xff]   ;;  %v8239_v16 = vld [vmem:[%s11521_s5 + $0x390] ss:$8 sps:$4 sm:$0xff]   ;;  %v8247_v61 = vld [vmem:[%s11521_s5 + $0x384] ss:$8 sps:$4 sm:$0xff]  }
 0x441   :  { %5973 = vmatprep.subr.bf16.mxu0 %v8190_v60  ;;  %6014 = vmatprep.subr.bf16.mxu1 %v8193_v25  ;;  %v8242_v12 = vld [vmem:[%s11521_s5 + $0x280] ss:$8 sps:$4 sm:$0xff]   ;;  %v8250_v27 = vld [vmem:[%s11521_s5 + $0x474] ss:$8 sps:$4 sm:$0xff]   ;;  %v8248_v40 = vld [vmem:[%s11521_s5 + $0x470] ss:$8 sps:$4 sm:$0xff]  }
 0x442   :  { %v8245_v59 = vld [vmem:[%s11521_s5 + $0x380] ss:$8 sps:$4 sm:$0xff]   ;;  %v8253_v29 = vld [vmem:[%s11521_s5 + $0x574] ss:$8 sps:$4 sm:$0xff]   ;;  %v8251_v39 = vld [vmem:[%s11521_s5 + $0x570] ss:$8 sps:$4 sm:$0xff]  }
 0x443   :  { %v8256_v62 = vld [vmem:[%s11521_s5 + $0x464] ss:$8 sps:$4 sm:$0xff]   ;;  %v8254_v20 = vld [vmem:[%s11521_s5 + $0x460] ss:$8 sps:$4 sm:$0xff]   ;;  %v8262_v6 = vld [vmem:[%s11521_s5 + $0x454] ss:$8 sps:$4 sm:$0xff]  }
 0x444   :  { %5974 = vmatpush1.bf16.msra.mxu0 %v8188_v50  ;;  %6015 = vmatpush1.bf16.msra.mxu1 %v8191_v14  ;;  %v8259_v13 = vld [vmem:[%s11521_s5 + $0x564] ss:$8 sps:$4 sm:$0xff]   ;;  %v8257_v0 = vld [vmem:[%s11521_s5 + $0x560] ss:$8 sps:$4 sm:$0xff]   ;;  %v8265_v36 = vld [vmem:[%s11521_s5 + $0x554] ss:$8 sps:$4 sm:$0xff]  }
 0x445   :  { %5975 = vmatprep.subr.bf16.mxu0 %v8196_v34  ;;  %6016 = vmatprep.subr.bf16.mxu1 %v8199_v54  ;;  %v8260_v28 = vld [vmem:[%s11521_s5 + $0x450] ss:$8 sps:$4 sm:$0xff]   ;;  %v8268_v60 = vld [vmem:[%s11521_s5 + $0x444] ss:$8 sps:$4 sm:$0xff]   ;;  %v8266_v50 = vld [vmem:[%s11521_s5 + $0x440] ss:$8 sps:$4 sm:$0xff]  }
 0x446   :  { %v8263_v51 = vld [vmem:[%s11521_s5 + $0x550] ss:$8 sps:$4 sm:$0xff]   ;;  %v8271_v25 = vld [vmem:[%s11521_s5 + $0x544] ss:$8 sps:$4 sm:$0xff]   ;;  %v8269_v14 = vld [vmem:[%s11521_s5 + $0x540] ss:$8 sps:$4 sm:$0xff]  }
 0x447   :  { %v8274_v34 = vld [vmem:[%s11521_s5 + $0x434] ss:$8 sps:$4 sm:$0xff]  }
 0x448   :  { %5976 = vmatpush1.bf16.msra.mxu0 %v8194_v46  ;;  %6017 = vmatpush1.bf16.msra.mxu1 %v8197_v48  ;;  %v8277_v54 = vld [vmem:[%s11521_s5 + $0x534] ss:$8 sps:$4 sm:$0xff]   ;;  %v8272_v46 = vld [vmem:[%s11521_s5 + $0x430] ss:$8 sps:$4 sm:$0xff]  }
 0x449   :  { %5977 = vmatprep.subr.bf16.mxu0 %v8202_v2  ;;  %6018 = vmatprep.subr.bf16.mxu1 %v8205_v44  ;;  %v8275_v48 = vld [vmem:[%s11521_s5 + $0x530] ss:$8 sps:$4 sm:$0xff]   ;;  %v8280_v2 = vld [vmem:[%s11521_s5 + $0x424] ss:$8 sps:$4 sm:$0xff]  }
 0x44a   :  { %v8283_v44 = vld [vmem:[%s11521_s5 + $0x524] ss:$8 sps:$4 sm:$0xff]  }
 0x44c   :  { %5978 = vmatpush2.bf16.msra.mxu0 %v8200_v24  ;;  %6019 = vmatpush2.bf16.msra.mxu1 %v8203_v11  ;;  %v8278_v24 = vld [vmem:[%s11521_s5 + $0x420] ss:$8 sps:$4 sm:$0xff]  }
 0x44d   :  { %5979 = vmatprep.subr.bf16.mxu0 %v8208_v57  ;;  %6020 = vmatprep.subr.bf16.mxu1 %v8211_v45  ;;  %v8281_v11 = vld [vmem:[%s11521_s5 + $0x520] ss:$8 sps:$4 sm:$0xff]   ;;  %v8286_v57 = vld [vmem:[%s11521_s5 + $0x414] ss:$8 sps:$4 sm:$0xff]  }
 0x44e   :  { %v8289_v45 = vld [vmem:[%s11521_s5 + $0x514] ss:$8 sps:$4 sm:$0xff]  }
 0x450   :  { %5980 = vmatpush2.bf16.msra.mxu0 %v8206_v32  ;;  %6021 = vmatpush2.bf16.msra.mxu1 %v8209_v19  ;;  %v8284_v32 = vld [vmem:[%s11521_s5 + $0x410] ss:$8 sps:$4 sm:$0xff]  }
 0x451   :  { %5981 = vmatprep.subr.bf16.mxu0 %v8214_v17  ;;  %6022 = vmatprep.subr.bf16.mxu1 %v8217_v41  ;;  %v8287_v19 = vld [vmem:[%s11521_s5 + $0x510] ss:$8 sps:$4 sm:$0xff]   ;;  %v8292_v17 = vld [vmem:[%s11521_s5 + $0x404] ss:$8 sps:$4 sm:$0xff]  }
 0x452   :  { %v8295_v41 = vld [vmem:[%s11521_s5 + $0x504] ss:$8 sps:$4 sm:$0xff]  }
 0x454   :  { %5982 = vmatpush2.bf16.msra.mxu0 %v8212_v9  ;;  %6023 = vmatpush2.bf16.msra.mxu1 %v8215_v43  ;;  %v8290_v9 = vld [vmem:[%s11521_s5 + $0x400] ss:$8 sps:$4 sm:$0xff]  }
 0x455   :  { %5983 = vmatprep.subr.bf16.mxu0 %v8220_v58  ;;  %6024 = vmatprep.subr.bf16.mxu1 %v8223_v33  ;;  %v8293_v43 = vld [vmem:[%s11521_s5 + $0x500] ss:$8 sps:$4 sm:$0xff]   ;;  %v8298_v58 = vld [vmem:[%s11521_s5 + $0x4f4] ss:$8 sps:$4 sm:$0xff]  }
 0x456   :  { %v8301_v33 = vld [vmem:[%s11521_s5 + $0x5f4] ss:$8 sps:$4 sm:$0xff]  }
 0x458   :  { %5984 = vmatpush2.bf16.msra.mxu0 %v8218_v21  ;;  %6025 = vmatpush2.bf16.msra.mxu1 %v8221_v37  ;;  %v8296_v21 = vld [vmem:[%s11521_s5 + $0x4f0] ss:$8 sps:$4 sm:$0xff]  }
 0x459   :  { %5985 = vmatprep.subr.bf16.mxu0 %v8226_v1  ;;  %6026 = vmatprep.subr.bf16.mxu1 %v8229_v49  ;;  %v8299_v37 = vld [vmem:[%s11521_s5 + $0x5f0] ss:$8 sps:$4 sm:$0xff]   ;;  %v8304_v1 = vld [vmem:[%s11521_s5 + $0x4e4] ss:$8 sps:$4 sm:$0xff]  }
 0x45a   :  { %v8307_v49 = vld [vmem:[%s11521_s5 + $0x5e4] ss:$8 sps:$4 sm:$0xff]  }
 0x45c   :  { %5986 = vmatpush2.bf16.msra.mxu0 %v8224_v18  ;;  %6027 = vmatpush2.bf16.msra.mxu1 %v8227_v10  ;;  %v8302_v18 = vld [vmem:[%s11521_s5 + $0x4e0] ss:$8 sps:$4 sm:$0xff]  }
 0x45d   :  { %5987 = vmatprep.subr.bf16.mxu0 %v8232_v63  ;;  %6028 = vmatprep.subr.bf16.mxu1 %v8235_v56  ;;  %v8305_v10 = vld [vmem:[%s11521_s5 + $0x5e0] ss:$8 sps:$4 sm:$0xff]   ;;  %v8310_v63 = vld [vmem:[%s11521_s5 + $0x4d4] ss:$8 sps:$4 sm:$0xff]  }
 0x45e   :  { %v8313_v56 = vld [vmem:[%s11521_s5 + $0x5d4] ss:$8 sps:$4 sm:$0xff]  }
 0x460   :  { %5988 = vmatpush2.bf16.msra.mxu0 %v8230_v31  ;;  %6029 = vmatpush2.bf16.msra.mxu1 %v8233_v52  ;;  %v8308_v31 = vld [vmem:[%s11521_s5 + $0x4d0] ss:$8 sps:$4 sm:$0xff]  }
 0x461   :  { %5989 = vmatprep.subr.bf16.mxu0 %v8238_v22  ;;  %6030 = vmatprep.subr.bf16.mxu1 %v8241_v55  ;;  %v8311_v52 = vld [vmem:[%s11521_s5 + $0x5d0] ss:$8 sps:$4 sm:$0xff]   ;;  %v8316_v22 = vld [vmem:[%s11521_s5 + $0x4c4] ss:$8 sps:$4 sm:$0xff]  }
 0x462   :  { %v8319_v55 = vld [vmem:[%s11521_s5 + $0x5c4] ss:$8 sps:$4 sm:$0xff]  }
 0x464   :  { %5990 = vmatpush2.bf16.msra.mxu0 %v8236_v3  ;;  %6031 = vmatpush2.bf16.msra.mxu1 %v8239_v16  ;;  %v8314_v3 = vld [vmem:[%s11521_s5 + $0x4c0] ss:$8 sps:$4 sm:$0xff]  }
 0x465   :  { %5991 = vmatprep.subr.bf16.mxu0 %v8244_v42  ;;  %6032 = vmatprep.subr.bf16.mxu1 %v8247_v61  ;;  %v8317_v16 = vld [vmem:[%s11521_s5 + $0x5c0] ss:$8 sps:$4 sm:$0xff]   ;;  %v8322_v42 = vld [vmem:[%s11521_s5 + $0x4b4] ss:$8 sps:$4 sm:$0xff]  }
 0x466   :  { %v8325_v61 = vld [vmem:[%s11521_s5 + $0x5b4] ss:$8 sps:$4 sm:$0xff]  }
 0x468   :  { %5992 = vmatpush2.bf16.msra.mxu0 %v8242_v12  ;;  %6033 = vmatpush2.bf16.msra.mxu1 %v8245_v59  ;;  %v8320_v12 = vld [vmem:[%s11521_s5 + $0x4b0] ss:$8 sps:$4 sm:$0xff]  }
 0x469   :  { %6043 = vmatprep.subr.bf16.mxu0 %v8250_v27  ;;  %6084 = vmatprep.subr.bf16.mxu1 %v8253_v29  ;;  %v8323_v59 = vld [vmem:[%s11521_s5 + $0x5b0] ss:$8 sps:$4 sm:$0xff]   ;;  %v8328_v27 = vld [vmem:[%s11521_s5 + $0x4a4] ss:$8 sps:$4 sm:$0xff]  }
 0x46a   :  { %v8331_v29 = vld [vmem:[%s11521_s5 + $0x5a4] ss:$8 sps:$4 sm:$0xff]  }
 0x46b   :  { %5994 = vmatmul.mubr.bf16.vlgmr.msra.gmra.mxu0 %v4319_v30  ;;  %6035 = vmatmul.mubr.bf16.vlgmr.msra.gmra.mxu1 %v4321_v35  ;;  %v8329_v30 = vld [vmem:[%s11521_s5 + $0x5a0] ss:$8 sps:$4 sm:$0xff]   ;;  %v8337_v35 = vld [vmem:[%s11521_s5 + $0x594] ss:$8 sps:$4 sm:$0xff]  }
 0x46c   :  { %6044 = vmatpush1.bf16.msra.mxu0 %v8248_v40  ;;  %6075 = vmatprep.mubr.bf16.mxu0 %v4324_v5  ;;  %v8326_v40 = vld [vmem:[%s11521_s5 + $0x4a0] ss:$8 sps:$4 sm:$0xff]   ;;  %v8335_v5 = vld [vmem:[%s11521_s5 + $0x590] ss:$8 sps:$4 sm:$0xff]  }
 0x46d   :  { %6085 = vmatpush1.bf16.msra.mxu1 %v8251_v39  ;;  %6116 = vmatprep.mubr.bf16.mxu1 %v4326_v26  ;;  %v8334_v39 = vld [vmem:[%s11521_s5 + $0x494] ss:$8 sps:$4 sm:$0xff]   ;;  %v8343_v26 = vld [vmem:[%s11521_s5 + $0x584] ss:$8 sps:$4 sm:$0xff]  }
 0x46e   :  { %6045 = vmatprep.subr.bf16.mxu0 %v8256_v62  ;;  %6086 = vmatprep.subr.bf16.mxu1 %v8259_v13  ;;  %v8332_v62 = vld [vmem:[%s11521_s5 + $0x490] ss:$8 sps:$4 sm:$0xff]   ;;  %v8340_v13 = vld [vmem:[%s11521_s5 + $0x484] ss:$8 sps:$4 sm:$0xff]  }
 0x470   :  { %6046 = vmatpush1.bf16.msra.mxu0 %v8254_v20  ;;  %v8338_v20 = vld [vmem:[%s11521_s5 + $0x480] ss:$8 sps:$4 sm:$0xff]  }
 0x471   :  { %6087 = vmatpush1.bf16.msra.mxu1 %v8257_v0  ;;  %6047 = vmatprep.subr.bf16.mxu0 %v8262_v6  ;;  %v8341_v0 = vld [vmem:[%s11521_s5 + $0x580] ss:$8 sps:$4 sm:$0xff]   ;;  %v8346_v6 = vld [vmem:[%s11521_s5 + $0x674] ss:$8 sps:$4 sm:$0xff]  }
 0x472   :  { %6088 = vmatprep.subr.bf16.mxu1 %v8265_v36  ;;  %v8349_v36 = vld [vmem:[%s11521_s5 + $0x774] ss:$8 sps:$4 sm:$0xff]  }
 0x474   :  { %6048 = vmatpush1.bf16.msra.mxu0 %v8260_v28  ;;  %v8344_v28 = vld [vmem:[%s11521_s5 + $0x670] ss:$8 sps:$4 sm:$0xff]  }
 0x475   :  { %6089 = vmatpush1.bf16.msra.mxu1 %v8263_v51  ;;  %6049 = vmatprep.subr.bf16.mxu0 %v8268_v60  ;;  %v4323_v51 = vpack.c.bf16 %v10882_v47, %v10882_v47  ;;  %v8347_v60 = vld [vmem:[%s11521_s5 + $0x770] ss:$8 sps:$4 sm:$0xff]   ;;  %v8355_v47 = vld [vmem:[%s11521_s5 + $0x764] ss:$8 sps:$4 sm:$0xff]  }
 0x476   :  { %6090 = vmatprep.subr.bf16.mxu1 %v8271_v25  ;;  %v4325_v25 = vpack.c.bf16 %v10886_v7, %v10886_v7  ;;  %v8350_v7 = vld [vmem:[%s11521_s5 + $0x660] ss:$8 sps:$4 sm:$0xff]  }
 0x478   :  { %6050 = vmatpush1.bf16.msra.mxu0 %v8266_v50  ;;  %v8352_v50 = vld [vmem:[%s11521_s5 + $0x664] ss:$8 sps:$4 sm:$0xff]  }
 0x479   :  { %6091 = vmatpush1.bf16.msra.mxu1 %v8269_v14  ;;  %6051 = vmatprep.subr.bf16.mxu0 %v8274_v34  ;;  %v4328_v14 = vpack.c.bf16 %v10905_v15, %v10905_v15  ;;  %v4330_v34 = vpack.c.bf16 %v10908_v38, %v10908_v38  ;;  %v8358_v15 = vld [vmem:[%s11521_s5 + $0x654] ss:$8 sps:$4 sm:$0xff]  }
 0x47a   :  { %6092 = vmatprep.subr.bf16.mxu1 %v8277_v54  ;;  %v8353_v54 = vld [vmem:[%s11521_s5 + $0x760] ss:$8 sps:$4 sm:$0xff]   ;;  %v8361_v38 = vld [vmem:[%s11521_s5 + $0x754] ss:$8 sps:$4 sm:$0xff]  }
 0x47c   :  { %6052 = vmatpush1.bf16.msra.mxu0 %v8272_v46  ;;  %v8356_v46 = vld [vmem:[%s11521_s5 + $0x650] ss:$8 sps:$4 sm:$0xff]  }
 0x47d   :  { %6093 = vmatpush1.bf16.msra.mxu1 %v8275_v48  ;;  %6053 = vmatprep.subr.bf16.mxu0 %v8280_v2  ;;  %v8359_v48 = vld [vmem:[%s11521_s5 + $0x750] ss:$8 sps:$4 sm:$0xff]   ;;  %v8364_v2 = vld [vmem:[%s11521_s5 + $0x644] ss:$8 sps:$4 sm:$0xff]  }
 0x47e   :  { %6094 = vmatprep.subr.bf16.mxu1 %v8283_v44  ;;  %v8367_v44 = vld [vmem:[%s11521_s5 + $0x744] ss:$8 sps:$4 sm:$0xff]  }
 0x480   :  { %6054 = vmatpush1.bf16.msra.mxu0 %v8278_v24  ;;  %v8362_v24 = vld [vmem:[%s11521_s5 + $0x640] ss:$8 sps:$4 sm:$0xff]  }
 0x481   :  { %6095 = vmatpush1.bf16.msra.mxu1 %v8281_v11  ;;  %6055 = vmatprep.subr.bf16.mxu0 %v8286_v57  ;;  %v8365_v11 = vld [vmem:[%s11521_s5 + $0x740] ss:$8 sps:$4 sm:$0xff]   ;;  %v8370_v57 = vld [vmem:[%s11521_s5 + $0x634] ss:$8 sps:$4 sm:$0xff]  }
 0x482   :  { %6096 = vmatprep.subr.bf16.mxu1 %v8289_v45  ;;  %v8373_v45 = vld [vmem:[%s11521_s5 + $0x734] ss:$8 sps:$4 sm:$0xff]  }
 0x484   :  { %6056 = vmatpush1.bf16.msra.mxu0 %v8284_v32  ;;  %v8368_v32 = vld [vmem:[%s11521_s5 + $0x630] ss:$8 sps:$4 sm:$0xff]  }
 0x485   :  { %6097 = vmatpush1.bf16.msra.mxu1 %v8287_v19  ;;  %6057 = vmatprep.subr.bf16.mxu0 %v8292_v17  ;;  %v8371_v19 = vld [vmem:[%s11521_s5 + $0x730] ss:$8 sps:$4 sm:$0xff]   ;;  %v8376_v17 = vld [vmem:[%s11521_s5 + $0x624] ss:$8 sps:$4 sm:$0xff]  }
 0x486   :  { %6098 = vmatprep.subr.bf16.mxu1 %v8295_v41  ;;  %v8379_v41 = vld [vmem:[%s11521_s5 + $0x724] ss:$8 sps:$4 sm:$0xff]  }
 0x488   :  { %6058 = vmatpush1.bf16.msra.mxu0 %v8290_v9  ;;  %v8374_v9 = vld [vmem:[%s11521_s5 + $0x620] ss:$8 sps:$4 sm:$0xff]  }
 0x489   :  { %6099 = vmatpush1.bf16.msra.mxu1 %v8293_v43  ;;  %6059 = vmatprep.subr.bf16.mxu0 %v8298_v58  ;;  %v8377_v43 = vld [vmem:[%s11521_s5 + $0x720] ss:$8 sps:$4 sm:$0xff]   ;;  %v8382_v58 = vld [vmem:[%s11521_s5 + $0x614] ss:$8 sps:$4 sm:$0xff]  }
 0x48a   :  { %6100 = vmatprep.subr.bf16.mxu1 %v8301_v33  ;;  %v8385_v33 = vld [vmem:[%s11521_s5 + $0x714] ss:$8 sps:$4 sm:$0xff]  }
 0x48c   :  { %6060 = vmatpush2.bf16.msra.mxu0 %v8296_v21  ;;  %v8380_v21 = vld [vmem:[%s11521_s5 + $0x610] ss:$8 sps:$4 sm:$0xff]  }
 0x48d   :  { %6101 = vmatpush2.bf16.msra.mxu1 %v8299_v37  ;;  %6061 = vmatprep.subr.bf16.mxu0 %v8304_v1  ;;  %v8383_v37 = vld [vmem:[%s11521_s5 + $0x710] ss:$8 sps:$4 sm:$0xff]   ;;  %v8388_v1 = vld [vmem:[%s11521_s5 + $0x604] ss:$8 sps:$4 sm:$0xff]  }
 0x48e   :  { %6102 = vmatprep.subr.bf16.mxu1 %v8307_v49  ;;  %v8391_v49 = vld [vmem:[%s11521_s5 + $0x704] ss:$8 sps:$4 sm:$0xff]  }
 0x490   :  { %6062 = vmatpush2.bf16.msra.mxu0 %v8302_v18  ;;  %v8386_v18 = vld [vmem:[%s11521_s5 + $0x600] ss:$8 sps:$4 sm:$0xff]  }
 0x491   :  { %6103 = vmatpush2.bf16.msra.mxu1 %v8305_v10  ;;  %6063 = vmatprep.subr.bf16.mxu0 %v8310_v63  ;;  %v8389_v10 = vld [vmem:[%s11521_s5 + $0x700] ss:$8 sps:$4 sm:$0xff]   ;;  %v8394_v63 = vld [vmem:[%s11521_s5 + $0x6f4] ss:$8 sps:$4 sm:$0xff]  }
 0x492   :  { %6104 = vmatprep.subr.bf16.mxu1 %v8313_v56  ;;  %v8397_v56 = vld [vmem:[%s11521_s5 + $0x7f4] ss:$8 sps:$4 sm:$0xff]  }
 0x494   :  { %6064 = vmatpush2.bf16.msra.mxu0 %v8308_v31  ;;  %v8392_v31 = vld [vmem:[%s11521_s5 + $0x6f0] ss:$8 sps:$4 sm:$0xff]  }
 0x495   :  { %6105 = vmatpush2.bf16.msra.mxu1 %v8311_v52  ;;  %6065 = vmatprep.subr.bf16.mxu0 %v8316_v22  ;;  %v8395_v52 = vld [vmem:[%s11521_s5 + $0x7f0] ss:$8 sps:$4 sm:$0xff]   ;;  %v8400_v22 = vld [vmem:[%s11521_s5 + $0x6e4] ss:$8 sps:$4 sm:$0xff]  }
 0x496   :  { %6106 = vmatprep.subr.bf16.mxu1 %v8319_v55  ;;  %v8403_v55 = vld [vmem:[%s11521_s5 + $0x7e4] ss:$8 sps:$4 sm:$0xff]  }
 0x498   :  { %6066 = vmatpush2.bf16.msra.mxu0 %v8314_v3  ;;  %v8398_v3 = vld [vmem:[%s11521_s5 + $0x6e0] ss:$8 sps:$4 sm:$0xff]  }
 0x499   :  { %6107 = vmatpush2.bf16.msra.mxu1 %v8317_v16  ;;  %6067 = vmatprep.subr.bf16.mxu0 %v8322_v42  ;;  %v8401_v16 = vld [vmem:[%s11521_s5 + $0x7e0] ss:$8 sps:$4 sm:$0xff]   ;;  %v8406_v42 = vld [vmem:[%s11521_s5 + $0x6d4] ss:$8 sps:$4 sm:$0xff]  }
 0x49a   :  { %6108 = vmatprep.subr.bf16.mxu1 %v8325_v61  ;;  %v8409_v61 = vld [vmem:[%s11521_s5 + $0x7d4] ss:$8 sps:$4 sm:$0xff]  }
 0x49c   :  { %6068 = vmatpush2.bf16.msra.mxu0 %v8320_v12  ;;  %v8404_v12 = vld [vmem:[%s11521_s5 + $0x6d0] ss:$8 sps:$4 sm:$0xff]  }
 0x49d   :  { %6109 = vmatpush2.bf16.msra.mxu1 %v8323_v59  ;;  %6069 = vmatprep.subr.bf16.mxu0 %v8328_v27  ;;  %v8407_v59 = vld [vmem:[%s11521_s5 + $0x7d0] ss:$8 sps:$4 sm:$0xff]   ;;  %v8412_v27 = vld [vmem:[%s11521_s5 + $0x6c4] ss:$8 sps:$4 sm:$0xff]  }
 0x49e   :  { %6110 = vmatprep.subr.bf16.mxu1 %v8331_v29  ;;  %v8415_v29 = vld [vmem:[%s11521_s5 + $0x7c4] ss:$8 sps:$4 sm:$0xff]  }
 0x4a0   :  { %6070 = vmatpush2.bf16.msra.mxu0 %v8326_v40  ;;  %v8410_v40 = vld [vmem:[%s11521_s5 + $0x6c0] ss:$8 sps:$4 sm:$0xff]  }
 0x4a1   :  { %6111 = vmatpush2.bf16.msra.mxu1 %v8329_v30  ;;  %6071 = vmatprep.subr.bf16.mxu0 %v8334_v39  ;;  %v8413_v30 = vld [vmem:[%s11521_s5 + $0x7c0] ss:$8 sps:$4 sm:$0xff]   ;;  %v8418_v39 = vld [vmem:[%s11521_s5 + $0x6b4] ss:$8 sps:$4 sm:$0xff]  }
 0x4a2   :  { %6112 = vmatprep.subr.bf16.mxu1 %v8337_v35  ;;  %v8421_v35 = vld [vmem:[%s11521_s5 + $0x7b4] ss:$8 sps:$4 sm:$0xff]  }
 0x4a4   :  { %6072 = vmatpush2.bf16.msra.mxu0 %v8332_v62  ;;  %v8416_v62 = vld [vmem:[%s11521_s5 + $0x6b0] ss:$8 sps:$4 sm:$0xff]  }
 0x4a5   :  { %6113 = vmatpush2.bf16.msra.mxu1 %v8335_v5  ;;  %6073 = vmatprep.subr.bf16.mxu0 %v8340_v13  ;;  %v8419_v5 = vld [vmem:[%s11521_s5 + $0x7b0] ss:$8 sps:$4 sm:$0xff]   ;;  %v8424_v13 = vld [vmem:[%s11521_s5 + $0x6a4] ss:$8 sps:$4 sm:$0xff]  }
 0x4a6   :  { %6114 = vmatprep.subr.bf16.mxu1 %v8343_v26  ;;  %v8427_v26 = vld [vmem:[%s11521_s5 + $0x7a4] ss:$8 sps:$4 sm:$0xff]  }
 0x4a8   :  { %6074 = vmatpush2.bf16.msra.mxu0 %v8338_v20  ;;  %v8422_v20 = vld [vmem:[%s11521_s5 + $0x6a0] ss:$8 sps:$4 sm:$0xff]  }
 0x4a9   :  { %6115 = vmatpush2.bf16.msra.mxu1 %v8341_v0  ;;  %6125 = vmatprep.subr.bf16.mxu0 %v8346_v6  ;;  %v8425_v0 = vld [vmem:[%s11521_s5 + $0x7a0] ss:$8 sps:$4 sm:$0xff]   ;;  %v8430_v6 = vld [vmem:[%s11521_s5 + $0x694] ss:$8 sps:$4 sm:$0xff]  }
 0x4aa   :  { %6166 = vmatprep.subr.bf16.mxu1 %v8349_v36  ;;  %v8433_v36 = vld [vmem:[%s11521_s5 + $0x794] ss:$8 sps:$4 sm:$0xff]  }
 0x4ab   :  { %6076 = vmatmul.mubr.bf16.vlgmr.msra.gmra.mxu0 %v4323_v51  ;;  %v4590_v51 = vshrl.u32 %v35_v53, 7  ;;  %v8434_v53 = vld [vmem:[%s11521_s5 + $0x680] ss:$8 sps:$4 sm:$0xff]  }
 0x4ac   :  { %6117 = vmatmul.mubr.bf16.vlgmr.msra.gmra.mxu1 %v4325_v25  ;;  %6126 = vmatpush1.bf16.msra.mxu0 %v8344_v28  ;;  %v8428_v28 = vld [vmem:[%s11521_s5 + $0x690] ss:$8 sps:$4 sm:$0xff]   ;;  %v8436_v25 = vld [vmem:[%s11521_s5 + $0x684] ss:$8 sps:$4 sm:$0xff]  }
 0x4ad   :  { %6157 = vmatprep.mubr.bf16.mxu0 %v4328_v14  ;;  %6167 = vmatpush1.bf16.msra.mxu1 %v8347_v60  ;;  %v8431_v60 = vld [vmem:[%s11521_s5 + $0x790] ss:$8 sps:$4 sm:$0xff]   ;;  %v4591_v14 = vsub.s32 0, %v4590_v51 }
 0x4ae   :  { %6198 = vmatprep.mubr.bf16.mxu1 %v4330_v34  ;;  %6127 = vmatprep.subr.bf16.mxu0 %v8352_v50  ;;  %v8439_v50 = vld [vmem:[%s11521_s5 + $0x784] ss:$8 sps:$4 sm:$0xff]   ;;  %v4587_v34 = vld [vmem:[%s11522_s6] sm:$0x3] }
 0x4af   :  { %6168 = vmatprep.subr.bf16.mxu1 %v8355_v47  ;;  %v8437_v47 = vld [vmem:[%s11521_s5 + $0x780] ss:$8 sps:$4 sm:$0xff]  }
 0x4b0   :  { %6128 = vmatpush1.bf16.msra.mxu0 %v8350_v7  ;;  %v4595_v7 = vsub.s32 1, %v4590_v51 }
 0x4b1   :  { %6169 = vmatpush1.bf16.msra.mxu1 %v8353_v54  ;;  %6129 = vmatprep.subr.bf16.mxu0 %v8358_v15  ;;  %v4592_v54 = vrot.slane %v4587_v34, %v4591_v14  ;;  %v4327_v15 = vpack.c.bf16 %v10921_v4, %v10921_v4  ;;  %v8440_v4 = vld [vmem:[%s11523_s7 + $0x78] sm:$0xff]  }
 0x4b2   :  { %6170 = vmatprep.subr.bf16.mxu1 %v8361_v38  ;;  %v4329_v38 = vpack.c.bf16 %v10925_v23, %v10925_v23  ;;  %v8441_v23 = vld [vmem:[%s11523_s7 + $0x38] sm:$0xff]  }
 0x4b4   :  { %6130 = vmatpush1.bf16.msra.mxu0 %v8356_v46  ;;  %v4596_v46 = vrot.slane %v4587_v34, %v4595_v7 }
 0x4b5   :  { %6171 = vmatpush1.bf16.msra.mxu1 %v8359_v48  ;;  %6131 = vmatprep.subr.bf16.mxu0 %v8364_v2 }
 0x4b6   :  { %6172 = vmatprep.subr.bf16.mxu1 %v8367_v44 }
 0x4b8   :  { %6132 = vmatpush1.bf16.msra.mxu0 %v8362_v24 }
 0x4b9   :  { %6173 = vmatpush1.bf16.msra.mxu1 %v8365_v11  ;;  %6133 = vmatprep.subr.bf16.mxu0 %v8370_v57 }
 0x4ba   :  { %6174 = vmatprep.subr.bf16.mxu1 %v8373_v45 }
 0x4bc   :  { %6134 = vmatpush1.bf16.msra.mxu0 %v8368_v32 }
 0x4bd   :  { %6175 = vmatpush1.bf16.msra.mxu1 %v8371_v19  ;;  %6135 = vmatprep.subr.bf16.mxu0 %v8376_v17 }
 0x4be   :  { %6176 = vmatprep.subr.bf16.mxu1 %v8379_v41 }
 0x4c0   :  { %6136 = vmatpush1.bf16.msra.mxu0 %v8374_v9 }
 0x4c1   :  { %6177 = vmatpush1.bf16.msra.mxu1 %v8377_v43  ;;  %6137 = vmatprep.subr.bf16.mxu0 %v8382_v58  ;;  %v8442_v43 = vld [vmem:[%s11523_s7 + $0x70] sm:$0xff]  }
 0x4c2   :  { %6178 = vmatprep.subr.bf16.mxu1 %v8385_v33  ;;  %v8443_v58 = vld [vmem:[%s11523_s7 + $0x30] sm:$0xff]   ;;  %v8444_v33 = vld [vmem:[%s11523_s7 + $0x68] sm:$0xff]  }
 0x4c4   :  { %6138 = vmatpush1.bf16.msra.mxu0 %v8380_v21  ;;  %v8445_v21 = vld [vmem:[%s11523_s7 + $0x28] sm:$0xff]  }
 0x4c5   :  { %6179 = vmatpush1.bf16.msra.mxu1 %v8383_v37  ;;  %6139 = vmatprep.subr.bf16.mxu0 %v8388_v1  ;;  %v8446_v37 = vld [vmem:[%s11523_s7 + $0x60] sm:$0xff]  }
 0x4c6   :  { %6180 = vmatprep.subr.bf16.mxu1 %v8391_v49  ;;  %v8447_v1 = vld [vmem:[%s11523_s7 + $0x20] sm:$0xff]   ;;  %v8448_v49 = vld [vmem:[%s11523_s7 + $0x58] sm:$0xff]  }
 0x4c8   :  { %6140 = vmatpush1.bf16.msra.mxu0 %v8386_v18  ;;  %v8449_v18 = vld [vmem:[%s11523_s7 + $0x18] sm:$0xff]  }
 0x4c9   :  { %6181 = vmatpush1.bf16.msra.mxu1 %v8389_v10  ;;  %6141 = vmatprep.subr.bf16.mxu0 %v8394_v63  ;;  %v8450_v63 = vld [vmem:[%s11523_s7 + $0x50] sm:$0xff]  }
 0x4ca   :  { %6182 = vmatprep.subr.bf16.mxu1 %v8397_v56 }
 0x4cc   :  { %6142 = vmatpush2.bf16.msra.mxu0 %v8392_v31 }
 0x4cd   :  { %6183 = vmatpush2.bf16.msra.mxu1 %v8395_v52  ;;  %6143 = vmatprep.subr.bf16.mxu0 %v8400_v22  ;;  %v8451_v52 = vld [vmem:[%s11523_s7 + $0x10] sm:$0xff]  }
 0x4ce   :  { %6184 = vmatprep.subr.bf16.mxu1 %v8403_v55 }
 0x4d0   :  { %6144 = vmatpush2.bf16.msra.mxu0 %v8398_v3 }
 0x4d1   :  { %6185 = vmatpush2.bf16.msra.mxu1 %v8401_v16  ;;  %6145 = vmatprep.subr.bf16.mxu0 %v8406_v42 }
 0x4d2   :  { %6186 = vmatprep.subr.bf16.mxu1 %v8409_v61  ;;  %v8452_v61 = vld [vmem:[%s11523_s7 + $0x48] sm:$0xff]  }
 0x4d4   :  { %6146 = vmatpush2.bf16.msra.mxu0 %v8404_v12 }
 0x4d5   :  { %6187 = vmatpush2.bf16.msra.mxu1 %v8407_v59  ;;  %6147 = vmatprep.subr.bf16.mxu0 %v8412_v27  ;;  %v8453_v27 = vld [vmem:[%s11523_s7 + $0x8] sm:$0xff]  }
 0x4d6   :  { %6188 = vmatprep.subr.bf16.mxu1 %v8415_v29 }
 0x4d8   :  { %6148 = vmatpush2.bf16.msra.mxu0 %v8410_v40 }
 0x4d9   :  { %6189 = vmatpush2.bf16.msra.mxu1 %v8413_v30  ;;  %6149 = vmatprep.subr.bf16.mxu0 %v8418_v39  ;;  %v8454_v30 = vld [vmem:[%s11523_s7 + $0x40] sm:$0xff]  }
 0x4da   :  { %6190 = vmatprep.subr.bf16.mxu1 %v8421_v35  ;;  %v8455_v39 = vld [vmem:[%s11523_s7] sm:$0xff]  }
 0x4dc   :  { %6150 = vmatpush2.bf16.msra.mxu0 %v8416_v62 }
 0x4dd   :  { %6191 = vmatpush2.bf16.msra.mxu1 %v8419_v5  ;;  %6151 = vmatprep.subr.bf16.mxu0 %v8424_v13 }
 0x4de   :  { %6192 = vmatprep.subr.bf16.mxu1 %v8427_v26 }
 0x4e0   :  { %6152 = vmatpush2.bf16.msra.mxu0 %v8422_v20 }
 0x4e1   :  { %6193 = vmatpush2.bf16.msra.mxu1 %v8425_v0  ;;  %6153 = vmatprep.subr.bf16.mxu0 %v8430_v6 }
 0x4e2   :  { %6194 = vmatprep.subr.bf16.mxu1 %v8433_v36 }
 0x4e4   :  { %6154 = vmatpush2.bf16.msra.mxu0 %v8428_v28 }
 0x4e5   :  { %6195 = vmatpush2.bf16.msra.mxu1 %v8431_v60  ;;  %6155 = vmatprep.subr.bf16.mxu0 %v8436_v25 }
 0x4e6   :  { %6196 = vmatprep.subr.bf16.mxu1 %v8439_v50 }
 0x4e8   :  { %6156 = vmatpush2.bf16.msra.mxu0 %v8434_v53 }
 0x4e9   :  { %6197 = vmatpush2.bf16.msra.mxu1 %v8437_v47  ;;  %7273 = vmatprep.subr.bf16.mxu0 %v8440_v4 }
 0x4eb   :  { %6158 = vmatmul.mubr.bf16.vlgmr.msra.gmra.mxu0 %v4327_v15  ;;  %v5913_v48 = vpop.f32.mrf.mxu0  ;;  %v5954_v44 = vpop.f32.mrf.mxu1 }
 0x4ec   :  { %6199 = vmatmul.mubr.bf16.vlgmr.msra.gmra.mxu1 %v4329_v38  ;;  %v5914_v2 = vadd.f32 %v5913_v48, %v4592_v54  ;;  %7274 = vmatpush3.bf16.msra.mxu0 %v8441_v23 }
 0x4ed   :  { %v5915_v24 = vpop.f32.mrf.mxu0  ;;  %v5956_v45 = vpop.f32.mrf.mxu1  ;;  %7275 = vmatprep.subr.bf16.mxu0 %v8442_v43 }
 0x4ee   :  { %v5955_v11 = vadd.f32 %v5954_v44, %v5914_v2  ;;  %v5916_v57 = vadd.f32 %v5915_v24, %v4596_v46 }
 0x4ef   :  { %v5917_v32 = vpop.f32.mrf.mxu0  ;;  %v5958_v17 = vpop.f32.mrf.mxu1 }
 0x4f0   :  { %v5957_v19 = vadd.f32 %v5956_v45, %v5916_v57  ;;  %7276 = vmatpush3.bf16.msra.mxu0 %v8443_v58  ;;  %v7028_v45 = vld [vmem:[%s11524_s8] ss:$0 sm:$0xff]  ;;  %s8492_s8 = smov [#allocation6]  }
 0x4f1   :  { %v5918_v41 = vpop.f32.mrf.mxu0  ;;  %v5959_v9 = vpop.f32.mrf.mxu1  ;;  %7277 = vmatprep.subr.bf16.mxu0 %v8444_v33  ;;  %s6408_s3 = sshll.u32 %s8492_s8, 4  ;;  %s6409_s3 = int_to_ptr.vmem [resolvable:$true] %s6408_s3 }
 0x4f2   :  { %s8468_s2 = scalar_lea.vmem %s6409_s3, 32  ;;  %p8473_p1 = scmp.lt.s32.totalorder %s6409_s3, %s6409_s3 }
 0x4f3   :  { %p8469_p0 = scmp.ne.s32.totalorder %s6409_s3, %s8468_s2  ;;  %p8474_p2 = scmp.lt.s32.totalorder %s8468_s2, %s8468_s2 }
 0x4f4   :  { %7278 = vmatpush3.bf16.msra.mxu0 %v8445_v21 }
 0x4f5   :  { %7279 = vmatprep.subr.bf16.mxu0 %v8446_v37  ;;  %p8475_p3 = por %p8474_p2, %p8473_p1 }
 0x4f7   :  { %p8476_p4 = pnand %p8475_p3, %p8469_p0 }
 0x4f8   :  { %7280 = vmatpush3.bf16.msra.mxu0 %v8447_v1 }
 0x4f9   :  { %7281 = vmatprep.subr.bf16.mxu0 %v8448_v49 }
 0x4fc   :  { %7282 = vmatpush3.bf16.msra.mxu0 %v8449_v18 }
 0x4fd   :  { %7283 = vmatprep.subr.bf16.mxu0 %v8450_v63 }
 0x500   :  { %7284 = vmatpush3.bf16.msra.mxu0 %v8451_v52 }
 0x501   :  { %7285 = vmatprep.subr.bf16.mxu0 %v8452_v61 }
 0x504   :  { %7286 = vmatpush3.bf16.msra.mxu0 %v8453_v27 }
 0x505   :  { %7287 = vmatprep.subr.bf16.mxu0 %v8454_v30 }
 0x508   :  { %7288 = vmatpush3.bf16.msra.mxu0 %v8455_v39 }
 0x52b   :  { %v5995_v10 = vpop.f32.mrf.mxu0  ;;  %v6036_v31 = vpop.f32.mrf.mxu1 }
 0x52c   :  { %v5996_v56 = vadd.f32 %v5995_v10, %v5955_v11 }
 0x52d   :  { %v5997_v22 = vpop.f32.mrf.mxu0  ;;  %v6038_v16 = vpop.f32.mrf.mxu1 }
 0x52e   :  { %v6037_v55 = vadd.f32 %v6036_v31, %v5996_v56  ;;  %v5998_v3 = vadd.f32 %v5997_v22, %v5957_v19 }
 0x52f   :  { %v5999_v42 = vpop.f32.mrf.mxu0  ;;  %v6040_v59 = vpop.f32.mrf.mxu1 }
 0x530   :  { %v6039_v12 = vadd.f32 %v6038_v16, %v5998_v3 }
 0x531   :  { %v6000_v29 = vpop.f32.mrf.mxu0  ;;  %v6041_v40 = vpop.f32.mrf.mxu1 }
 0x56b   :  { %v6077_v35 = vpop.f32.mrf.mxu0 }
 0x56c   :  { %v6078_v62 = vadd.f32 %v6077_v35, %v6037_v55  ;;  %v6118_v5 = vpop.f32.mrf.mxu1 }
 0x56d   :  { %v6079_v13 = vpop.f32.mrf.mxu0 }
 0x56e   :  { %v6119_v26 = vadd.f32 %v6118_v5, %v6078_v62  ;;  %v6120_v20 = vpop.f32.mrf.mxu1  ;;  %v6080_v51 = vadd.f32 %v6079_v13, %v6039_v12 }
 0x56f   :  { %v6081_v0 = vpop.f32.mrf.mxu0 }
 0x570   :  { %v6122_v6 = vpop.f32.mrf.mxu1  ;;  %v6121_v25 = vadd.f32 %v6120_v20, %v6080_v51 }
 0x571   :  { %v6082_v36 = vpop.f32.mrf.mxu0 }
 0x572   :  { %v6123_v28 = vpop.f32.mrf.mxu1 }
 0x5ab   :  { %v6159_v60 = vpop.f32.mrf.mxu0 }
 0x5ac   :  { %v6160_v50 = vadd.f32 %v6159_v60, %v6119_v26  ;;  %v6200_v53 = vpop.f32.mrf.mxu1 }
 0x5ad   :  { %v6161_v14 = vpop.f32.mrf.mxu0 }
 0x5ae   :  { %v6201_v47 = vadd.f32 %v6200_v53, %v6160_v50  ;;  %v6162_v34 = vadd.f32 %v6161_v14, %v6121_v25  ;;  %v6202_v7 = vpop.f32.mrf.mxu1 }
 0x5af   :  { %v6163_v54 = vpop.f32.mrf.mxu0 }
 0x5b0   :  { %v6203_v15 = vadd.f32 %v6202_v7, %v6162_v34  ;;  %v6204_v38 = vpop.f32.mrf.mxu1  ;;  %v6207_v46 = vmax.f32 %v6201_v47, 0.0 }
 0x5b1   :  { %v6164_v48 = vpop.f32.mrf.mxu0 }
 0x5b2   :  { %v6208_v2 = vmax.f32 %v6203_v15, 0.0  ;;  %v6205_v44 = vpop.f32.mrf.mxu1  ;;  %v6209_v11 = vpack.c.bf16 %v6207_v46, %v6207_v46 }
 0x5b4   :  { %v6210_v24 = vpack.c.bf16 %v6208_v2, %v6208_v2 }
 0x5b6   :  { %6378 = vmatprep.mubr.bf16.mxu0 %v6210_v24 }
 0x5b7   :  { %6379 = vmatmul.mubr.bf16.vlgmr.msra.gmra.mxu0 %v6209_v11 }
 0x677   :  { %v7289_v57 = vpop.f32.mrf.mxu0 }
 0x679   :  { %v7290_v32 = vpop.f32.mrf.mxu0 }
 0x67a   :  { %v7291_v19 = vadd.f32 %v7290_v32, %v7289_v57 }
 0x67b   :  { %v7292_v17 = vpop.f32.mrf.mxu0 }
 0x67c   :  { %v6381_v41 = vadd.f32 %v7291_v19, %v7028_v45 }
 0x67d   :  { %v7293_v9 = vpop.f32.mrf.mxu0 }
 0x67e   :  { %v6387_v4 = vsel %vm6386_vm7, %v6381_v41, -1e+30 }
 0x67f   :  { %v6389_v23 = vsel %vm6388_vm8, %v6387_v4, -inf }
 0x680   :  { %6390 = vmax.xlane.f32.xlu0 %v6389_v23 }
 0x709   :  { %v6391_v43 = vpop.xlane.xlu0 %6390 }
 0x70a   :  { %v6392_v58 = vsub.f32 %v6387_v4, %v6391_v43 }
 0x70c   :  { %v6393_v33 = vmul.f32 1.442695, %v6392_v58 }
 0x70e   :  { %8456 = vpow2.f32 %v6393_v33 }
 0x71b   :  { %v8457_v21 = vpop.eup %8456 }
 0x71c   :  { %v6395_v37 = vsel %vm6388_vm8, %v8457_v21, 0.0 }
 0x71d   :  { %6396 = vadd.xlane.f32.xlu0 %v6395_v37 }
 0x7a6   :  { %v6397_v1 = vpop.xlane.xlu0 %6396 }
 0x7a7   :  { %8458 = vlog2.f32 %v6397_v1 }
 0x7b4   :  { %v8459_v49 = vpop.eup %8458 }
 0x7b5   :  { %v6399_v18 = vmul.f32 0.6931472, %v8459_v49 }
 0x7b7   :  { %v6400_v8 = vsub.f32 %v6392_v58, %v6399_v18 }
 0x7b9   :  { %6401 = vst [vmem:[#allocation6] sm:$0x3] %v6400_v8 }
 0x7ba   :  { %8479 = shalt.err (!%p8476_p4)
}
 0x7bb   :  { %6411 = dma.vmem_to_hbm [thread:$0]  %s6409_s3, 32, %s11525_s9, [#allocation7]  }
 0x7bc   :  { %8488 = dma.done.wait [#allocation7], 32  }
 0x7bd   :  { %8489 = vsyncadd [#allocation7], 4294967264 }
 0x7be   :  { %6415 = vsyncpa [#allocation7], 1 }

</bundles_post_ra>
